<compile_context>
chip_gen: v7x
topology: tpu7x:2x2x1
jax: 0.10.0
libtpu: 0.0.40
codegen_flags: <defaults>
</compile_context>

<pallas_src>
import functools

import jax
import jax.numpy as jnp
from jax import lax
from jax.experimental import pallas as pl
from jax.experimental.pallas import tpu as pltpu


def _round_up(x, m):
    return ((x + m - 1) // m) * m


def lstm_recurrence_kernel(idx_ref, xg_table_ref, whh_ref, hout_ref, h_scr, c_scr,
                           *, T, TS, B_pad, H_pad, V_pad):
    """One grid step = TS timesteps of the LSTM recurrence.

    idx_ref     : (T_pad*B_pad,) int32 SMEM (scalar prefetch), time-major token ids
    xg_table_ref: (V_pad, 4*H_pad) f32  VMEM-resident pre-projected embedding table
                  (row v = emb[v] @ W_ih^T + b_ih + b_hh; gate order i,f,o,g; zero-padded)
    whh_ref     : (H_pad, 4*H_pad) bf16 recurrent weights (zero-padded, gate-block aligned)
    hout_ref    : (B_pad, H_pad)   f32  final hidden state (written on the last chunk only)
    h_scr, c_scr: (B_pad, H_pad)   f32  VMEM scratch persisting across grid steps
    """
    chunk = pl.program_id(0)

    @pl.when(chunk == 0)
    def _init():
        h_scr[...] = jnp.zeros_like(h_scr)
        c_scr[...] = jnp.zeros_like(c_scr)

    row_iota = lax.broadcasted_iota(jnp.int32, (B_pad, V_pad), 0)
    col_iota = lax.broadcasted_iota(jnp.int32, (B_pad, V_pad), 1)

    def step(s, carry):
        h, c = carry
        t = chunk * TS + s               # global timestep (traced scalar)
        base = t * B_pad

        # Exact in-VMEM gather of gate pre-activations: one-hot mask built from SMEM
        # token ids (B_pad is small & static -> a handful of vreg selects), then one
        # MXU matmul against the resident pre-projected table.
        onehot = jnp.zeros((B_pad, V_pad), jnp.float32)
        for b in range(B_pad):
            tok = idx_ref[base + b]
            onehot = jnp.where((row_iota == b) & (col_iota == tok), 1.0, onehot)
        xg = jnp.dot(onehot, xg_table_ref[...], preferred_element_type=jnp.float32)

        # Only the h-dependent matmul sits on the serial chain (bf16 operands, f32 acc).
        gates = xg + jnp.dot(h.astype(jnp.bfloat16), whh_ref[...],
                             preferred_element_type=jnp.float32)      # (B_pad, 4*H_pad)

        # Gate order [i, f, o, g]: one wide sigmoid over 3*H_pad lanes, one tanh.
        sig = jax.nn.sigmoid(gates[:, :3 * H_pad])
        g_g = jnp.tanh(gates[:, 3 * H_pad:])
        i_g = sig[:, 0 * H_pad:1 * H_pad]
        f_g = sig[:, 1 * H_pad:2 * H_pad]
        o_g = sig[:, 2 * H_pad:3 * H_pad]

        c_new = f_g * c + i_g * g_g
        h_new = o_g * jnp.tanh(c_new)

        valid = t < T                    # T is a Python int; guards padded timesteps
        return jnp.where(valid, h_new, h), jnp.where(valid, c_new, c)

    h, c = lax.fori_loop(0, TS, step, (h_scr[...], c_scr[...]), unroll=min(TS, 8))
    h_scr[...] = h
    c_scr[...] = c

    @pl.when(chunk == pl.num_programs(0) - 1)
    def _finalize():
        hout_ref[...] = h


def textgen_forward(x_idx, params):
    """x_idx: (B, T) int32 token indices. Returns logits (B, C) float32."""
    emb_table = params["embedding"]          # (C, E)
    w_ih = params["w_ih"]                    # (4H, E)  PyTorch layout, gate order i,f,g,o
    w_hh = params["w_hh"]                    # (4H, H)
    bias = params["b_ih"] + params["b_hh"]   # (4H,)
    fc_w = params["fc_w"]                    # (C, H)
    fc_b = params["fc_b"]                    # (C,)

    B, T = x_idx.shape
    C, E = emb_table.shape
    H = w_hh.shape[1]

    LANE, SUB = 128, 8
    H_pad = _round_up(H, LANE)
    V_pad = _round_up(C, LANE)               # vocab padded to lane width (one-hot matmul)
    B_pad = _round_up(B, SUB)
    G4 = 4 * H_pad

    # Time chunking: TS timesteps per grid step (single grid step for the toy T=8).
    TS = min(T, 32)
    num_chunks = pl.cdiv(T, TS)
    T_pad = num_chunks * TS

    # --- Repack gate blocks into H_pad-wide lane-aligned slots, transposed for the MXU.
    #     Destination order [i, f, o, g] (sigmoid gates contiguous); PyTorch source order
    #     is [i, f, g, o].  Padded columns stay zero -> padded hidden lanes stay exactly 0.
    GATE_SRC = (0, 1, 3, 2)

    def pack_gates_T(w):                      # (4H, D) -> (D, 4*H_pad), zero-padded
        D = w.shape[1]
        out = jnp.zeros((D, G4), jnp.float32)
        for k, src in enumerate(GATE_SRC):
            out = out.at[:, k * H_pad:k * H_pad + H].set(
                jnp.transpose(w[src * H:(src + 1) * H, :]).astype(jnp.float32))
        return out

    wih_p = pack_gates_T(w_ih)                                            # (E, G4)
    whh_p = jnp.zeros((H_pad, G4), jnp.float32).at[:H].set(pack_gates_T(w_hh))
    whh_b = whh_p.astype(jnp.bfloat16)
    b_p = jnp.zeros((G4,), jnp.float32)
    for k, src in enumerate(GATE_SRC):
        b_p = b_p.at[k * H_pad:k * H_pad + H].set(
            bias[src * H:(src + 1) * H].astype(jnp.float32))

    # --- Fused embedding + hoisted input projection, kept VMEM-resident in the kernel:
    #     (emb[x] @ W_ih^T + b) == (emb @ W_ih^T + b)[x]   (embedding is a row gather)
    xg_table = jnp.zeros((V_pad, G4), jnp.float32).at[:C].set(
        jnp.dot(emb_table.astype(jnp.float32), wih_p,
                preferred_element_type=jnp.float32) + b_p[None, :])       # (V_pad, G4)

    # --- Token indices -> SMEM via scalar prefetch (time-major, flattened 1D to avoid
    #     SMEM 2D padding blow-up).  Padded batch rows / timesteps use id 0 (in range).
    idx = jnp.zeros((T_pad, B_pad), jnp.int32).at[:T, :B].set(
        jnp.transpose(x_idx).astype(jnp.int32))
    idx_flat = idx.reshape(-1)                                            # (T_pad*B_pad,)

    kernel = functools.partial(lstm_recurrence_kernel,
                               T=T, TS=TS, B_pad=B_pad, H_pad=H_pad, V_pad=V_pad)

    grid_spec = pltpu.PrefetchScalarGridSpec(
        num_scalar_prefetch=1,
        grid=(num_chunks,),
        in_specs=[
            pl.BlockSpec((V_pad, G4), lambda c, idx: (0, 0)),   # pre-projected table (resident)
            pl.BlockSpec((H_pad, G4), lambda c, idx: (0, 0)),   # W_hh (resident)
        ],
        out_specs=pl.BlockSpec((B_pad, H_pad), lambda c, idx: (0, 0)),  # h_T, written last chunk
        scratch_shapes=[pltpu.VMEM((B_pad, H_pad), jnp.float32),        # h
                        pltpu.VMEM((B_pad, H_pad), jnp.float32)],       # c
    )

    h_final = pl.pallas_call(
        kernel,
        out_shape=jax.ShapeDtypeStruct((B_pad, H_pad), jnp.float32),
        grid_spec=grid_spec,
        compiler_params=pltpu.CompilerParams(dimension_semantics=("arbitrary",)),
    )(idx_flat, xg_table, whh_b)

    # Final FC outside the recurrence kernel (vocab-sized weights never sit in VMEM while
    # the recurrence runs); one tiny f32 matmul.
    logits = (h_final[:B, :H] @ jnp.transpose(fc_w).astype(jnp.float32)
              + fc_b.astype(jnp.float32))
    return logits


def reference_forward(x_idx, params):
    """Pure-JAX reference matching torch semantics (Embedding -> LSTM -> FC on last step)."""
    emb_table = params["embedding"]
    w_ih, w_hh = params["w_ih"], params["w_hh"]
    b_ih, b_hh = params["b_ih"], params["b_hh"]
    fc_w, fc_b = params["fc_w"], params["fc_b"]
    H = w_hh.shape[1]

    x = emb_table[x_idx]                                    # (B, T, E)
    B, T, E = x.shape
    h = jnp.zeros((B, H), jnp.float32)
    c = jnp.zeros((B, H), jnp.float32)
    for t in range(T):
        gates = x[:, t, :] @ w_ih.T + h @ w_hh.T + b_ih + b_hh
        i_g = jax.nn.sigmoid(gates[:, 0 * H:1 * H])
        f_g = jax.nn.sigmoid(gates[:, 1 * H:2 * H])
        g_g = jnp.tanh(gates[:, 2 * H:3 * H])
        o_g = jax.nn.sigmoid(gates[:, 3 * H:4 * H])
        c = f_g * c + i_g * g_g
        h = o_g * jnp.tanh(c)
    return h @ fc_w.T + fc_b


def init_params(key, char_size, embed_size, hidden_size):
    ks = jax.random.split(key, 7)
    s = 0.1
    return {
        "embedding": s * jax.random.normal(ks[0], (char_size, embed_size), jnp.float32),
        "w_ih": s * jax.random.normal(ks[1], (4 * hidden_size, embed_size), jnp.float32),
        "w_hh": s * jax.random.normal(ks[2], (4 * hidden_size, hidden_size), jnp.float32),
        "b_ih": s * jax.random.normal(ks[3], (4 * hidden_size,), jnp.float32),
        "b_hh": s * jax.random.normal(ks[4], (4 * hidden_size,), jnp.float32),
        "fc_w": s * jax.random.normal(ks[5], (char_size, hidden_size), jnp.float32),
        "fc_b": s * jax.random.normal(ks[6], (char_size,), jnp.float32),
    }


if __name__ == "__main__":
    char_size, embed_size, hidden_size = 16, 32, 32
    batch, seq = 2, 8

    key = jax.random.PRNGKey(0)
    k_param, k_x = jax.random.split(key)
    params = init_params(k_param, char_size, embed_size, hidden_size)
    x_idx = jax.random.randint(k_x, (batch, seq), 0, char_size, dtype=jnp.int32)

    logits = textgen_forward(x_idx, params)
    jax.block_until_ready(logits)

    ref = reference_forward(x_idx, params)
    assert logits.shape == (batch, char_size)
    # Only approximation: bf16 operands for the recurrent h @ W_hh matmul (f32 accumulate).
    assert jnp.allclose(logits, ref, atol=1e-2, rtol=1e-2)
    print("KERNEL_OK")
</pallas_src>

<mosaic_0001>
module attributes {stable_mosaic.version = 11 : i64} {
  func.func @lstm_recurrence_kernel(%arg0: i32, %arg1: memref<64xi32, #tpu.memory_space<smem>>, %arg2: memref<128x512xf32, #tpu.memory_space<vmem>>, %arg3: memref<128x512xbf16, #tpu.memory_space<vmem>>, %arg4: memref<8x128xf32, #tpu.memory_space<vmem>>, %arg5: memref<8x128xf32, #tpu.memory_space<vmem>>, %arg6: memref<8x128xf32, #tpu.memory_space<vmem>>) attributes {dimension_semantics = [#tpu.dimension_semantics<arbitrary>], iteration_bounds = array<i64: 1>, scalar_prefetch = 1 : i64, scratch_operands = 2 : i64, tpu.core_type = #tpu.core_type<tc>, window_params = [{pipeline_mode = #tpu.pipeline_mode<synchronous>, transform_indices = @transform_0, window_bounds = array<i64: 128, 512>}, {pipeline_mode = #tpu.pipeline_mode<synchronous>, transform_indices = @transform_1, window_bounds = array<i64: 128, 512>}, {pipeline_mode = #tpu.pipeline_mode<synchronous>, transform_indices = @transform_2, window_bounds = array<i64: 8, 128>}]} {
    %c0_i32 = arith.constant 0 : i32
    %0 = arith.cmpi eq, %arg0, %c0_i32 : i32
    %1 = arith.extui %0 : i1 to i32
    %c0_i32_0 = arith.constant 0 : i32
    %2 = arith.cmpi ne, %1, %c0_i32_0 : i32
    scf.if %2 {
      %cst_290 = arith.constant 0.000000e+00 : f32
      %884 = vector.broadcast %cst_290 : f32 to vector<8x128xf32>
      %c0_291 = arith.constant 0 : index
      %c0_292 = arith.constant 0 : index
      %885 = vector.load %arg5[%c0_291, %c0_292] : memref<8x128xf32, #tpu.memory_space<vmem>>, vector<8x128xf32>
      tpu.vector_store %arg5[%c0_291, %c0_292], %884 {strides = array<i32>} : memref<8x128xf32, #tpu.memory_space<vmem>>, vector<8x128xf32>,
      %cst_293 = arith.constant 0.000000e+00 : f32
      %886 = vector.broadcast %cst_293 : f32 to vector<8x128xf32>
      %c0_294 = arith.constant 0 : index
      %c0_295 = arith.constant 0 : index
      %887 = vector.load %arg6[%c0_294, %c0_295] : memref<8x128xf32, #tpu.memory_space<vmem>>, vector<8x128xf32>
      tpu.vector_store %arg6[%c0_294, %c0_295], %886 {strides = array<i32>} : memref<8x128xf32, #tpu.memory_space<vmem>>, vector<8x128xf32>,
    } else {
    }
    %3 = tpu.iota {dimensions = array<i32: 0>} : vector<8x128xi32>
    %4 = tpu.iota {dimensions = array<i32: 1>} : vector<8x128xi32>
    %c0 = arith.constant 0 : index
    %c0_1 = arith.constant 0 : index
    %5 = vector.load %arg5[%c0, %c0_1] : memref<8x128xf32, #tpu.memory_space<vmem>>, vector<8x128xf32>
    %c0_2 = arith.constant 0 : index
    %c0_3 = arith.constant 0 : index
    %6 = vector.load %arg6[%c0_2, %c0_3] : memref<8x128xf32, #tpu.memory_space<vmem>>, vector<8x128xf32>
    %c0_i32_4 = arith.constant 0 : i32
    %c8_i32 = arith.constant 8 : i32
    %7 = arith.muli %arg0, %c8_i32 : i32
    %8 = arith.addi %7, %c0_i32_4 : i32
    %c8_i32_5 = arith.constant 8 : i32
    %9 = arith.muli %8, %c8_i32_5 : i32
    %cst = arith.constant 0.000000e+00 : f32
    %10 = vector.broadcast %cst : f32 to vector<8x128xf32>
    %c0_i32_6 = arith.constant 0 : i32
    %11 = arith.addi %9, %c0_i32_6 : i32
    %12 = arith.index_cast %11 : i32 to index
    %13 = memref.load %arg1[%12] : memref<64xi32, #tpu.memory_space<smem>>
    %c0_i32_7 = arith.constant 0 : i32
    %14 = vector.broadcast %c0_i32_7 : i32 to vector<8x128xi32>
    %15 = arith.cmpi eq, %3, %14 : vector<8x128xi32>
    %16 = vector.broadcast %13 : i32 to vector<8x128xi32>
    %17 = arith.cmpi eq, %4, %16 : vector<8x128xi32>
    %18 = arith.andi %15, %17 : vector<8x128xi1>
    %cst_8 = arith.constant 1.000000e+00 : f32
    %19 = vector.broadcast %cst_8 : f32 to vector<8x128xf32>
    %20 = arith.select %18, %19, %10 : vector<8x128xi1>, vector<8x128xf32>
    %c1_i32 = arith.constant 1 : i32
    %21 = arith.addi %9, %c1_i32 : i32
    %22 = arith.index_cast %21 : i32 to index
    %23 = memref.load %arg1[%22] : memref<64xi32, #tpu.memory_space<smem>>
    %c1_i32_9 = arith.constant 1 : i32
    %24 = vector.broadcast %c1_i32_9 : i32 to vector<8x128xi32>
    %25 = arith.cmpi eq, %3, %24 : vector<8x128xi32>
    %26 = vector.broadcast %23 : i32 to vector<8x128xi32>
    %27 = arith.cmpi eq, %4, %26 : vector<8x128xi32>
    %28 = arith.andi %25, %27 : vector<8x128xi1>
    %cst_10 = arith.constant 1.000000e+00 : f32
    %29 = vector.broadcast %cst_10 : f32 to vector<8x128xf32>
    %30 = arith.select %28, %29, %20 : vector<8x128xi1>, vector<8x128xf32>
    %c2_i32 = arith.constant 2 : i32
    %31 = arith.addi %9, %c2_i32 : i32
    %32 = arith.index_cast %31 : i32 to index
    %33 = memref.load %arg1[%32] : memref<64xi32, #tpu.memory_space<smem>>
    %c2_i32_11 = arith.constant 2 : i32
    %34 = vector.broadcast %c2_i32_11 : i32 to vector<8x128xi32>
    %35 = arith.cmpi eq, %3, %34 : vector<8x128xi32>
    %36 = vector.broadcast %33 : i32 to vector<8x128xi32>
    %37 = arith.cmpi eq, %4, %36 : vector<8x128xi32>
    %38 = arith.andi %35, %37 : vector<8x128xi1>
    %cst_12 = arith.constant 1.000000e+00 : f32
    %39 = vector.broadcast %cst_12 : f32 to vector<8x128xf32>
    %40 = arith.select %38, %39, %30 : vector<8x128xi1>, vector<8x128xf32>
    %c3_i32 = arith.constant 3 : i32
    %41 = arith.addi %9, %c3_i32 : i32
    %42 = arith.index_cast %41 : i32 to index
    %43 = memref.load %arg1[%42] : memref<64xi32, #tpu.memory_space<smem>>
    %c3_i32_13 = arith.constant 3 : i32
    %44 = vector.broadcast %c3_i32_13 : i32 to vector<8x128xi32>
    %45 = arith.cmpi eq, %3, %44 : vector<8x128xi32>
    %46 = vector.broadcast %43 : i32 to vector<8x128xi32>
    %47 = arith.cmpi eq, %4, %46 : vector<8x128xi32>
    %48 = arith.andi %45, %47 : vector<8x128xi1>
    %cst_14 = arith.constant 1.000000e+00 : f32
    %49 = vector.broadcast %cst_14 : f32 to vector<8x128xf32>
    %50 = arith.select %48, %49, %40 : vector<8x128xi1>, vector<8x128xf32>
    %c4_i32 = arith.constant 4 : i32
    %51 = arith.addi %9, %c4_i32 : i32
    %52 = arith.index_cast %51 : i32 to index
    %53 = memref.load %arg1[%52] : memref<64xi32, #tpu.memory_space<smem>>
    %c4_i32_15 = arith.constant 4 : i32
    %54 = vector.broadcast %c4_i32_15 : i32 to vector<8x128xi32>
    %55 = arith.cmpi eq, %3, %54 : vector<8x128xi32>
    %56 = vector.broadcast %53 : i32 to vector<8x128xi32>
    %57 = arith.cmpi eq, %4, %56 : vector<8x128xi32>
    %58 = arith.andi %55, %57 : vector<8x128xi1>
    %cst_16 = arith.constant 1.000000e+00 : f32
    %59 = vector.broadcast %cst_16 : f32 to vector<8x128xf32>
    %60 = arith.select %58, %59, %50 : vector<8x128xi1>, vector<8x128xf32>
    %c5_i32 = arith.constant 5 : i32
    %61 = arith.addi %9, %c5_i32 : i32
    %62 = arith.index_cast %61 : i32 to index
    %63 = memref.load %arg1[%62] : memref<64xi32, #tpu.memory_space<smem>>
    %c5_i32_17 = arith.constant 5 : i32
    %64 = vector.broadcast %c5_i32_17 : i32 to vector<8x128xi32>
    %65 = arith.cmpi eq, %3, %64 : vector<8x128xi32>
    %66 = vector.broadcast %63 : i32 to vector<8x128xi32>
    %67 = arith.cmpi eq, %4, %66 : vector<8x128xi32>
    %68 = arith.andi %65, %67 : vector<8x128xi1>
    %cst_18 = arith.constant 1.000000e+00 : f32
    %69 = vector.broadcast %cst_18 : f32 to vector<8x128xf32>
    %70 = arith.select %68, %69, %60 : vector<8x128xi1>, vector<8x128xf32>
    %c6_i32 = arith.constant 6 : i32
    %71 = arith.addi %9, %c6_i32 : i32
    %72 = arith.index_cast %71 : i32 to index
    %73 = memref.load %arg1[%72] : memref<64xi32, #tpu.memory_space<smem>>
    %c6_i32_19 = arith.constant 6 : i32
    %74 = vector.broadcast %c6_i32_19 : i32 to vector<8x128xi32>
    %75 = arith.cmpi eq, %3, %74 : vector<8x128xi32>
    %76 = vector.broadcast %73 : i32 to vector<8x128xi32>
    %77 = arith.cmpi eq, %4, %76 : vector<8x128xi32>
    %78 = arith.andi %75, %77 : vector<8x128xi1>
    %cst_20 = arith.constant 1.000000e+00 : f32
    %79 = vector.broadcast %cst_20 : f32 to vector<8x128xf32>
    %80 = arith.select %78, %79, %70 : vector<8x128xi1>, vector<8x128xf32>
    %c7_i32 = arith.constant 7 : i32
    %81 = arith.addi %9, %c7_i32 : i32
    %82 = arith.index_cast %81 : i32 to index
    %83 = memref.load %arg1[%82] : memref<64xi32, #tpu.memory_space<smem>>
    %c7_i32_21 = arith.constant 7 : i32
    %84 = vector.broadcast %c7_i32_21 : i32 to vector<8x128xi32>
    %85 = arith.cmpi eq, %3, %84 : vector<8x128xi32>
    %86 = vector.broadcast %83 : i32 to vector<8x128xi32>
    %87 = arith.cmpi eq, %4, %86 : vector<8x128xi32>
    %88 = arith.andi %85, %87 : vector<8x128xi1>
    %cst_22 = arith.constant 1.000000e+00 : f32
    %89 = vector.broadcast %cst_22 : f32 to vector<8x128xf32>
    %90 = arith.select %88, %89, %80 : vector<8x128xi1>, vector<8x128xf32>
    %c0_23 = arith.constant 0 : index
    %c0_24 = arith.constant 0 : index
    %91 = vector.load %arg2[%c0_23, %c0_24] : memref<128x512xf32, #tpu.memory_space<vmem>>, vector<128x512xf32>
    %cst_25 = arith.constant dense<0.000000e+00> : vector<8x512xf32>
    %92 = tpu.matmul %90, %91, %cst_25 {dimension_numbers = #tpu.dot_dimension_numbers<[1], [0], [0], [1], [0, 0, 1, 1], [], []>} : vector<8x128xf32>, vector<128x512xf32>, vector<8x512xf32> -> vector<8x512xf32>
    %93 = arith.truncf %5 : vector<8x128xf32> to vector<8x128xbf16>
    %c0_26 = arith.constant 0 : index
    %c0_27 = arith.constant 0 : index
    %94 = vector.load %arg3[%c0_26, %c0_27] : memref<128x512xbf16, #tpu.memory_space<vmem>>, vector<128x512xbf16>
    %cst_28 = arith.constant dense<0.000000e+00> : vector<8x512xf32>
    %95 = tpu.matmul %93, %94, %cst_28 {dimension_numbers = #tpu.dot_dimension_numbers<[1], [0], [0], [1], [0, 0, 1, 1], [], []>} : vector<8x128xbf16>, vector<128x512xbf16>, vector<8x512xf32> -> vector<8x512xf32>
    %96 = arith.addf %92, %95 : vector<8x512xf32>
    %97 = vector.extract_strided_slice %96 {offsets = [0, 0], sizes = [8, 384], strides = [1, 1]} : vector<8x512xf32> to vector<8x384xf32>
    %98 = arith.negf %97 : vector<8x384xf32>
    %99 = math.exp %98 : vector<8x384xf32>
    %cst_29 = arith.constant 1.000000e+00 : f32
    %100 = vector.broadcast %cst_29 : f32 to vector<8x384xf32>
    %101 = arith.addf %100, %99 : vector<8x384xf32>
    %102 = arith.divf %100, %101 : vector<8x384xf32>
    %103 = vector.extract_strided_slice %96 {offsets = [0, 384], sizes = [8, 128], strides = [1, 1]} : vector<8x512xf32> to vector<8x128xf32>
    %104 = math.tanh %103 : vector<8x128xf32>
    %105 = vector.extract_strided_slice %102 {offsets = [0, 0], sizes = [8, 128], strides = [1, 1]} : vector<8x384xf32> to vector<8x128xf32>
    %106 = vector.extract_strided_slice %102 {offsets = [0, 128], sizes = [8, 128], strides = [1, 1]} : vector<8x384xf32> to vector<8x128xf32>
    %107 = vector.extract_strided_slice %102 {offsets = [0, 256], sizes = [8, 128], strides = [1, 1]} : vector<8x384xf32> to vector<8x128xf32>
    %108 = arith.mulf %106, %6 : vector<8x128xf32>
    %109 = arith.mulf %105, %104 : vector<8x128xf32>
    %110 = arith.addf %108, %109 : vector<8x128xf32>
    %111 = math.tanh %110 : vector<8x128xf32>
    %112 = arith.mulf %107, %111 : vector<8x128xf32>
    %c8_i32_30 = arith.constant 8 : i32
    %113 = arith.cmpi slt, %8, %c8_i32_30 : i32
    %114 = arith.select %113, %112, %5 : vector<8x128xf32>
    %115 = arith.select %113, %110, %6 : vector<8x128xf32>
    %c1_i32_31 = arith.constant 1 : i32
    %c8_i32_32 = arith.constant 8 : i32
    %116 = arith.muli %arg0, %c8_i32_32 : i32
    %117 = arith.addi %116, %c1_i32_31 : i32
    %c8_i32_33 = arith.constant 8 : i32
    %118 = arith.muli %117, %c8_i32_33 : i32
    %cst_34 = arith.constant 0.000000e+00 : f32
    %119 = vector.broadcast %cst_34 : f32 to vector<8x128xf32>
    %c0_i32_35 = arith.constant 0 : i32
    %120 = arith.addi %118, %c0_i32_35 : i32
    %121 = arith.index_cast %120 : i32 to index
    %122 = memref.load %arg1[%121] : memref<64xi32, #tpu.memory_space<smem>>
    %c0_i32_36 = arith.constant 0 : i32
    %123 = vector.broadcast %c0_i32_36 : i32 to vector<8x128xi32>
    %124 = arith.cmpi eq, %3, %123 : vector<8x128xi32>
    %125 = vector.broadcast %122 : i32 to vector<8x128xi32>
    %126 = arith.cmpi eq, %4, %125 : vector<8x128xi32>
    %127 = arith.andi %124, %126 : vector<8x128xi1>
    %cst_37 = arith.constant 1.000000e+00 : f32
    %128 = vector.broadcast %cst_37 : f32 to vector<8x128xf32>
    %129 = arith.select %127, %128, %119 : vector<8x128xi1>, vector<8x128xf32>
    %c1_i32_38 = arith.constant 1 : i32
    %130 = arith.addi %118, %c1_i32_38 : i32
    %131 = arith.index_cast %130 : i32 to index
    %132 = memref.load %arg1[%131] : memref<64xi32, #tpu.memory_space<smem>>
    %c1_i32_39 = arith.constant 1 : i32
    %133 = vector.broadcast %c1_i32_39 : i32 to vector<8x128xi32>
    %134 = arith.cmpi eq, %3, %133 : vector<8x128xi32>
    %135 = vector.broadcast %132 : i32 to vector<8x128xi32>
    %136 = arith.cmpi eq, %4, %135 : vector<8x128xi32>
    %137 = arith.andi %134, %136 : vector<8x128xi1>
    %cst_40 = arith.constant 1.000000e+00 : f32
    %138 = vector.broadcast %cst_40 : f32 to vector<8x128xf32>
    %139 = arith.select %137, %138, %129 : vector<8x128xi1>, vector<8x128xf32>
    %c2_i32_41 = arith.constant 2 : i32
    %140 = arith.addi %118, %c2_i32_41 : i32
    %141 = arith.index_cast %140 : i32 to index
    %142 = memref.load %arg1[%141] : memref<64xi32, #tpu.memory_space<smem>>
    %c2_i32_42 = arith.constant 2 : i32
    %143 = vector.broadcast %c2_i32_42 : i32 to vector<8x128xi32>
    %144 = arith.cmpi eq, %3, %143 : vector<8x128xi32>
    %145 = vector.broadcast %142 : i32 to vector<8x128xi32>
    %146 = arith.cmpi eq, %4, %145 : vector<8x128xi32>
    %147 = arith.andi %144, %146 : vector<8x128xi1>
    %cst_43 = arith.constant 1.000000e+00 : f32
    %148 = vector.broadcast %cst_43 : f32 to vector<8x128xf32>
    %149 = arith.select %147, %148, %139 : vector<8x128xi1>, vector<8x128xf32>
    %c3_i32_44 = arith.constant 3 : i32
    %150 = arith.addi %118, %c3_i32_44 : i32
    %151 = arith.index_cast %150 : i32 to index
    %152 = memref.load %arg1[%151] : memref<64xi32, #tpu.memory_space<smem>>
    %c3_i32_45 = arith.constant 3 : i32
    %153 = vector.broadcast %c3_i32_45 : i32 to vector<8x128xi32>
    %154 = arith.cmpi eq, %3, %153 : vector<8x128xi32>
    %155 = vector.broadcast %152 : i32 to vector<8x128xi32>
    %156 = arith.cmpi eq, %4, %155 : vector<8x128xi32>
    %157 = arith.andi %154, %156 : vector<8x128xi1>
    %cst_46 = arith.constant 1.000000e+00 : f32
    %158 = vector.broadcast %cst_46 : f32 to vector<8x128xf32>
    %159 = arith.select %157, %158, %149 : vector<8x128xi1>, vector<8x128xf32>
    %c4_i32_47 = arith.constant 4 : i32
    %160 = arith.addi %118, %c4_i32_47 : i32
    %161 = arith.index_cast %160 : i32 to index
    %162 = memref.load %arg1[%161] : memref<64xi32, #tpu.memory_space<smem>>
    %c4_i32_48 = arith.constant 4 : i32
    %163 = vector.broadcast %c4_i32_48 : i32 to vector<8x128xi32>
    %164 = arith.cmpi eq, %3, %163 : vector<8x128xi32>
    %165 = vector.broadcast %162 : i32 to vector<8x128xi32>
    %166 = arith.cmpi eq, %4, %165 : vector<8x128xi32>
    %167 = arith.andi %164, %166 : vector<8x128xi1>
    %cst_49 = arith.constant 1.000000e+00 : f32
    %168 = vector.broadcast %cst_49 : f32 to vector<8x128xf32>
    %169 = arith.select %167, %168, %159 : vector<8x128xi1>, vector<8x128xf32>
    %c5_i32_50 = arith.constant 5 : i32
    %170 = arith.addi %118, %c5_i32_50 : i32
    %171 = arith.index_cast %170 : i32 to index
    %172 = memref.load %arg1[%171] : memref<64xi32, #tpu.memory_space<smem>>
    %c5_i32_51 = arith.constant 5 : i32
    %173 = vector.broadcast %c5_i32_51 : i32 to vector<8x128xi32>
    %174 = arith.cmpi eq, %3, %173 : vector<8x128xi32>
    %175 = vector.broadcast %172 : i32 to vector<8x128xi32>
    %176 = arith.cmpi eq, %4, %175 : vector<8x128xi32>
    %177 = arith.andi %174, %176 : vector<8x128xi1>
    %cst_52 = arith.constant 1.000000e+00 : f32
    %178 = vector.broadcast %cst_52 : f32 to vector<8x128xf32>
    %179 = arith.select %177, %178, %169 : vector<8x128xi1>, vector<8x128xf32>
    %c6_i32_53 = arith.constant 6 : i32
    %180 = arith.addi %118, %c6_i32_53 : i32
    %181 = arith.index_cast %180 : i32 to index
    %182 = memref.load %arg1[%181] : memref<64xi32, #tpu.memory_space<smem>>
    %c6_i32_54 = arith.constant 6 : i32
    %183 = vector.broadcast %c6_i32_54 : i32 to vector<8x128xi32>
    %184 = arith.cmpi eq, %3, %183 : vector<8x128xi32>
    %185 = vector.broadcast %182 : i32 to vector<8x128xi32>
    %186 = arith.cmpi eq, %4, %185 : vector<8x128xi32>
    %187 = arith.andi %184, %186 : vector<8x128xi1>
    %cst_55 = arith.constant 1.000000e+00 : f32
    %188 = vector.broadcast %cst_55 : f32 to vector<8x128xf32>
    %189 = arith.select %187, %188, %179 : vector<8x128xi1>, vector<8x128xf32>
    %c7_i32_56 = arith.constant 7 : i32
    %190 = arith.addi %118, %c7_i32_56 : i32
    %191 = arith.index_cast %190 : i32 to index
    %192 = memref.load %arg1[%191] : memref<64xi32, #tpu.memory_space<smem>>
    %c7_i32_57 = arith.constant 7 : i32
    %193 = vector.broadcast %c7_i32_57 : i32 to vector<8x128xi32>
    %194 = arith.cmpi eq, %3, %193 : vector<8x128xi32>
    %195 = vector.broadcast %192 : i32 to vector<8x128xi32>
    %196 = arith.cmpi eq, %4, %195 : vector<8x128xi32>
    %197 = arith.andi %194, %196 : vector<8x128xi1>
    %cst_58 = arith.constant 1.000000e+00 : f32
    %198 = vector.broadcast %cst_58 : f32 to vector<8x128xf32>
    %199 = arith.select %197, %198, %189 : vector<8x128xi1>, vector<8x128xf32>
    %c0_59 = arith.constant 0 : index
    %c0_60 = arith.constant 0 : index
    %200 = vector.load %arg2[%c0_59, %c0_60] : memref<128x512xf32, #tpu.memory_space<vmem>>, vector<128x512xf32>
    %cst_61 = arith.constant dense<0.000000e+00> : vector<8x512xf32>
    %201 = tpu.matmul %199, %200, %cst_61 {dimension_numbers = #tpu.dot_dimension_numbers<[1], [0], [0], [1], [0, 0, 1, 1], [], []>} : vector<8x128xf32>, vector<128x512xf32>, vector<8x512xf32> -> vector<8x512xf32>
    %202 = arith.truncf %114 : vector<8x128xf32> to vector<8x128xbf16>
    %c0_62 = arith.constant 0 : index
    %c0_63 = arith.constant 0 : index
    %203 = vector.load %arg3[%c0_62, %c0_63] : memref<128x512xbf16, #tpu.memory_space<vmem>>, vector<128x512xbf16>
    %cst_64 = arith.constant dense<0.000000e+00> : vector<8x512xf32>
    %204 = tpu.matmul %202, %203, %cst_64 {dimension_numbers = #tpu.dot_dimension_numbers<[1], [0], [0], [1], [0, 0, 1, 1], [], []>} : vector<8x128xbf16>, vector<128x512xbf16>, vector<8x512xf32> -> vector<8x512xf32>
    %205 = arith.addf %201, %204 : vector<8x512xf32>
    %206 = vector.extract_strided_slice %205 {offsets = [0, 0], sizes = [8, 384], strides = [1, 1]} : vector<8x512xf32> to vector<8x384xf32>
    %207 = arith.negf %206 : vector<8x384xf32>
    %208 = math.exp %207 : vector<8x384xf32>
    %cst_65 = arith.constant 1.000000e+00 : f32
    %209 = vector.broadcast %cst_65 : f32 to vector<8x384xf32>
    %210 = arith.addf %209, %208 : vector<8x384xf32>
    %211 = arith.divf %209, %210 : vector<8x384xf32>
    %212 = vector.extract_strided_slice %205 {offsets = [0, 384], sizes = [8, 128], strides = [1, 1]} : vector<8x512xf32> to vector<8x128xf32>
    %213 = math.tanh %212 : vector<8x128xf32>
    %214 = vector.extract_strided_slice %211 {offsets = [0, 0], sizes = [8, 128], strides = [1, 1]} : vector<8x384xf32> to vector<8x128xf32>
    %215 = vector.extract_strided_slice %211 {offsets = [0, 128], sizes = [8, 128], strides = [1, 1]} : vector<8x384xf32> to vector<8x128xf32>
    %216 = vector.extract_strided_slice %211 {offsets = [0, 256], sizes = [8, 128], strides = [1, 1]} : vector<8x384xf32> to vector<8x128xf32>
    %217 = arith.mulf %215, %115 : vector<8x128xf32>
    %218 = arith.mulf %214, %213 : vector<8x128xf32>
    %219 = arith.addf %217, %218 : vector<8x128xf32>
    %220 = math.tanh %219 : vector<8x128xf32>
    %221 = arith.mulf %216, %220 : vector<8x128xf32>
    %c8_i32_66 = arith.constant 8 : i32
    %222 = arith.cmpi slt, %117, %c8_i32_66 : i32
    %223 = arith.select %222, %221, %114 : vector<8x128xf32>
    %224 = arith.select %222, %219, %115 : vector<8x128xf32>
    %c2_i32_67 = arith.constant 2 : i32
    %c8_i32_68 = arith.constant 8 : i32
    %225 = arith.muli %arg0, %c8_i32_68 : i32
    %226 = arith.addi %225, %c2_i32_67 : i32
    %c8_i32_69 = arith.constant 8 : i32
    %227 = arith.muli %226, %c8_i32_69 : i32
    %cst_70 = arith.constant 0.000000e+00 : f32
    %228 = vector.broadcast %cst_70 : f32 to vector<8x128xf32>
    %c0_i32_71 = arith.constant 0 : i32
    %229 = arith.addi %227, %c0_i32_71 : i32
    %230 = arith.index_cast %229 : i32 to index
    %231 = memref.load %arg1[%230] : memref<64xi32, #tpu.memory_space<smem>>
    %c0_i32_72 = arith.constant 0 : i32
    %232 = vector.broadcast %c0_i32_72 : i32 to vector<8x128xi32>
    %233 = arith.cmpi eq, %3, %232 : vector<8x128xi32>
    %234 = vector.broadcast %231 : i32 to vector<8x128xi32>
    %235 = arith.cmpi eq, %4, %234 : vector<8x128xi32>
    %236 = arith.andi %233, %235 : vector<8x128xi1>
    %cst_73 = arith.constant 1.000000e+00 : f32
    %237 = vector.broadcast %cst_73 : f32 to vector<8x128xf32>
    %238 = arith.select %236, %237, %228 : vector<8x128xi1>, vector<8x128xf32>
    %c1_i32_74 = arith.constant 1 : i32
    %239 = arith.addi %227, %c1_i32_74 : i32
    %240 = arith.index_cast %239 : i32 to index
    %241 = memref.load %arg1[%240] : memref<64xi32, #tpu.memory_space<smem>>
    %c1_i32_75 = arith.constant 1 : i32
    %242 = vector.broadcast %c1_i32_75 : i32 to vector<8x128xi32>
    %243 = arith.cmpi eq, %3, %242 : vector<8x128xi32>
    %244 = vector.broadcast %241 : i32 to vector<8x128xi32>
    %245 = arith.cmpi eq, %4, %244 : vector<8x128xi32>
    %246 = arith.andi %243, %245 : vector<8x128xi1>
    %cst_76 = arith.constant 1.000000e+00 : f32
    %247 = vector.broadcast %cst_76 : f32 to vector<8x128xf32>
    %248 = arith.select %246, %247, %238 : vector<8x128xi1>, vector<8x128xf32>
    %c2_i32_77 = arith.constant 2 : i32
    %249 = arith.addi %227, %c2_i32_77 : i32
    %250 = arith.index_cast %249 : i32 to index
    %251 = memref.load %arg1[%250] : memref<64xi32, #tpu.memory_space<smem>>
    %c2_i32_78 = arith.constant 2 : i32
    %252 = vector.broadcast %c2_i32_78 : i32 to vector<8x128xi32>
    %253 = arith.cmpi eq, %3, %252 : vector<8x128xi32>
    %254 = vector.broadcast %251 : i32 to vector<8x128xi32>
    %255 = arith.cmpi eq, %4, %254 : vector<8x128xi32>
    %256 = arith.andi %253, %255 : vector<8x128xi1>
    %cst_79 = arith.constant 1.000000e+00 : f32
    %257 = vector.broadcast %cst_79 : f32 to vector<8x128xf32>
    %258 = arith.select %256, %257, %248 : vector<8x128xi1>, vector<8x128xf32>
    %c3_i32_80 = arith.constant 3 : i32
    %259 = arith.addi %227, %c3_i32_80 : i32
    %260 = arith.index_cast %259 : i32 to index
    %261 = memref.load %arg1[%260] : memref<64xi32, #tpu.memory_space<smem>>
    %c3_i32_81 = arith.constant 3 : i32
    %262 = vector.broadcast %c3_i32_81 : i32 to vector<8x128xi32>
    %263 = arith.cmpi eq, %3, %262 : vector<8x128xi32>
    %264 = vector.broadcast %261 : i32 to vector<8x128xi32>
    %265 = arith.cmpi eq, %4, %264 : vector<8x128xi32>
    %266 = arith.andi %263, %265 : vector<8x128xi1>
    %cst_82 = arith.constant 1.000000e+00 : f32
    %267 = vector.broadcast %cst_82 : f32 to vector<8x128xf32>
    %268 = arith.select %266, %267, %258 : vector<8x128xi1>, vector<8x128xf32>
    %c4_i32_83 = arith.constant 4 : i32
    %269 = arith.addi %227, %c4_i32_83 : i32
    %270 = arith.index_cast %269 : i32 to index
    %271 = memref.load %arg1[%270] : memref<64xi32, #tpu.memory_space<smem>>
    %c4_i32_84 = arith.constant 4 : i32
    %272 = vector.broadcast %c4_i32_84 : i32 to vector<8x128xi32>
    %273 = arith.cmpi eq, %3, %272 : vector<8x128xi32>
    %274 = vector.broadcast %271 : i32 to vector<8x128xi32>
    %275 = arith.cmpi eq, %4, %274 : vector<8x128xi32>
    %276 = arith.andi %273, %275 : vector<8x128xi1>
    %cst_85 = arith.constant 1.000000e+00 : f32
    %277 = vector.broadcast %cst_85 : f32 to vector<8x128xf32>
    %278 = arith.select %276, %277, %268 : vector<8x128xi1>, vector<8x128xf32>
    %c5_i32_86 = arith.constant 5 : i32
    %279 = arith.addi %227, %c5_i32_86 : i32
    %280 = arith.index_cast %279 : i32 to index
    %281 = memref.load %arg1[%280] : memref<64xi32, #tpu.memory_space<smem>>
    %c5_i32_87 = arith.constant 5 : i32
    %282 = vector.broadcast %c5_i32_87 : i32 to vector<8x128xi32>
    %283 = arith.cmpi eq, %3, %282 : vector<8x128xi32>
    %284 = vector.broadcast %281 : i32 to vector<8x128xi32>
    %285 = arith.cmpi eq, %4, %284 : vector<8x128xi32>
    %286 = arith.andi %283, %285 : vector<8x128xi1>
    %cst_88 = arith.constant 1.000000e+00 : f32
    %287 = vector.broadcast %cst_88 : f32 to vector<8x128xf32>
    %288 = arith.select %286, %287, %278 : vector<8x128xi1>, vector<8x128xf32>
    %c6_i32_89 = arith.constant 6 : i32
    %289 = arith.addi %227, %c6_i32_89 : i32
    %290 = arith.index_cast %289 : i32 to index
    %291 = memref.load %arg1[%290] : memref<64xi32, #tpu.memory_space<smem>>
    %c6_i32_90 = arith.constant 6 : i32
    %292 = vector.broadcast %c6_i32_90 : i32 to vector<8x128xi32>
    %293 = arith.cmpi eq, %3, %292 : vector<8x128xi32>
    %294 = vector.broadcast %291 : i32 to vector<8x128xi32>
    %295 = arith.cmpi eq, %4, %294 : vector<8x128xi32>
    %296 = arith.andi %293, %295 : vector<8x128xi1>
    %cst_91 = arith.constant 1.000000e+00 : f32
    %297 = vector.broadcast %cst_91 : f32 to vector<8x128xf32>
    %298 = arith.select %296, %297, %288 : vector<8x128xi1>, vector<8x128xf32>
    %c7_i32_92 = arith.constant 7 : i32
    %299 = arith.addi %227, %c7_i32_92 : i32
    %300 = arith.index_cast %299 : i32 to index
    %301 = memref.load %arg1[%300] : memref<64xi32, #tpu.memory_space<smem>>
    %c7_i32_93 = arith.constant 7 : i32
    %302 = vector.broadcast %c7_i32_93 : i32 to vector<8x128xi32>
    %303 = arith.cmpi eq, %3, %302 : vector<8x128xi32>
    %304 = vector.broadcast %301 : i32 to vector<8x128xi32>
    %305 = arith.cmpi eq, %4, %304 : vector<8x128xi32>
    %306 = arith.andi %303, %305 : vector<8x128xi1>
    %cst_94 = arith.constant 1.000000e+00 : f32
    %307 = vector.broadcast %cst_94 : f32 to vector<8x128xf32>
    %308 = arith.select %306, %307, %298 : vector<8x128xi1>, vector<8x128xf32>
    %c0_95 = arith.constant 0 : index
    %c0_96 = arith.constant 0 : index
    %309 = vector.load %arg2[%c0_95, %c0_96] : memref<128x512xf32, #tpu.memory_space<vmem>>, vector<128x512xf32>
    %cst_97 = arith.constant dense<0.000000e+00> : vector<8x512xf32>
    %310 = tpu.matmul %308, %309, %cst_97 {dimension_numbers = #tpu.dot_dimension_numbers<[1], [0], [0], [1], [0, 0, 1, 1], [], []>} : vector<8x128xf32>, vector<128x512xf32>, vector<8x512xf32> -> vector<8x512xf32>
    %311 = arith.truncf %223 : vector<8x128xf32> to vector<8x128xbf16>
    %c0_98 = arith.constant 0 : index
    %c0_99 = arith.constant 0 : index
    %312 = vector.load %arg3[%c0_98, %c0_99] : memref<128x512xbf16, #tpu.memory_space<vmem>>, vector<128x512xbf16>
    %cst_100 = arith.constant dense<0.000000e+00> : vector<8x512xf32>
    %313 = tpu.matmul %311, %312, %cst_100 {dimension_numbers = #tpu.dot_dimension_numbers<[1], [0], [0], [1], [0, 0, 1, 1], [], []>} : vector<8x128xbf16>, vector<128x512xbf16>, vector<8x512xf32> -> vector<8x512xf32>
    %314 = arith.addf %310, %313 : vector<8x512xf32>
    %315 = vector.extract_strided_slice %314 {offsets = [0, 0], sizes = [8, 384], strides = [1, 1]} : vector<8x512xf32> to vector<8x384xf32>
    %316 = arith.negf %315 : vector<8x384xf32>
    %317 = math.exp %316 : vector<8x384xf32>
    %cst_101 = arith.constant 1.000000e+00 : f32
    %318 = vector.broadcast %cst_101 : f32 to vector<8x384xf32>
    %319 = arith.addf %318, %317 : vector<8x384xf32>
    %320 = arith.divf %318, %319 : vector<8x384xf32>
    %321 = vector.extract_strided_slice %314 {offsets = [0, 384], sizes = [8, 128], strides = [1, 1]} : vector<8x512xf32> to vector<8x128xf32>
    %322 = math.tanh %321 : vector<8x128xf32>
    %323 = vector.extract_strided_slice %320 {offsets = [0, 0], sizes = [8, 128], strides = [1, 1]} : vector<8x384xf32> to vector<8x128xf32>
    %324 = vector.extract_strided_slice %320 {offsets = [0, 128], sizes = [8, 128], strides = [1, 1]} : vector<8x384xf32> to vector<8x128xf32>
    %325 = vector.extract_strided_slice %320 {offsets = [0, 256], sizes = [8, 128], strides = [1, 1]} : vector<8x384xf32> to vector<8x128xf32>
    %326 = arith.mulf %324, %224 : vector<8x128xf32>
    %327 = arith.mulf %323, %322 : vector<8x128xf32>
    %328 = arith.addf %326, %327 : vector<8x128xf32>
    %329 = math.tanh %328 : vector<8x128xf32>
    %330 = arith.mulf %325, %329 : vector<8x128xf32>
    %c8_i32_102 = arith.constant 8 : i32
    %331 = arith.cmpi slt, %226, %c8_i32_102 : i32
    %332 = arith.select %331, %330, %223 : vector<8x128xf32>
    %333 = arith.select %331, %328, %224 : vector<8x128xf32>
    %c3_i32_103 = arith.constant 3 : i32
    %c8_i32_104 = arith.constant 8 : i32
    %334 = arith.muli %arg0, %c8_i32_104 : i32
    %335 = arith.addi %334, %c3_i32_103 : i32
    %c8_i32_105 = arith.constant 8 : i32
    %336 = arith.muli %335, %c8_i32_105 : i32
    %cst_106 = arith.constant 0.000000e+00 : f32
    %337 = vector.broadcast %cst_106 : f32 to vector<8x128xf32>
    %c0_i32_107 = arith.constant 0 : i32
    %338 = arith.addi %336, %c0_i32_107 : i32
    %339 = arith.index_cast %338 : i32 to index
    %340 = memref.load %arg1[%339] : memref<64xi32, #tpu.memory_space<smem>>
    %c0_i32_108 = arith.constant 0 : i32
    %341 = vector.broadcast %c0_i32_108 : i32 to vector<8x128xi32>
    %342 = arith.cmpi eq, %3, %341 : vector<8x128xi32>
    %343 = vector.broadcast %340 : i32 to vector<8x128xi32>
    %344 = arith.cmpi eq, %4, %343 : vector<8x128xi32>
    %345 = arith.andi %342, %344 : vector<8x128xi1>
    %cst_109 = arith.constant 1.000000e+00 : f32
    %346 = vector.broadcast %cst_109 : f32 to vector<8x128xf32>
    %347 = arith.select %345, %346, %337 : vector<8x128xi1>, vector<8x128xf32>
    %c1_i32_110 = arith.constant 1 : i32
    %348 = arith.addi %336, %c1_i32_110 : i32
    %349 = arith.index_cast %348 : i32 to index
    %350 = memref.load %arg1[%349] : memref<64xi32, #tpu.memory_space<smem>>
    %c1_i32_111 = arith.constant 1 : i32
    %351 = vector.broadcast %c1_i32_111 : i32 to vector<8x128xi32>
    %352 = arith.cmpi eq, %3, %351 : vector<8x128xi32>
    %353 = vector.broadcast %350 : i32 to vector<8x128xi32>
    %354 = arith.cmpi eq, %4, %353 : vector<8x128xi32>
    %355 = arith.andi %352, %354 : vector<8x128xi1>
    %cst_112 = arith.constant 1.000000e+00 : f32
    %356 = vector.broadcast %cst_112 : f32 to vector<8x128xf32>
    %357 = arith.select %355, %356, %347 : vector<8x128xi1>, vector<8x128xf32>
    %c2_i32_113 = arith.constant 2 : i32
    %358 = arith.addi %336, %c2_i32_113 : i32
    %359 = arith.index_cast %358 : i32 to index
    %360 = memref.load %arg1[%359] : memref<64xi32, #tpu.memory_space<smem>>
    %c2_i32_114 = arith.constant 2 : i32
    %361 = vector.broadcast %c2_i32_114 : i32 to vector<8x128xi32>
    %362 = arith.cmpi eq, %3, %361 : vector<8x128xi32>
    %363 = vector.broadcast %360 : i32 to vector<8x128xi32>
    %364 = arith.cmpi eq, %4, %363 : vector<8x128xi32>
    %365 = arith.andi %362, %364 : vector<8x128xi1>
    %cst_115 = arith.constant 1.000000e+00 : f32
    %366 = vector.broadcast %cst_115 : f32 to vector<8x128xf32>
    %367 = arith.select %365, %366, %357 : vector<8x128xi1>, vector<8x128xf32>
    %c3_i32_116 = arith.constant 3 : i32
    %368 = arith.addi %336, %c3_i32_116 : i32
    %369 = arith.index_cast %368 : i32 to index
    %370 = memref.load %arg1[%369] : memref<64xi32, #tpu.memory_space<smem>>
    %c3_i32_117 = arith.constant 3 : i32
    %371 = vector.broadcast %c3_i32_117 : i32 to vector<8x128xi32>
    %372 = arith.cmpi eq, %3, %371 : vector<8x128xi32>
    %373 = vector.broadcast %370 : i32 to vector<8x128xi32>
    %374 = arith.cmpi eq, %4, %373 : vector<8x128xi32>
    %375 = arith.andi %372, %374 : vector<8x128xi1>
    %cst_118 = arith.constant 1.000000e+00 : f32
    %376 = vector.broadcast %cst_118 : f32 to vector<8x128xf32>
    %377 = arith.select %375, %376, %367 : vector<8x128xi1>, vector<8x128xf32>
    %c4_i32_119 = arith.constant 4 : i32
    %378 = arith.addi %336, %c4_i32_119 : i32
    %379 = arith.index_cast %378 : i32 to index
    %380 = memref.load %arg1[%379] : memref<64xi32, #tpu.memory_space<smem>>
    %c4_i32_120 = arith.constant 4 : i32
    %381 = vector.broadcast %c4_i32_120 : i32 to vector<8x128xi32>
    %382 = arith.cmpi eq, %3, %381 : vector<8x128xi32>
    %383 = vector.broadcast %380 : i32 to vector<8x128xi32>
    %384 = arith.cmpi eq, %4, %383 : vector<8x128xi32>
    %385 = arith.andi %382, %384 : vector<8x128xi1>
    %cst_121 = arith.constant 1.000000e+00 : f32
    %386 = vector.broadcast %cst_121 : f32 to vector<8x128xf32>
    %387 = arith.select %385, %386, %377 : vector<8x128xi1>, vector<8x128xf32>
    %c5_i32_122 = arith.constant 5 : i32
    %388 = arith.addi %336, %c5_i32_122 : i32
    %389 = arith.index_cast %388 : i32 to index
    %390 = memref.load %arg1[%389] : memref<64xi32, #tpu.memory_space<smem>>
    %c5_i32_123 = arith.constant 5 : i32
    %391 = vector.broadcast %c5_i32_123 : i32 to vector<8x128xi32>
    %392 = arith.cmpi eq, %3, %391 : vector<8x128xi32>
    %393 = vector.broadcast %390 : i32 to vector<8x128xi32>
    %394 = arith.cmpi eq, %4, %393 : vector<8x128xi32>
    %395 = arith.andi %392, %394 : vector<8x128xi1>
    %cst_124 = arith.constant 1.000000e+00 : f32
    %396 = vector.broadcast %cst_124 : f32 to vector<8x128xf32>
    %397 = arith.select %395, %396, %387 : vector<8x128xi1>, vector<8x128xf32>
    %c6_i32_125 = arith.constant 6 : i32
    %398 = arith.addi %336, %c6_i32_125 : i32
    %399 = arith.index_cast %398 : i32 to index
    %400 = memref.load %arg1[%399] : memref<64xi32, #tpu.memory_space<smem>>
    %c6_i32_126 = arith.constant 6 : i32
    %401 = vector.broadcast %c6_i32_126 : i32 to vector<8x128xi32>
    %402 = arith.cmpi eq, %3, %401 : vector<8x128xi32>
    %403 = vector.broadcast %400 : i32 to vector<8x128xi32>
    %404 = arith.cmpi eq, %4, %403 : vector<8x128xi32>
    %405 = arith.andi %402, %404 : vector<8x128xi1>
    %cst_127 = arith.constant 1.000000e+00 : f32
    %406 = vector.broadcast %cst_127 : f32 to vector<8x128xf32>
    %407 = arith.select %405, %406, %397 : vector<8x128xi1>, vector<8x128xf32>
    %c7_i32_128 = arith.constant 7 : i32
    %408 = arith.addi %336, %c7_i32_128 : i32
    %409 = arith.index_cast %408 : i32 to index
    %410 = memref.load %arg1[%409] : memref<64xi32, #tpu.memory_space<smem>>
    %c7_i32_129 = arith.constant 7 : i32
    %411 = vector.broadcast %c7_i32_129 : i32 to vector<8x128xi32>
    %412 = arith.cmpi eq, %3, %411 : vector<8x128xi32>
    %413 = vector.broadcast %410 : i32 to vector<8x128xi32>
    %414 = arith.cmpi eq, %4, %413 : vector<8x128xi32>
    %415 = arith.andi %412, %414 : vector<8x128xi1>
    %cst_130 = arith.constant 1.000000e+00 : f32
    %416 = vector.broadcast %cst_130 : f32 to vector<8x128xf32>
    %417 = arith.select %415, %416, %407 : vector<8x128xi1>, vector<8x128xf32>
    %c0_131 = arith.constant 0 : index
    %c0_132 = arith.constant 0 : index
    %418 = vector.load %arg2[%c0_131, %c0_132] : memref<128x512xf32, #tpu.memory_space<vmem>>, vector<128x512xf32>
    %cst_133 = arith.constant dense<0.000000e+00> : vector<8x512xf32>
    %419 = tpu.matmul %417, %418, %cst_133 {dimension_numbers = #tpu.dot_dimension_numbers<[1], [0], [0], [1], [0, 0, 1, 1], [], []>} : vector<8x128xf32>, vector<128x512xf32>, vector<8x512xf32> -> vector<8x512xf32>
    %420 = arith.truncf %332 : vector<8x128xf32> to vector<8x128xbf16>
    %c0_134 = arith.constant 0 : index
    %c0_135 = arith.constant 0 : index
    %421 = vector.load %arg3[%c0_134, %c0_135] : memref<128x512xbf16, #tpu.memory_space<vmem>>, vector<128x512xbf16>
    %cst_136 = arith.constant dense<0.000000e+00> : vector<8x512xf32>
    %422 = tpu.matmul %420, %421, %cst_136 {dimension_numbers = #tpu.dot_dimension_numbers<[1], [0], [0], [1], [0, 0, 1, 1], [], []>} : vector<8x128xbf16>, vector<128x512xbf16>, vector<8x512xf32> -> vector<8x512xf32>
    %423 = arith.addf %419, %422 : vector<8x512xf32>
    %424 = vector.extract_strided_slice %423 {offsets = [0, 0], sizes = [8, 384], strides = [1, 1]} : vector<8x512xf32> to vector<8x384xf32>
    %425 = arith.negf %424 : vector<8x384xf32>
    %426 = math.exp %425 : vector<8x384xf32>
    %cst_137 = arith.constant 1.000000e+00 : f32
    %427 = vector.broadcast %cst_137 : f32 to vector<8x384xf32>
    %428 = arith.addf %427, %426 : vector<8x384xf32>
    %429 = arith.divf %427, %428 : vector<8x384xf32>
    %430 = vector.extract_strided_slice %423 {offsets = [0, 384], sizes = [8, 128], strides = [1, 1]} : vector<8x512xf32> to vector<8x128xf32>
    %431 = math.tanh %430 : vector<8x128xf32>
    %432 = vector.extract_strided_slice %429 {offsets = [0, 0], sizes = [8, 128], strides = [1, 1]} : vector<8x384xf32> to vector<8x128xf32>
    %433 = vector.extract_strided_slice %429 {offsets = [0, 128], sizes = [8, 128], strides = [1, 1]} : vector<8x384xf32> to vector<8x128xf32>
    %434 = vector.extract_strided_slice %429 {offsets = [0, 256], sizes = [8, 128], strides = [1, 1]} : vector<8x384xf32> to vector<8x128xf32>
    %435 = arith.mulf %433, %333 : vector<8x128xf32>
    %436 = arith.mulf %432, %431 : vector<8x128xf32>
    %437 = arith.addf %435, %436 : vector<8x128xf32>
    %438 = math.tanh %437 : vector<8x128xf32>
    %439 = arith.mulf %434, %438 : vector<8x128xf32>
    %c8_i32_138 = arith.constant 8 : i32
    %440 = arith.cmpi slt, %335, %c8_i32_138 : i32
    %441 = arith.select %440, %439, %332 : vector<8x128xf32>
    %442 = arith.select %440, %437, %333 : vector<8x128xf32>
    %c4_i32_139 = arith.constant 4 : i32
    %c8_i32_140 = arith.constant 8 : i32
    %443 = arith.muli %arg0, %c8_i32_140 : i32
    %444 = arith.addi %443, %c4_i32_139 : i32
    %c8_i32_141 = arith.constant 8 : i32
    %445 = arith.muli %444, %c8_i32_141 : i32
    %cst_142 = arith.constant 0.000000e+00 : f32
    %446 = vector.broadcast %cst_142 : f32 to vector<8x128xf32>
    %c0_i32_143 = arith.constant 0 : i32
    %447 = arith.addi %445, %c0_i32_143 : i32
    %448 = arith.index_cast %447 : i32 to index
    %449 = memref.load %arg1[%448] : memref<64xi32, #tpu.memory_space<smem>>
    %c0_i32_144 = arith.constant 0 : i32
    %450 = vector.broadcast %c0_i32_144 : i32 to vector<8x128xi32>
    %451 = arith.cmpi eq, %3, %450 : vector<8x128xi32>
    %452 = vector.broadcast %449 : i32 to vector<8x128xi32>
    %453 = arith.cmpi eq, %4, %452 : vector<8x128xi32>
    %454 = arith.andi %451, %453 : vector<8x128xi1>
    %cst_145 = arith.constant 1.000000e+00 : f32
    %455 = vector.broadcast %cst_145 : f32 to vector<8x128xf32>
    %456 = arith.select %454, %455, %446 : vector<8x128xi1>, vector<8x128xf32>
    %c1_i32_146 = arith.constant 1 : i32
    %457 = arith.addi %445, %c1_i32_146 : i32
    %458 = arith.index_cast %457 : i32 to index
    %459 = memref.load %arg1[%458] : memref<64xi32, #tpu.memory_space<smem>>
    %c1_i32_147 = arith.constant 1 : i32
    %460 = vector.broadcast %c1_i32_147 : i32 to vector<8x128xi32>
    %461 = arith.cmpi eq, %3, %460 : vector<8x128xi32>
    %462 = vector.broadcast %459 : i32 to vector<8x128xi32>
    %463 = arith.cmpi eq, %4, %462 : vector<8x128xi32>
    %464 = arith.andi %461, %463 : vector<8x128xi1>
    %cst_148 = arith.constant 1.000000e+00 : f32
    %465 = vector.broadcast %cst_148 : f32 to vector<8x128xf32>
    %466 = arith.select %464, %465, %456 : vector<8x128xi1>, vector<8x128xf32>
    %c2_i32_149 = arith.constant 2 : i32
    %467 = arith.addi %445, %c2_i32_149 : i32
    %468 = arith.index_cast %467 : i32 to index
    %469 = memref.load %arg1[%468] : memref<64xi32, #tpu.memory_space<smem>>
    %c2_i32_150 = arith.constant 2 : i32
    %470 = vector.broadcast %c2_i32_150 : i32 to vector<8x128xi32>
    %471 = arith.cmpi eq, %3, %470 : vector<8x128xi32>
    %472 = vector.broadcast %469 : i32 to vector<8x128xi32>
    %473 = arith.cmpi eq, %4, %472 : vector<8x128xi32>
    %474 = arith.andi %471, %473 : vector<8x128xi1>
    %cst_151 = arith.constant 1.000000e+00 : f32
    %475 = vector.broadcast %cst_151 : f32 to vector<8x128xf32>
    %476 = arith.select %474, %475, %466 : vector<8x128xi1>, vector<8x128xf32>
    %c3_i32_152 = arith.constant 3 : i32
    %477 = arith.addi %445, %c3_i32_152 : i32
    %478 = arith.index_cast %477 : i32 to index
    %479 = memref.load %arg1[%478] : memref<64xi32, #tpu.memory_space<smem>>
    %c3_i32_153 = arith.constant 3 : i32
    %480 = vector.broadcast %c3_i32_153 : i32 to vector<8x128xi32>
    %481 = arith.cmpi eq, %3, %480 : vector<8x128xi32>
    %482 = vector.broadcast %479 : i32 to vector<8x128xi32>
    %483 = arith.cmpi eq, %4, %482 : vector<8x128xi32>
    %484 = arith.andi %481, %483 : vector<8x128xi1>
    %cst_154 = arith.constant 1.000000e+00 : f32
    %485 = vector.broadcast %cst_154 : f32 to vector<8x128xf32>
    %486 = arith.select %484, %485, %476 : vector<8x128xi1>, vector<8x128xf32>
    %c4_i32_155 = arith.constant 4 : i32
    %487 = arith.addi %445, %c4_i32_155 : i32
    %488 = arith.index_cast %487 : i32 to index
    %489 = memref.load %arg1[%488] : memref<64xi32, #tpu.memory_space<smem>>
    %c4_i32_156 = arith.constant 4 : i32
    %490 = vector.broadcast %c4_i32_156 : i32 to vector<8x128xi32>
    %491 = arith.cmpi eq, %3, %490 : vector<8x128xi32>
    %492 = vector.broadcast %489 : i32 to vector<8x128xi32>
    %493 = arith.cmpi eq, %4, %492 : vector<8x128xi32>
    %494 = arith.andi %491, %493 : vector<8x128xi1>
    %cst_157 = arith.constant 1.000000e+00 : f32
    %495 = vector.broadcast %cst_157 : f32 to vector<8x128xf32>
    %496 = arith.select %494, %495, %486 : vector<8x128xi1>, vector<8x128xf32>
    %c5_i32_158 = arith.constant 5 : i32
    %497 = arith.addi %445, %c5_i32_158 : i32
    %498 = arith.index_cast %497 : i32 to index
    %499 = memref.load %arg1[%498] : memref<64xi32, #tpu.memory_space<smem>>
    %c5_i32_159 = arith.constant 5 : i32
    %500 = vector.broadcast %c5_i32_159 : i32 to vector<8x128xi32>
    %501 = arith.cmpi eq, %3, %500 : vector<8x128xi32>
    %502 = vector.broadcast %499 : i32 to vector<8x128xi32>
    %503 = arith.cmpi eq, %4, %502 : vector<8x128xi32>
    %504 = arith.andi %501, %503 : vector<8x128xi1>
    %cst_160 = arith.constant 1.000000e+00 : f32
    %505 = vector.broadcast %cst_160 : f32 to vector<8x128xf32>
    %506 = arith.select %504, %505, %496 : vector<8x128xi1>, vector<8x128xf32>
    %c6_i32_161 = arith.constant 6 : i32
    %507 = arith.addi %445, %c6_i32_161 : i32
    %508 = arith.index_cast %507 : i32 to index
    %509 = memref.load %arg1[%508] : memref<64xi32, #tpu.memory_space<smem>>
    %c6_i32_162 = arith.constant 6 : i32
    %510 = vector.broadcast %c6_i32_162 : i32 to vector<8x128xi32>
    %511 = arith.cmpi eq, %3, %510 : vector<8x128xi32>
    %512 = vector.broadcast %509 : i32 to vector<8x128xi32>
    %513 = arith.cmpi eq, %4, %512 : vector<8x128xi32>
    %514 = arith.andi %511, %513 : vector<8x128xi1>
    %cst_163 = arith.constant 1.000000e+00 : f32
    %515 = vector.broadcast %cst_163 : f32 to vector<8x128xf32>
    %516 = arith.select %514, %515, %506 : vector<8x128xi1>, vector<8x128xf32>
    %c7_i32_164 = arith.constant 7 : i32
    %517 = arith.addi %445, %c7_i32_164 : i32
    %518 = arith.index_cast %517 : i32 to index
    %519 = memref.load %arg1[%518] : memref<64xi32, #tpu.memory_space<smem>>
    %c7_i32_165 = arith.constant 7 : i32
    %520 = vector.broadcast %c7_i32_165 : i32 to vector<8x128xi32>
    %521 = arith.cmpi eq, %3, %520 : vector<8x128xi32>
    %522 = vector.broadcast %519 : i32 to vector<8x128xi32>
    %523 = arith.cmpi eq, %4, %522 : vector<8x128xi32>
    %524 = arith.andi %521, %523 : vector<8x128xi1>
    %cst_166 = arith.constant 1.000000e+00 : f32
    %525 = vector.broadcast %cst_166 : f32 to vector<8x128xf32>
    %526 = arith.select %524, %525, %516 : vector<8x128xi1>, vector<8x128xf32>
    %c0_167 = arith.constant 0 : index
    %c0_168 = arith.constant 0 : index
    %527 = vector.load %arg2[%c0_167, %c0_168] : memref<128x512xf32, #tpu.memory_space<vmem>>, vector<128x512xf32>
    %cst_169 = arith.constant dense<0.000000e+00> : vector<8x512xf32>
    %528 = tpu.matmul %526, %527, %cst_169 {dimension_numbers = #tpu.dot_dimension_numbers<[1], [0], [0], [1], [0, 0, 1, 1], [], []>} : vector<8x128xf32>, vector<128x512xf32>, vector<8x512xf32> -> vector<8x512xf32>
    %529 = arith.truncf %441 : vector<8x128xf32> to vector<8x128xbf16>
    %c0_170 = arith.constant 0 : index
    %c0_171 = arith.constant 0 : index
    %530 = vector.load %arg3[%c0_170, %c0_171] : memref<128x512xbf16, #tpu.memory_space<vmem>>, vector<128x512xbf16>
    %cst_172 = arith.constant dense<0.000000e+00> : vector<8x512xf32>
    %531 = tpu.matmul %529, %530, %cst_172 {dimension_numbers = #tpu.dot_dimension_numbers<[1], [0], [0], [1], [0, 0, 1, 1], [], []>} : vector<8x128xbf16>, vector<128x512xbf16>, vector<8x512xf32> -> vector<8x512xf32>
    %532 = arith.addf %528, %531 : vector<8x512xf32>
    %533 = vector.extract_strided_slice %532 {offsets = [0, 0], sizes = [8, 384], strides = [1, 1]} : vector<8x512xf32> to vector<8x384xf32>
    %534 = arith.negf %533 : vector<8x384xf32>
    %535 = math.exp %534 : vector<8x384xf32>
    %cst_173 = arith.constant 1.000000e+00 : f32
    %536 = vector.broadcast %cst_173 : f32 to vector<8x384xf32>
    %537 = arith.addf %536, %535 : vector<8x384xf32>
    %538 = arith.divf %536, %537 : vector<8x384xf32>
    %539 = vector.extract_strided_slice %532 {offsets = [0, 384], sizes = [8, 128], strides = [1, 1]} : vector<8x512xf32> to vector<8x128xf32>
    %540 = math.tanh %539 : vector<8x128xf32>
    %541 = vector.extract_strided_slice %538 {offsets = [0, 0], sizes = [8, 128], strides = [1, 1]} : vector<8x384xf32> to vector<8x128xf32>
    %542 = vector.extract_strided_slice %538 {offsets = [0, 128], sizes = [8, 128], strides = [1, 1]} : vector<8x384xf32> to vector<8x128xf32>
    %543 = vector.extract_strided_slice %538 {offsets = [0, 256], sizes = [8, 128], strides = [1, 1]} : vector<8x384xf32> to vector<8x128xf32>
    %544 = arith.mulf %542, %442 : vector<8x128xf32>
    %545 = arith.mulf %541, %540 : vector<8x128xf32>
    %546 = arith.addf %544, %545 : vector<8x128xf32>
    %547 = math.tanh %546 : vector<8x128xf32>
    %548 = arith.mulf %543, %547 : vector<8x128xf32>
    %c8_i32_174 = arith.constant 8 : i32
    %549 = arith.cmpi slt, %444, %c8_i32_174 : i32
    %550 = arith.select %549, %548, %441 : vector<8x128xf32>
    %551 = arith.select %549, %546, %442 : vector<8x128xf32>
    %c5_i32_175 = arith.constant 5 : i32
    %c8_i32_176 = arith.constant 8 : i32
    %552 = arith.muli %arg0, %c8_i32_176 : i32
    %553 = arith.addi %552, %c5_i32_175 : i32
    %c8_i32_177 = arith.constant 8 : i32
    %554 = arith.muli %553, %c8_i32_177 : i32
    %cst_178 = arith.constant 0.000000e+00 : f32
    %555 = vector.broadcast %cst_178 : f32 to vector<8x128xf32>
    %c0_i32_179 = arith.constant 0 : i32
    %556 = arith.addi %554, %c0_i32_179 : i32
    %557 = arith.index_cast %556 : i32 to index
    %558 = memref.load %arg1[%557] : memref<64xi32, #tpu.memory_space<smem>>
    %c0_i32_180 = arith.constant 0 : i32
    %559 = vector.broadcast %c0_i32_180 : i32 to vector<8x128xi32>
    %560 = arith.cmpi eq, %3, %559 : vector<8x128xi32>
    %561 = vector.broadcast %558 : i32 to vector<8x128xi32>
    %562 = arith.cmpi eq, %4, %561 : vector<8x128xi32>
    %563 = arith.andi %560, %562 : vector<8x128xi1>
    %cst_181 = arith.constant 1.000000e+00 : f32
    %564 = vector.broadcast %cst_181 : f32 to vector<8x128xf32>
    %565 = arith.select %563, %564, %555 : vector<8x128xi1>, vector<8x128xf32>
    %c1_i32_182 = arith.constant 1 : i32
    %566 = arith.addi %554, %c1_i32_182 : i32
    %567 = arith.index_cast %566 : i32 to index
    %568 = memref.load %arg1[%567] : memref<64xi32, #tpu.memory_space<smem>>
    %c1_i32_183 = arith.constant 1 : i32
    %569 = vector.broadcast %c1_i32_183 : i32 to vector<8x128xi32>
    %570 = arith.cmpi eq, %3, %569 : vector<8x128xi32>
    %571 = vector.broadcast %568 : i32 to vector<8x128xi32>
    %572 = arith.cmpi eq, %4, %571 : vector<8x128xi32>
    %573 = arith.andi %570, %572 : vector<8x128xi1>
    %cst_184 = arith.constant 1.000000e+00 : f32
    %574 = vector.broadcast %cst_184 : f32 to vector<8x128xf32>
    %575 = arith.select %573, %574, %565 : vector<8x128xi1>, vector<8x128xf32>
    %c2_i32_185 = arith.constant 2 : i32
    %576 = arith.addi %554, %c2_i32_185 : i32
    %577 = arith.index_cast %576 : i32 to index
    %578 = memref.load %arg1[%577] : memref<64xi32, #tpu.memory_space<smem>>
    %c2_i32_186 = arith.constant 2 : i32
    %579 = vector.broadcast %c2_i32_186 : i32 to vector<8x128xi32>
    %580 = arith.cmpi eq, %3, %579 : vector<8x128xi32>
    %581 = vector.broadcast %578 : i32 to vector<8x128xi32>
    %582 = arith.cmpi eq, %4, %581 : vector<8x128xi32>
    %583 = arith.andi %580, %582 : vector<8x128xi1>
    %cst_187 = arith.constant 1.000000e+00 : f32
    %584 = vector.broadcast %cst_187 : f32 to vector<8x128xf32>
    %585 = arith.select %583, %584, %575 : vector<8x128xi1>, vector<8x128xf32>
    %c3_i32_188 = arith.constant 3 : i32
    %586 = arith.addi %554, %c3_i32_188 : i32
    %587 = arith.index_cast %586 : i32 to index
    %588 = memref.load %arg1[%587] : memref<64xi32, #tpu.memory_space<smem>>
    %c3_i32_189 = arith.constant 3 : i32
    %589 = vector.broadcast %c3_i32_189 : i32 to vector<8x128xi32>
    %590 = arith.cmpi eq, %3, %589 : vector<8x128xi32>
    %591 = vector.broadcast %588 : i32 to vector<8x128xi32>
    %592 = arith.cmpi eq, %4, %591 : vector<8x128xi32>
    %593 = arith.andi %590, %592 : vector<8x128xi1>
    %cst_190 = arith.constant 1.000000e+00 : f32
    %594 = vector.broadcast %cst_190 : f32 to vector<8x128xf32>
    %595 = arith.select %593, %594, %585 : vector<8x128xi1>, vector<8x128xf32>
    %c4_i32_191 = arith.constant 4 : i32
    %596 = arith.addi %554, %c4_i32_191 : i32
    %597 = arith.index_cast %596 : i32 to index
    %598 = memref.load %arg1[%597] : memref<64xi32, #tpu.memory_space<smem>>
    %c4_i32_192 = arith.constant 4 : i32
    %599 = vector.broadcast %c4_i32_192 : i32 to vector<8x128xi32>
    %600 = arith.cmpi eq, %3, %599 : vector<8x128xi32>
    %601 = vector.broadcast %598 : i32 to vector<8x128xi32>
    %602 = arith.cmpi eq, %4, %601 : vector<8x128xi32>
    %603 = arith.andi %600, %602 : vector<8x128xi1>
    %cst_193 = arith.constant 1.000000e+00 : f32
    %604 = vector.broadcast %cst_193 : f32 to vector<8x128xf32>
    %605 = arith.select %603, %604, %595 : vector<8x128xi1>, vector<8x128xf32>
    %c5_i32_194 = arith.constant 5 : i32
    %606 = arith.addi %554, %c5_i32_194 : i32
    %607 = arith.index_cast %606 : i32 to index
    %608 = memref.load %arg1[%607] : memref<64xi32, #tpu.memory_space<smem>>
    %c5_i32_195 = arith.constant 5 : i32
    %609 = vector.broadcast %c5_i32_195 : i32 to vector<8x128xi32>
    %610 = arith.cmpi eq, %3, %609 : vector<8x128xi32>
    %611 = vector.broadcast %608 : i32 to vector<8x128xi32>
    %612 = arith.cmpi eq, %4, %611 : vector<8x128xi32>
    %613 = arith.andi %610, %612 : vector<8x128xi1>
    %cst_196 = arith.constant 1.000000e+00 : f32
    %614 = vector.broadcast %cst_196 : f32 to vector<8x128xf32>
    %615 = arith.select %613, %614, %605 : vector<8x128xi1>, vector<8x128xf32>
    %c6_i32_197 = arith.constant 6 : i32
    %616 = arith.addi %554, %c6_i32_197 : i32
    %617 = arith.index_cast %616 : i32 to index
    %618 = memref.load %arg1[%617] : memref<64xi32, #tpu.memory_space<smem>>
    %c6_i32_198 = arith.constant 6 : i32
    %619 = vector.broadcast %c6_i32_198 : i32 to vector<8x128xi32>
    %620 = arith.cmpi eq, %3, %619 : vector<8x128xi32>
    %621 = vector.broadcast %618 : i32 to vector<8x128xi32>
    %622 = arith.cmpi eq, %4, %621 : vector<8x128xi32>
    %623 = arith.andi %620, %622 : vector<8x128xi1>
    %cst_199 = arith.constant 1.000000e+00 : f32
    %624 = vector.broadcast %cst_199 : f32 to vector<8x128xf32>
    %625 = arith.select %623, %624, %615 : vector<8x128xi1>, vector<8x128xf32>
    %c7_i32_200 = arith.constant 7 : i32
    %626 = arith.addi %554, %c7_i32_200 : i32
    %627 = arith.index_cast %626 : i32 to index
    %628 = memref.load %arg1[%627] : memref<64xi32, #tpu.memory_space<smem>>
    %c7_i32_201 = arith.constant 7 : i32
    %629 = vector.broadcast %c7_i32_201 : i32 to vector<8x128xi32>
    %630 = arith.cmpi eq, %3, %629 : vector<8x128xi32>
    %631 = vector.broadcast %628 : i32 to vector<8x128xi32>
    %632 = arith.cmpi eq, %4, %631 : vector<8x128xi32>
    %633 = arith.andi %630, %632 : vector<8x128xi1>
    %cst_202 = arith.constant 1.000000e+00 : f32
    %634 = vector.broadcast %cst_202 : f32 to vector<8x128xf32>
    %635 = arith.select %633, %634, %625 : vector<8x128xi1>, vector<8x128xf32>
    %c0_203 = arith.constant 0 : index
    %c0_204 = arith.constant 0 : index
    %636 = vector.load %arg2[%c0_203, %c0_204] : memref<128x512xf32, #tpu.memory_space<vmem>>, vector<128x512xf32>
    %cst_205 = arith.constant dense<0.000000e+00> : vector<8x512xf32>
    %637 = tpu.matmul %635, %636, %cst_205 {dimension_numbers = #tpu.dot_dimension_numbers<[1], [0], [0], [1], [0, 0, 1, 1], [], []>} : vector<8x128xf32>, vector<128x512xf32>, vector<8x512xf32> -> vector<8x512xf32>
    %638 = arith.truncf %550 : vector<8x128xf32> to vector<8x128xbf16>
    %c0_206 = arith.constant 0 : index
    %c0_207 = arith.constant 0 : index
    %639 = vector.load %arg3[%c0_206, %c0_207] : memref<128x512xbf16, #tpu.memory_space<vmem>>, vector<128x512xbf16>
    %cst_208 = arith.constant dense<0.000000e+00> : vector<8x512xf32>
    %640 = tpu.matmul %638, %639, %cst_208 {dimension_numbers = #tpu.dot_dimension_numbers<[1], [0], [0], [1], [0, 0, 1, 1], [], []>} : vector<8x128xbf16>, vector<128x512xbf16>, vector<8x512xf32> -> vector<8x512xf32>
    %641 = arith.addf %637, %640 : vector<8x512xf32>
    %642 = vector.extract_strided_slice %641 {offsets = [0, 0], sizes = [8, 384], strides = [1, 1]} : vector<8x512xf32> to vector<8x384xf32>
    %643 = arith.negf %642 : vector<8x384xf32>
    %644 = math.exp %643 : vector<8x384xf32>
    %cst_209 = arith.constant 1.000000e+00 : f32
    %645 = vector.broadcast %cst_209 : f32 to vector<8x384xf32>
    %646 = arith.addf %645, %644 : vector<8x384xf32>
    %647 = arith.divf %645, %646 : vector<8x384xf32>
    %648 = vector.extract_strided_slice %641 {offsets = [0, 384], sizes = [8, 128], strides = [1, 1]} : vector<8x512xf32> to vector<8x128xf32>
    %649 = math.tanh %648 : vector<8x128xf32>
    %650 = vector.extract_strided_slice %647 {offsets = [0, 0], sizes = [8, 128], strides = [1, 1]} : vector<8x384xf32> to vector<8x128xf32>
    %651 = vector.extract_strided_slice %647 {offsets = [0, 128], sizes = [8, 128], strides = [1, 1]} : vector<8x384xf32> to vector<8x128xf32>
    %652 = vector.extract_strided_slice %647 {offsets = [0, 256], sizes = [8, 128], strides = [1, 1]} : vector<8x384xf32> to vector<8x128xf32>
    %653 = arith.mulf %651, %551 : vector<8x128xf32>
    %654 = arith.mulf %650, %649 : vector<8x128xf32>
    %655 = arith.addf %653, %654 : vector<8x128xf32>
    %656 = math.tanh %655 : vector<8x128xf32>
    %657 = arith.mulf %652, %656 : vector<8x128xf32>
    %c8_i32_210 = arith.constant 8 : i32
    %658 = arith.cmpi slt, %553, %c8_i32_210 : i32
    %659 = arith.select %658, %657, %550 : vector<8x128xf32>
    %660 = arith.select %658, %655, %551 : vector<8x128xf32>
    %c6_i32_211 = arith.constant 6 : i32
    %c8_i32_212 = arith.constant 8 : i32
    %661 = arith.muli %arg0, %c8_i32_212 : i32
    %662 = arith.addi %661, %c6_i32_211 : i32
    %c8_i32_213 = arith.constant 8 : i32
    %663 = arith.muli %662, %c8_i32_213 : i32
    %cst_214 = arith.constant 0.000000e+00 : f32
    %664 = vector.broadcast %cst_214 : f32 to vector<8x128xf32>
    %c0_i32_215 = arith.constant 0 : i32
    %665 = arith.addi %663, %c0_i32_215 : i32
    %666 = arith.index_cast %665 : i32 to index
    %667 = memref.load %arg1[%666] : memref<64xi32, #tpu.memory_space<smem>>
    %c0_i32_216 = arith.constant 0 : i32
    %668 = vector.broadcast %c0_i32_216 : i32 to vector<8x128xi32>
    %669 = arith.cmpi eq, %3, %668 : vector<8x128xi32>
    %670 = vector.broadcast %667 : i32 to vector<8x128xi32>
    %671 = arith.cmpi eq, %4, %670 : vector<8x128xi32>
    %672 = arith.andi %669, %671 : vector<8x128xi1>
    %cst_217 = arith.constant 1.000000e+00 : f32
    %673 = vector.broadcast %cst_217 : f32 to vector<8x128xf32>
    %674 = arith.select %672, %673, %664 : vector<8x128xi1>, vector<8x128xf32>
    %c1_i32_218 = arith.constant 1 : i32
    %675 = arith.addi %663, %c1_i32_218 : i32
    %676 = arith.index_cast %675 : i32 to index
    %677 = memref.load %arg1[%676] : memref<64xi32, #tpu.memory_space<smem>>
    %c1_i32_219 = arith.constant 1 : i32
    %678 = vector.broadcast %c1_i32_219 : i32 to vector<8x128xi32>
    %679 = arith.cmpi eq, %3, %678 : vector<8x128xi32>
    %680 = vector.broadcast %677 : i32 to vector<8x128xi32>
    %681 = arith.cmpi eq, %4, %680 : vector<8x128xi32>
    %682 = arith.andi %679, %681 : vector<8x128xi1>
    %cst_220 = arith.constant 1.000000e+00 : f32
    %683 = vector.broadcast %cst_220 : f32 to vector<8x128xf32>
    %684 = arith.select %682, %683, %674 : vector<8x128xi1>, vector<8x128xf32>
    %c2_i32_221 = arith.constant 2 : i32
    %685 = arith.addi %663, %c2_i32_221 : i32
    %686 = arith.index_cast %685 : i32 to index
    %687 = memref.load %arg1[%686] : memref<64xi32, #tpu.memory_space<smem>>
    %c2_i32_222 = arith.constant 2 : i32
    %688 = vector.broadcast %c2_i32_222 : i32 to vector<8x128xi32>
    %689 = arith.cmpi eq, %3, %688 : vector<8x128xi32>
    %690 = vector.broadcast %687 : i32 to vector<8x128xi32>
    %691 = arith.cmpi eq, %4, %690 : vector<8x128xi32>
    %692 = arith.andi %689, %691 : vector<8x128xi1>
    %cst_223 = arith.constant 1.000000e+00 : f32
    %693 = vector.broadcast %cst_223 : f32 to vector<8x128xf32>
    %694 = arith.select %692, %693, %684 : vector<8x128xi1>, vector<8x128xf32>
    %c3_i32_224 = arith.constant 3 : i32
    %695 = arith.addi %663, %c3_i32_224 : i32
    %696 = arith.index_cast %695 : i32 to index
    %697 = memref.load %arg1[%696] : memref<64xi32, #tpu.memory_space<smem>>
    %c3_i32_225 = arith.constant 3 : i32
    %698 = vector.broadcast %c3_i32_225 : i32 to vector<8x128xi32>
    %699 = arith.cmpi eq, %3, %698 : vector<8x128xi32>
    %700 = vector.broadcast %697 : i32 to vector<8x128xi32>
    %701 = arith.cmpi eq, %4, %700 : vector<8x128xi32>
    %702 = arith.andi %699, %701 : vector<8x128xi1>
    %cst_226 = arith.constant 1.000000e+00 : f32
    %703 = vector.broadcast %cst_226 : f32 to vector<8x128xf32>
    %704 = arith.select %702, %703, %694 : vector<8x128xi1>, vector<8x128xf32>
    %c4_i32_227 = arith.constant 4 : i32
    %705 = arith.addi %663, %c4_i32_227 : i32
    %706 = arith.index_cast %705 : i32 to index
    %707 = memref.load %arg1[%706] : memref<64xi32, #tpu.memory_space<smem>>
    %c4_i32_228 = arith.constant 4 : i32
    %708 = vector.broadcast %c4_i32_228 : i32 to vector<8x128xi32>
    %709 = arith.cmpi eq, %3, %708 : vector<8x128xi32>
    %710 = vector.broadcast %707 : i32 to vector<8x128xi32>
    %711 = arith.cmpi eq, %4, %710 : vector<8x128xi32>
    %712 = arith.andi %709, %711 : vector<8x128xi1>
    %cst_229 = arith.constant 1.000000e+00 : f32
    %713 = vector.broadcast %cst_229 : f32 to vector<8x128xf32>
    %714 = arith.select %712, %713, %704 : vector<8x128xi1>, vector<8x128xf32>
    %c5_i32_230 = arith.constant 5 : i32
    %715 = arith.addi %663, %c5_i32_230 : i32
    %716 = arith.index_cast %715 : i32 to index
    %717 = memref.load %arg1[%716] : memref<64xi32, #tpu.memory_space<smem>>
    %c5_i32_231 = arith.constant 5 : i32
    %718 = vector.broadcast %c5_i32_231 : i32 to vector<8x128xi32>
    %719 = arith.cmpi eq, %3, %718 : vector<8x128xi32>
    %720 = vector.broadcast %717 : i32 to vector<8x128xi32>
    %721 = arith.cmpi eq, %4, %720 : vector<8x128xi32>
    %722 = arith.andi %719, %721 : vector<8x128xi1>
    %cst_232 = arith.constant 1.000000e+00 : f32
    %723 = vector.broadcast %cst_232 : f32 to vector<8x128xf32>
    %724 = arith.select %722, %723, %714 : vector<8x128xi1>, vector<8x128xf32>
    %c6_i32_233 = arith.constant 6 : i32
    %725 = arith.addi %663, %c6_i32_233 : i32
    %726 = arith.index_cast %725 : i32 to index
    %727 = memref.load %arg1[%726] : memref<64xi32, #tpu.memory_space<smem>>
    %c6_i32_234 = arith.constant 6 : i32
    %728 = vector.broadcast %c6_i32_234 : i32 to vector<8x128xi32>
    %729 = arith.cmpi eq, %3, %728 : vector<8x128xi32>
    %730 = vector.broadcast %727 : i32 to vector<8x128xi32>
    %731 = arith.cmpi eq, %4, %730 : vector<8x128xi32>
    %732 = arith.andi %729, %731 : vector<8x128xi1>
    %cst_235 = arith.constant 1.000000e+00 : f32
    %733 = vector.broadcast %cst_235 : f32 to vector<8x128xf32>
    %734 = arith.select %732, %733, %724 : vector<8x128xi1>, vector<8x128xf32>
    %c7_i32_236 = arith.constant 7 : i32
    %735 = arith.addi %663, %c7_i32_236 : i32
    %736 = arith.index_cast %735 : i32 to index
    %737 = memref.load %arg1[%736] : memref<64xi32, #tpu.memory_space<smem>>
    %c7_i32_237 = arith.constant 7 : i32
    %738 = vector.broadcast %c7_i32_237 : i32 to vector<8x128xi32>
    %739 = arith.cmpi eq, %3, %738 : vector<8x128xi32>
    %740 = vector.broadcast %737 : i32 to vector<8x128xi32>
    %741 = arith.cmpi eq, %4, %740 : vector<8x128xi32>
    %742 = arith.andi %739, %741 : vector<8x128xi1>
    %cst_238 = arith.constant 1.000000e+00 : f32
    %743 = vector.broadcast %cst_238 : f32 to vector<8x128xf32>
    %744 = arith.select %742, %743, %734 : vector<8x128xi1>, vector<8x128xf32>
    %c0_239 = arith.constant 0 : index
    %c0_240 = arith.constant 0 : index
    %745 = vector.load %arg2[%c0_239, %c0_240] : memref<128x512xf32, #tpu.memory_space<vmem>>, vector<128x512xf32>
    %cst_241 = arith.constant dense<0.000000e+00> : vector<8x512xf32>
    %746 = tpu.matmul %744, %745, %cst_241 {dimension_numbers = #tpu.dot_dimension_numbers<[1], [0], [0], [1], [0, 0, 1, 1], [], []>} : vector<8x128xf32>, vector<128x512xf32>, vector<8x512xf32> -> vector<8x512xf32>
    %747 = arith.truncf %659 : vector<8x128xf32> to vector<8x128xbf16>
    %c0_242 = arith.constant 0 : index
    %c0_243 = arith.constant 0 : index
    %748 = vector.load %arg3[%c0_242, %c0_243] : memref<128x512xbf16, #tpu.memory_space<vmem>>, vector<128x512xbf16>
    %cst_244 = arith.constant dense<0.000000e+00> : vector<8x512xf32>
    %749 = tpu.matmul %747, %748, %cst_244 {dimension_numbers = #tpu.dot_dimension_numbers<[1], [0], [0], [1], [0, 0, 1, 1], [], []>} : vector<8x128xbf16>, vector<128x512xbf16>, vector<8x512xf32> -> vector<8x512xf32>
    %750 = arith.addf %746, %749 : vector<8x512xf32>
    %751 = vector.extract_strided_slice %750 {offsets = [0, 0], sizes = [8, 384], strides = [1, 1]} : vector<8x512xf32> to vector<8x384xf32>
    %752 = arith.negf %751 : vector<8x384xf32>
    %753 = math.exp %752 : vector<8x384xf32>
    %cst_245 = arith.constant 1.000000e+00 : f32
    %754 = vector.broadcast %cst_245 : f32 to vector<8x384xf32>
    %755 = arith.addf %754, %753 : vector<8x384xf32>
    %756 = arith.divf %754, %755 : vector<8x384xf32>
    %757 = vector.extract_strided_slice %750 {offsets = [0, 384], sizes = [8, 128], strides = [1, 1]} : vector<8x512xf32> to vector<8x128xf32>
    %758 = math.tanh %757 : vector<8x128xf32>
    %759 = vector.extract_strided_slice %756 {offsets = [0, 0], sizes = [8, 128], strides = [1, 1]} : vector<8x384xf32> to vector<8x128xf32>
    %760 = vector.extract_strided_slice %756 {offsets = [0, 128], sizes = [8, 128], strides = [1, 1]} : vector<8x384xf32> to vector<8x128xf32>
    %761 = vector.extract_strided_slice %756 {offsets = [0, 256], sizes = [8, 128], strides = [1, 1]} : vector<8x384xf32> to vector<8x128xf32>
    %762 = arith.mulf %760, %660 : vector<8x128xf32>
    %763 = arith.mulf %759, %758 : vector<8x128xf32>
    %764 = arith.addf %762, %763 : vector<8x128xf32>
    %765 = math.tanh %764 : vector<8x128xf32>
    %766 = arith.mulf %761, %765 : vector<8x128xf32>
    %c8_i32_246 = arith.constant 8 : i32
    %767 = arith.cmpi slt, %662, %c8_i32_246 : i32
    %768 = arith.select %767, %766, %659 : vector<8x128xf32>
    %769 = arith.select %767, %764, %660 : vector<8x128xf32>
    %c7_i32_247 = arith.constant 7 : i32
    %c8_i32_248 = arith.constant 8 : i32
    %770 = arith.muli %arg0, %c8_i32_248 : i32
    %771 = arith.addi %770, %c7_i32_247 : i32
    %c8_i32_249 = arith.constant 8 : i32
    %772 = arith.muli %771, %c8_i32_249 : i32
    %cst_250 = arith.constant 0.000000e+00 : f32
    %773 = vector.broadcast %cst_250 : f32 to vector<8x128xf32>
    %c0_i32_251 = arith.constant 0 : i32
    %774 = arith.addi %772, %c0_i32_251 : i32
    %775 = arith.index_cast %774 : i32 to index
    %776 = memref.load %arg1[%775] : memref<64xi32, #tpu.memory_space<smem>>
    %c0_i32_252 = arith.constant 0 : i32
    %777 = vector.broadcast %c0_i32_252 : i32 to vector<8x128xi32>
    %778 = arith.cmpi eq, %3, %777 : vector<8x128xi32>
    %779 = vector.broadcast %776 : i32 to vector<8x128xi32>
    %780 = arith.cmpi eq, %4, %779 : vector<8x128xi32>
    %781 = arith.andi %778, %780 : vector<8x128xi1>
    %cst_253 = arith.constant 1.000000e+00 : f32
    %782 = vector.broadcast %cst_253 : f32 to vector<8x128xf32>
    %783 = arith.select %781, %782, %773 : vector<8x128xi1>, vector<8x128xf32>
    %c1_i32_254 = arith.constant 1 : i32
    %784 = arith.addi %772, %c1_i32_254 : i32
    %785 = arith.index_cast %784 : i32 to index
    %786 = memref.load %arg1[%785] : memref<64xi32, #tpu.memory_space<smem>>
    %c1_i32_255 = arith.constant 1 : i32
    %787 = vector.broadcast %c1_i32_255 : i32 to vector<8x128xi32>
    %788 = arith.cmpi eq, %3, %787 : vector<8x128xi32>
    %789 = vector.broadcast %786 : i32 to vector<8x128xi32>
    %790 = arith.cmpi eq, %4, %789 : vector<8x128xi32>
    %791 = arith.andi %788, %790 : vector<8x128xi1>
    %cst_256 = arith.constant 1.000000e+00 : f32
    %792 = vector.broadcast %cst_256 : f32 to vector<8x128xf32>
    %793 = arith.select %791, %792, %783 : vector<8x128xi1>, vector<8x128xf32>
    %c2_i32_257 = arith.constant 2 : i32
    %794 = arith.addi %772, %c2_i32_257 : i32
    %795 = arith.index_cast %794 : i32 to index
    %796 = memref.load %arg1[%795] : memref<64xi32, #tpu.memory_space<smem>>
    %c2_i32_258 = arith.constant 2 : i32
    %797 = vector.broadcast %c2_i32_258 : i32 to vector<8x128xi32>
    %798 = arith.cmpi eq, %3, %797 : vector<8x128xi32>
    %799 = vector.broadcast %796 : i32 to vector<8x128xi32>
    %800 = arith.cmpi eq, %4, %799 : vector<8x128xi32>
    %801 = arith.andi %798, %800 : vector<8x128xi1>
    %cst_259 = arith.constant 1.000000e+00 : f32
    %802 = vector.broadcast %cst_259 : f32 to vector<8x128xf32>
    %803 = arith.select %801, %802, %793 : vector<8x128xi1>, vector<8x128xf32>
    %c3_i32_260 = arith.constant 3 : i32
    %804 = arith.addi %772, %c3_i32_260 : i32
    %805 = arith.index_cast %804 : i32 to index
    %806 = memref.load %arg1[%805] : memref<64xi32, #tpu.memory_space<smem>>
    %c3_i32_261 = arith.constant 3 : i32
    %807 = vector.broadcast %c3_i32_261 : i32 to vector<8x128xi32>
    %808 = arith.cmpi eq, %3, %807 : vector<8x128xi32>
    %809 = vector.broadcast %806 : i32 to vector<8x128xi32>
    %810 = arith.cmpi eq, %4, %809 : vector<8x128xi32>
    %811 = arith.andi %808, %810 : vector<8x128xi1>
    %cst_262 = arith.constant 1.000000e+00 : f32
    %812 = vector.broadcast %cst_262 : f32 to vector<8x128xf32>
    %813 = arith.select %811, %812, %803 : vector<8x128xi1>, vector<8x128xf32>
    %c4_i32_263 = arith.constant 4 : i32
    %814 = arith.addi %772, %c4_i32_263 : i32
    %815 = arith.index_cast %814 : i32 to index
    %816 = memref.load %arg1[%815] : memref<64xi32, #tpu.memory_space<smem>>
    %c4_i32_264 = arith.constant 4 : i32
    %817 = vector.broadcast %c4_i32_264 : i32 to vector<8x128xi32>
    %818 = arith.cmpi eq, %3, %817 : vector<8x128xi32>
    %819 = vector.broadcast %816 : i32 to vector<8x128xi32>
    %820 = arith.cmpi eq, %4, %819 : vector<8x128xi32>
    %821 = arith.andi %818, %820 : vector<8x128xi1>
    %cst_265 = arith.constant 1.000000e+00 : f32
    %822 = vector.broadcast %cst_265 : f32 to vector<8x128xf32>
    %823 = arith.select %821, %822, %813 : vector<8x128xi1>, vector<8x128xf32>
    %c5_i32_266 = arith.constant 5 : i32
    %824 = arith.addi %772, %c5_i32_266 : i32
    %825 = arith.index_cast %824 : i32 to index
    %826 = memref.load %arg1[%825] : memref<64xi32, #tpu.memory_space<smem>>
    %c5_i32_267 = arith.constant 5 : i32
    %827 = vector.broadcast %c5_i32_267 : i32 to vector<8x128xi32>
    %828 = arith.cmpi eq, %3, %827 : vector<8x128xi32>
    %829 = vector.broadcast %826 : i32 to vector<8x128xi32>
    %830 = arith.cmpi eq, %4, %829 : vector<8x128xi32>
    %831 = arith.andi %828, %830 : vector<8x128xi1>
    %cst_268 = arith.constant 1.000000e+00 : f32
    %832 = vector.broadcast %cst_268 : f32 to vector<8x128xf32>
    %833 = arith.select %831, %832, %823 : vector<8x128xi1>, vector<8x128xf32>
    %c6_i32_269 = arith.constant 6 : i32
    %834 = arith.addi %772, %c6_i32_269 : i32
    %835 = arith.index_cast %834 : i32 to index
    %836 = memref.load %arg1[%835] : memref<64xi32, #tpu.memory_space<smem>>
    %c6_i32_270 = arith.constant 6 : i32
    %837 = vector.broadcast %c6_i32_270 : i32 to vector<8x128xi32>
    %838 = arith.cmpi eq, %3, %837 : vector<8x128xi32>
    %839 = vector.broadcast %836 : i32 to vector<8x128xi32>
    %840 = arith.cmpi eq, %4, %839 : vector<8x128xi32>
    %841 = arith.andi %838, %840 : vector<8x128xi1>
    %cst_271 = arith.constant 1.000000e+00 : f32
    %842 = vector.broadcast %cst_271 : f32 to vector<8x128xf32>
    %843 = arith.select %841, %842, %833 : vector<8x128xi1>, vector<8x128xf32>
    %c7_i32_272 = arith.constant 7 : i32
    %844 = arith.addi %772, %c7_i32_272 : i32
    %845 = arith.index_cast %844 : i32 to index
    %846 = memref.load %arg1[%845] : memref<64xi32, #tpu.memory_space<smem>>
    %c7_i32_273 = arith.constant 7 : i32
    %847 = vector.broadcast %c7_i32_273 : i32 to vector<8x128xi32>
    %848 = arith.cmpi eq, %3, %847 : vector<8x128xi32>
    %849 = vector.broadcast %846 : i32 to vector<8x128xi32>
    %850 = arith.cmpi eq, %4, %849 : vector<8x128xi32>
    %851 = arith.andi %848, %850 : vector<8x128xi1>
    %cst_274 = arith.constant 1.000000e+00 : f32
    %852 = vector.broadcast %cst_274 : f32 to vector<8x128xf32>
    %853 = arith.select %851, %852, %843 : vector<8x128xi1>, vector<8x128xf32>
    %c0_275 = arith.constant 0 : index
    %c0_276 = arith.constant 0 : index
    %854 = vector.load %arg2[%c0_275, %c0_276] : memref<128x512xf32, #tpu.memory_space<vmem>>, vector<128x512xf32>
    %cst_277 = arith.constant dense<0.000000e+00> : vector<8x512xf32>
    %855 = tpu.matmul %853, %854, %cst_277 {dimension_numbers = #tpu.dot_dimension_numbers<[1], [0], [0], [1], [0, 0, 1, 1], [], []>} : vector<8x128xf32>, vector<128x512xf32>, vector<8x512xf32> -> vector<8x512xf32>
    %856 = arith.truncf %768 : vector<8x128xf32> to vector<8x128xbf16>
    %c0_278 = arith.constant 0 : index
    %c0_279 = arith.constant 0 : index
    %857 = vector.load %arg3[%c0_278, %c0_279] : memref<128x512xbf16, #tpu.memory_space<vmem>>, vector<128x512xbf16>
    %cst_280 = arith.constant dense<0.000000e+00> : vector<8x512xf32>
    %858 = tpu.matmul %856, %857, %cst_280 {dimension_numbers = #tpu.dot_dimension_numbers<[1], [0], [0], [1], [0, 0, 1, 1], [], []>} : vector<8x128xbf16>, vector<128x512xbf16>, vector<8x512xf32> -> vector<8x512xf32>
    %859 = arith.addf %855, %858 : vector<8x512xf32>
    %860 = vector.extract_strided_slice %859 {offsets = [0, 0], sizes = [8, 384], strides = [1, 1]} : vector<8x512xf32> to vector<8x384xf32>
    %861 = arith.negf %860 : vector<8x384xf32>
    %862 = math.exp %861 : vector<8x384xf32>
    %cst_281 = arith.constant 1.000000e+00 : f32
    %863 = vector.broadcast %cst_281 : f32 to vector<8x384xf32>
    %864 = arith.addf %863, %862 : vector<8x384xf32>
    %865 = arith.divf %863, %864 : vector<8x384xf32>
    %866 = vector.extract_strided_slice %859 {offsets = [0, 384], sizes = [8, 128], strides = [1, 1]} : vector<8x512xf32> to vector<8x128xf32>
    %867 = math.tanh %866 : vector<8x128xf32>
    %868 = vector.extract_strided_slice %865 {offsets = [0, 0], sizes = [8, 128], strides = [1, 1]} : vector<8x384xf32> to vector<8x128xf32>
    %869 = vector.extract_strided_slice %865 {offsets = [0, 128], sizes = [8, 128], strides = [1, 1]} : vector<8x384xf32> to vector<8x128xf32>
    %870 = vector.extract_strided_slice %865 {offsets = [0, 256], sizes = [8, 128], strides = [1, 1]} : vector<8x384xf32> to vector<8x128xf32>
    %871 = arith.mulf %869, %769 : vector<8x128xf32>
    %872 = arith.mulf %868, %867 : vector<8x128xf32>
    %873 = arith.addf %871, %872 : vector<8x128xf32>
    %874 = math.tanh %873 : vector<8x128xf32>
    %875 = arith.mulf %870, %874 : vector<8x128xf32>
    %c8_i32_282 = arith.constant 8 : i32
    %876 = arith.cmpi slt, %771, %c8_i32_282 : i32
    %877 = arith.select %876, %875, %768 : vector<8x128xf32>
    %878 = arith.select %876, %873, %769 : vector<8x128xf32>
    %c8_i32_283 = arith.constant 8 : i32
    %c0_284 = arith.constant 0 : index
    %c0_285 = arith.constant 0 : index
    %879 = vector.load %arg5[%c0_284, %c0_285] : memref<8x128xf32, #tpu.memory_space<vmem>>, vector<8x128xf32>
    tpu.vector_store %arg5[%c0_284, %c0_285], %877 {strides = array<i32>} : memref<8x128xf32, #tpu.memory_space<vmem>>, vector<8x128xf32>,
    %c0_286 = arith.constant 0 : index
    %c0_287 = arith.constant 0 : index
    %880 = vector.load %arg6[%c0_286, %c0_287] : memref<8x128xf32, #tpu.memory_space<vmem>>, vector<8x128xf32>
    tpu.vector_store %arg6[%c0_286, %c0_287], %878 {strides = array<i32>} : memref<8x128xf32, #tpu.memory_space<vmem>>, vector<8x128xf32>,
    %c0_i32_288 = arith.constant 0 : i32
    %881 = arith.cmpi eq, %arg0, %c0_i32_288 : i32
    %882 = arith.extui %881 : i1 to i32
    %c0_i32_289 = arith.constant 0 : i32
    %883 = arith.cmpi ne, %882, %c0_i32_289 : i32
    scf.if %883 {
      %c0_290 = arith.constant 0 : index
      %c0_291 = arith.constant 0 : index
      %884 = vector.load %arg4[%c0_290, %c0_291] : memref<8x128xf32, #tpu.memory_space<vmem>>, vector<8x128xf32>
      tpu.vector_store %arg4[%c0_290, %c0_291], %877 {strides = array<i32>} : memref<8x128xf32, #tpu.memory_space<vmem>>, vector<8x128xf32>,
    } else {
    }
    return
  }
  func.func @transform_0(%arg0: i32, %arg1: memref<64xi32, #tpu.memory_space<smem>>) -> (i32, i32) {
    %c0_i32 = arith.constant 0 : i32
    %c0_i32_0 = arith.constant 0 : i32
    %c0_i32_1 = arith.constant 0 : i32
    return %c0_i32, %c0_i32_0 : i32, i32
  }
  func.func @transform_1(%arg0: i32, %arg1: memref<64xi32, #tpu.memory_space<smem>>) -> (i32, i32) {
    %c0_i32 = arith.constant 0 : i32
    %c0_i32_0 = arith.constant 0 : i32
    %c0_i32_1 = arith.constant 0 : i32
    return %c0_i32, %c0_i32_0 : i32, i32
  }
  func.func @transform_2(%arg0: i32, %arg1: memref<64xi32, #tpu.memory_space<smem>>) -> (i32, i32) {
    %c0_i32 = arith.constant 0 : i32
    %c0_i32_0 = arith.constant 0 : i32
    %c0_i32_1 = arith.constant 0 : i32
    return %c0_i32, %c0_i32_0 : i32, i32
  }
}

</mosaic_0001>

<bundles_post_ra>
// kernel: tpu_custom_call.1
= control target key start
LH: loop header
LB: loop body
LE: loop exit
PB: predicated region body
PF: predicated region fallthrough
CT: control target
= control target key end

     0   :  { %s4885_s0 = inlined_call_operand.hbm [shape: s32[64], index: 0, kind: input, shape index: {}]   ;;  %s4886_s1 = inlined_call_operand.hbm [shape: f32[128,512], index: 1, kind: input, shape index: {}]   ;;  %s4887_s2 = inlined_call_operand.hbm [shape: bf16[128,512], index: 2, kind: input, shape index: {}]   ;;  %s4888_s3 = inlined_call_operand.hbm [shape: f32[8,128], index: 3, kind: output, shape index: {}]  }
   0x1   :  { %s3658_s14 = scalar_lea.hbm %s4885_s0, 16 }
   0x2   :  { %p3659_p0 = scmp.ne.s32.totalorder %s4885_s0, %s3658_s14  ;;  %p3662_p1 = scmp.lt.u32.totalorder %s3658_s14, %s4885_s0 }
   0x4   :  { %p3664_p2 = pnand %p3662_p1, %p3659_p0 }
   0x6   :  { %3667 = shalt.err (!%p3664_p2)  }
   0x7   :  { %s3742_s19 = smov [#allocation5]  }
   0x8   :  { %9 = dma.hbm_to_smem %s4885_s0, 16, %s3742_s19, [#allocation4] }
   0x9   :  { %3734 = dma.done.wait [#allocation4], 16 }
   0xa   :  { %3735 = vsyncadd [#allocation4], 4294967280 }
   0xb   :  { %11 = sfence }
   0xc   :  { %12 = vsyncpa [#allocation7], 0 }
   0xd   :  { %13 = vsyncpa [#allocation10], 0 }
   0xe   :  { %14 = vsyncpa [#allocation8], 0  ;;  %s3743_s22 = smov [#allocation6]   ;;  %s3668_s26 = scalar_lea.hbm %s4886_s1, 8192 }
   0xf   :  { %s20_s23 = sshll.u32 %s3743_s22, 4  ;;  %p3669_p3 = scmp.ne.s32.totalorder %s4886_s1, %s3668_s26  ;;  %s21_s23 = int_to_ptr.vmem [resolvable:$true] %s20_s23 }
  0x10   :  { %p3672_p4 = scmp.lt.u32.totalorder %s3668_s26, %s4886_s1 }
  0x12   :  { %p3674_p5 = pnand %p3672_p4, %p3669_p3 }
  0x14   :  { %3677 = shalt.err (!%p3674_p5)
}
  0x15   :  { %s3678_s0 = scalar_lea.vmem %s21_s23, 8192  ;;  %p3683_p7 = scmp.lt.s32.totalorder %s21_s23, %s21_s23 }
  0x16   :  { %p3679_p6 = scmp.ne.s32.totalorder %s21_s23, %s3678_s0  ;;  %p3684_p8 = scmp.lt.s32.totalorder %s3678_s0, %s3678_s0 }
  0x18   :  { %p3685_p9 = por %p3684_p8, %p3683_p7 }
  0x1a   :  { %p3686_p10 = pnand %p3685_p9, %p3679_p6 }
  0x1c   :  { %3689 = shalt.err (!%p3686_p10)
}
  0x1d   :  { %s3744_s4 = smov 512   ;;  %s3745_s5 = smov 32  }
  0x1e   :  { %26 = dma.hbm_to_vmem [thread:$0]  %s4886_s1, 8192, %s21_s23, [#allocation7], %s3744_s4, %s3744_s4, %s3745_s5  }
  0x1f   :  { %s3746_s8 = smov [#allocation9]   ;;  %s3690_s12 = scalar_lea.hbm %s4887_s2, 4096 }
  0x20   :  { %s32_s9 = sshll.u32 %s3746_s8, 4  ;;  %p3691_p11 = scmp.ne.s32.totalorder %s4887_s2, %s3690_s12  ;;  %s33_s9 = int_to_ptr.vmem [resolvable:$true] %s32_s9 }
  0x21   :  { %p3694_p12 = scmp.lt.u32.totalorder %s3690_s12, %s4887_s2 }
  0x23   :  { %p3696_p13 = pnand %p3694_p12, %p3691_p11 }
  0x25   :  { %3699 = shalt.err (!%p3696_p13)
}
  0x26   :  { %s3700_s17 = scalar_lea.vmem %s33_s9, 4096  ;;  %p3705_p1 = scmp.lt.s32.totalorder %s33_s9, %s33_s9 }
  0x27   :  { %p3701_p0 = scmp.ne.s32.totalorder %s33_s9, %s3700_s17  ;;  %p3706_p2 = scmp.lt.s32.totalorder %s3700_s17, %s3700_s17 }
  0x29   :  { %p3707_p3 = por %p3706_p2, %p3705_p1 }
  0x2b   :  { %p3708_p4 = pnand %p3707_p3, %p3701_p0 }
  0x2d   :  { %3711 = shalt.err (!%p3708_p4)
}
  0x2e   :  { %s3747_s1 = smov 256   ;;  %s3748_s18 = smov 16  }
  0x2f   :  { %38 = dma.hbm_to_vmem [thread:$0]  %s4887_s2, 4096, %s33_s9, [#allocation10], %s3747_s1, %s3747_s1, %s3748_s18  }
  0x30   :  { %3736 = dma.done.wait [#allocation7], 8192  }
  0x31   :  { %3737 = vsyncadd [#allocation7], 4294959104 }
  0x32   :  { %3738 = dma.done.wait [#allocation10], 4096  }
  0x33   :  { %3739 = vsyncadd [#allocation10], 4294963200  ;;  %v4889_v0 = vmov 0   ;;  %v3811_v1 = vld [vmem:[#allocation9 + $0x4] ss:$16 sps:$4 sm:$0xff]   ;;  %v116_v31 = vld [vmem:[#allocation6 + $0x8] sm:$0xff]  ;;  %v52_v47 = vlaneseq }
  0x34   :  { %404 = vmatprep.mubr.bf16.mxu0 %v4889_v0  ;;  %445 = vmatprep.mubr.bf16.mxu1 %v4889_v0  ;;  %v3813_v2 = vld [vmem:[#allocation9 + $0xc] ss:$16 sps:$4 sm:$0xff]   ;;  %v3816_v3 = vld [vmem:[#allocation9] ss:$16 sps:$4 sm:$0xff]   ;;  %v3818_v4 = vld [vmem:[#allocation9 + $0x8] ss:$16 sps:$4 sm:$0xff]  }
  0x35   :  { %372 = vmatprep.subr.bf16.mxu0 %v3811_v1  ;;  %413 = vmatprep.subr.bf16.mxu1 %v3813_v2  ;;  %v3821_v5 = vld [vmem:[#allocation9 + $0x24] ss:$16 sps:$4 sm:$0xff]   ;;  %v3825_v6 = vld [vmem:[#allocation9 + $0x2c] ss:$16 sps:$4 sm:$0xff]   ;;  %v3827_v7 = vld [vmem:[#allocation9 + $0x20] ss:$16 sps:$4 sm:$0xff]  }
  0x36   :  { %373 = vmatpush1.bf16.msra.mxu0 %v3816_v3  ;;  %414 = vmatpush1.bf16.msra.mxu1 %v3818_v4  ;;  %v3830_v8 = vld [vmem:[#allocation9 + $0x28] ss:$16 sps:$4 sm:$0xff]   ;;  %v3833_v9 = vld [vmem:[#allocation9 + $0x44] ss:$16 sps:$4 sm:$0xff]   ;;  %v3835_v10 = vld [vmem:[#allocation9 + $0x4c] ss:$16 sps:$4 sm:$0xff]  }
  0x37   :  { %374 = vmatprep.subr.bf16.mxu0 %v3821_v5  ;;  %415 = vmatprep.subr.bf16.mxu1 %v3825_v6  ;;  %v3837_v11 = vld [vmem:[#allocation9 + $0x40] ss:$16 sps:$4 sm:$0xff]   ;;  %v3839_v12 = vld [vmem:[#allocation9 + $0x48] ss:$16 sps:$4 sm:$0xff]   ;;  %v3843_v13 = vld [vmem:[#allocation9 + $0x64] ss:$16 sps:$4 sm:$0xff]  }
  0x38   :  { %v3847_v14 = vld [vmem:[#allocation9 + $0x6c] ss:$16 sps:$4 sm:$0xff]   ;;  %v3849_v15 = vld [vmem:[#allocation9 + $0x60] ss:$16 sps:$4 sm:$0xff]   ;;  %v3853_v16 = vld [vmem:[#allocation9 + $0x68] ss:$16 sps:$4 sm:$0xff]  }
  0x39   :  { %v3855_v17 = vld [vmem:[#allocation9 + $0x84] ss:$16 sps:$4 sm:$0xff]   ;;  %v3859_v18 = vld [vmem:[#allocation9 + $0x8c] ss:$16 sps:$4 sm:$0xff]   ;;  %v3861_v19 = vld [vmem:[#allocation9 + $0x80] ss:$16 sps:$4 sm:$0xff]  }
  0x3a   :  { %375 = vmatpush1.bf16.msra.mxu0 %v3827_v7  ;;  %416 = vmatpush1.bf16.msra.mxu1 %v3830_v8  ;;  %v3863_v20 = vld [vmem:[#allocation9 + $0x88] ss:$16 sps:$4 sm:$0xff]   ;;  %v3867_v21 = vld [vmem:[#allocation9 + $0xa4] ss:$16 sps:$4 sm:$0xff]   ;;  %v3871_v22 = vld [vmem:[#allocation9 + $0xac] ss:$16 sps:$4 sm:$0xff]  }
  0x3b   :  { %376 = vmatprep.subr.bf16.mxu0 %v3833_v9  ;;  %417 = vmatprep.subr.bf16.mxu1 %v3835_v10  ;;  %v3875_v23 = vld [vmem:[#allocation9 + $0xa0] ss:$16 sps:$4 sm:$0xff]   ;;  %v3877_v24 = vld [vmem:[#allocation9 + $0xa8] ss:$16 sps:$4 sm:$0xff]   ;;  %v3881_v25 = vld [vmem:[#allocation9 + $0xc4] ss:$16 sps:$4 sm:$0xff]  }
  0x3c   :  { %v3883_v26 = vld [vmem:[#allocation9 + $0xcc] ss:$16 sps:$4 sm:$0xff]   ;;  %v3887_v27 = vld [vmem:[#allocation9 + $0xc0] ss:$16 sps:$4 sm:$0xff]   ;;  %v3889_v28 = vld [vmem:[#allocation9 + $0xc8] ss:$16 sps:$4 sm:$0xff]  }
  0x3d   :  { %4986 = vst [vmem:[#allocation16_spill] sm:$0xff] %v3889_v28  ;;  %v3893_v29 = vld [vmem:[#allocation9 + $0xe4] ss:$16 sps:$4 sm:$0xff]   ;;  %v3895_v30 = vld [vmem:[#allocation9 + $0xec] ss:$16 sps:$4 sm:$0xff]   ;;  %s3903_s2 = sld [smem:[#allocation5]] }
  0x3e   :  { %377 = vmatpush1.bf16.msra.mxu0 %v3837_v11  ;;  %418 = vmatpush1.bf16.msra.mxu1 %v3839_v12  ;;  %4987 = vst [vmem:[#allocation17_spill] sm:$0xff] %v3893_v29  ;;  %4988 = vst [vmem:[#allocation18_spill] sm:$0xff] %v3895_v30  ;;  %v120_v32 = vld [vmem:[#allocation6 + $0x28] sm:$0xff]  ;;  %v118_v33 = vld [vmem:[#allocation6 + $0x18] sm:$0xff]  ;;  %s3911_s21 = sld [smem:[#allocation5 + $0x1]]  ;;  %s3919_s22 = sld [smem:[#allocation5 + $0x2]] }
  0x3f   :  { %378 = vmatprep.subr.bf16.mxu0 %v3843_v13  ;;  %419 = vmatprep.subr.bf16.mxu1 %v3847_v14  ;;  %v122_v34 = vld [vmem:[#allocation6 + $0x38] sm:$0xff]  ;;  %v3897_v35 = vld [vmem:[#allocation9 + $0xe0] ss:$16 sps:$4 sm:$0xff]   ;;  %v3907_v39 = vpack.c.bf16 %v120_v32, %v116_v31  ;;  %v124_v43 = vld [vmem:[#allocation6 + $0x48] sm:$0xff]  ;;  %v3750_v60 = vmov 0.0|0.0   ;;  %v3927_v61 = vshrl.u32 %v52_v47, 7 }
  0x40   :  { %4989 = vst [vmem:[#allocation19_spill] sm:$0xff] %v3897_v35  ;;  %v3901_v36 = vld [vmem:[#allocation9 + $0xe8] ss:$16 sps:$4 sm:$0xff]   ;;  %v115_v37 = vld [vmem:[#allocation6] sm:$0xff]  ;;  %v3909_v40 = vpack.c.bf16 %v122_v34, %v118_v33  ;;  %v117_v41 = vld [vmem:[#allocation6 + $0x10] sm:$0xff]  ;;  %v3929_v62 = vand.u32 127, %v52_v47 }
  0x41   :  { %4990 = vst [vmem:[#allocation20_spill] sm:$0xff] %v3901_v36  ;;  %v119_v38 = vld [vmem:[#allocation6 + $0x20] sm:$0xff]  ;;  %4991 = vst [vmem:[#allocation21_spill] sm:$0xff] %v3907_v39  ;;  %v121_v42 = vld [vmem:[#allocation6 + $0x30] sm:$0xff]  ;;  %s3931_s23 = sld [smem:[#allocation5 + $0x3]]  ;;  %s3949_s24 = sld [smem:[#allocation5 + $0x4]] }
  0x42   :  { %379 = vmatpush1.bf16.msra.mxu0 %v3849_v15  ;;  %420 = vmatpush1.bf16.msra.mxu1 %v3853_v16  ;;  %4992 = vst [vmem:[#allocation22_spill] sm:$0xff] %v3909_v40  ;;  %v128_v44 = vld [vmem:[#allocation6 + $0x68] sm:$0xff]  ;;  %v126_v45 = vld [vmem:[#allocation6 + $0x58] sm:$0xff]  ;;  %v3915_v48 = vpack.c.bf16 %v119_v38, %v115_v37  ;;  %v3917_v49 = vpack.c.bf16 %v121_v42, %v117_v41  ;;  %v123_v50 = vld [vmem:[#allocation6 + $0x40] sm:$0xff]  ;;  %vm61_vm0 = vcmp.eq.s32.totalorder %v3927_v61, 0  ;;  %vm68_vm2 = vcmp.eq.s32.totalorder %v3927_v61, 1 }
  0x43   :  { %380 = vmatprep.subr.bf16.mxu0 %v3855_v17  ;;  %421 = vmatprep.subr.bf16.mxu1 %v3859_v18  ;;  %v130_v46 = vld [vmem:[#allocation6 + $0x78] sm:$0xff]  ;;  %v127_v51 = vld [vmem:[#allocation6 + $0x60] sm:$0xff]  ;;  %v3923_v52 = vpack.c.bf16 %v128_v44, %v124_v43  ;;  %v125_v54 = vld [vmem:[#allocation6 + $0x50] sm:$0xff]  ;;  %v62_v34 = vstv %s3903_s2  ;;  %s3966_s25 = sld [smem:[#allocation5 + $0x5]]  ;;  %vm75_vm6 = vcmp.eq.s32.totalorder %v3927_v61, 2  ;;  %s3998_s26 = sld [smem:[#allocation5 + $0x6]] }
  0x44   :  { %v3925_v53 = vpack.c.bf16 %v130_v46, %v126_v45  ;;  %v129_v55 = vld [vmem:[#allocation6 + $0x70] sm:$0xff]  ;;  %v132_v56 = vld [vmem:[#allocation6 + $0x88] sm:$0xff]  ;;  %v134_v58 = vld [vmem:[#allocation6 + $0x98] sm:$0xff]  ;;  %v3935_v63 = vpack.c.bf16 %v127_v51, %v123_v50  ;;  %v69_v44 = vstv %s3911_s21  ;;  %v4893_v50 = vmov 0.0   ;;  %s4023_s27 = sld [smem:[#allocation5 + $0x7]]  ;;  %s2818_s28 = sld [smem:[#allocation5 + $0x8]] }
  0x45   :  { %v136_v57 = vld [vmem:[#allocation6 + $0xa8] sm:$0xff]  ;;  %v138_v59 = vld [vmem:[#allocation6 + $0xb8] sm:$0xff]  ;;  %v3937_v31 = vpack.c.bf16 %v129_v55, %v125_v54  ;;  %v131_v32 = vld [vmem:[#allocation6 + $0x80] sm:$0xff]  ;;  %vm3953_vm1 = vcmp.eq.s32.totalorder %v3929_v62, %v62_v34  ;;  %vm70_vm3 = vcmp.eq.s32.totalorder %v3929_v62, %v69_v44  ;;  %vm82_vm9 = vcmp.eq.s32.totalorder %v3927_v61, 3  ;;  %s2819_s29 = sld [smem:[#allocation5 + $0x9]]  ;;  %s2820_s30 = sld [smem:[#allocation5 + $0xa]] }
  0x46   :  { %381 = vmatpush1.bf16.msra.mxu0 %v3861_v19  ;;  %422 = vmatpush1.bf16.msra.mxu1 %v3863_v20  ;;  %4993 = vst [vmem:[#allocation23_spill] sm:$0xff] %v3935_v63  ;;  %v135_v33 = vld [vmem:[#allocation6 + $0xa0] sm:$0xff]  ;;  %v3942_v37 = vpack.c.bf16 %v136_v57, %v132_v56  ;;  %v3944_v38 = vpack.c.bf16 %v138_v59, %v134_v58  ;;  %v133_v41 = vld [vmem:[#allocation6 + $0x90] sm:$0xff]  ;;  %v140_v43 = vld [vmem:[#allocation6 + $0xc8] sm:$0xff]  ;;  %v76_v59 = vstv %s3919_s22  ;;  %vm89_vm11 = vcmp.eq.s32.totalorder %v3927_v61, 4  ;;  %s2821_s0 = sld [smem:[#allocation5 + $0xb]] }
  0x47   :  { %382 = vmatprep.subr.bf16.mxu0 %v3867_v21  ;;  %423 = vmatprep.subr.bf16.mxu1 %v3871_v22  ;;  %4994 = vst [vmem:[#allocation24_spill] sm:$0xff] %v3937_v31  ;;  %v137_v42 = vld [vmem:[#allocation6 + $0xb0] sm:$0xff]  ;;  %v144_v45 = vld [vmem:[#allocation6 + $0xe8] sm:$0xff]  ;;  %v142_v46 = vld [vmem:[#allocation6 + $0xd8] sm:$0xff]  ;;  %v3960_v54 = vpack.c.bf16 %v135_v33, %v131_v32  ;;  %vm3987_vm7 = vcmp.eq.s32.totalorder %v3929_v62, %v76_v59  ;;  %vm96_vm14 = vcmp.eq.s32.totalorder %v3927_v61, 5  ;;  %s2822_s4 = sld [smem:[#allocation5 + $0xc]] }
  0x48   :  { %4995 = vst [vmem:[#allocation25_spill] sm:$0xff] %v3942_v37  ;;  %4996 = vst [vmem:[#allocation26_spill] sm:$0xff] %v3944_v38  ;;  %v146_v47 = vld [vmem:[#allocation6 + $0xf8] sm:$0xff]  ;;  %v3962_v55 = vpack.c.bf16 %v137_v42, %v133_v41  ;;  %v139_v56 = vld [vmem:[#allocation6 + $0xc0] sm:$0xff]  ;;  %s2823_s5 = sld [smem:[#allocation5 + $0xd]]  ;;  %s2824_s6 = sld [smem:[#allocation5 + $0xe]] }
  0x49   :  { %4999 = vst [vmem:[#allocation27_spill] sm:$0xff] %v3960_v54  ;;  %v143_v57 = vld [vmem:[#allocation6 + $0xe0] sm:$0xff]  ;;  %v141_v58 = vld [vmem:[#allocation6 + $0xd0] sm:$0xff]  ;;  %v3972_v34 = vpack.c.bf16 %v146_v47, %v142_v46  ;;  %v148_v33 = vld [vmem:[#allocation6 + $0x108] sm:$0xff]  ;;  %s2825_s7 = sld [smem:[#allocation5 + $0xf]]  ;;  %s2829_s8 = sld [smem:[#allocation5 + $0x10]] }
  0x4a   :  { %383 = vmatpush1.bf16.msra.mxu0 %v3875_v23  ;;  %424 = vmatpush1.bf16.msra.mxu1 %v3877_v24  ;;  %5000 = vst [vmem:[#allocation28_spill] sm:$0xff] %v3962_v55  ;;  %v145_v32 = vld [vmem:[#allocation6 + $0xf0] sm:$0xff]  ;;  %v152_v41 = vld [vmem:[#allocation6 + $0x128] sm:$0xff]  ;;  %v150_v42 = vld [vmem:[#allocation6 + $0x118] sm:$0xff]  ;;  %v3994_v46 = vpack.c.bf16 %v143_v57, %v139_v56  ;;  %s2830_s9 = sld [smem:[#allocation5 + $0x11]]  ;;  %s2831_s10 = sld [smem:[#allocation5 + $0x12]] }
  0x4b   :  { %384 = vmatprep.subr.bf16.mxu0 %v3881_v25  ;;  %425 = vmatprep.subr.bf16.mxu1 %v3883_v26  ;;  %5002 = vst [vmem:[#allocation30_spill] sm:$0xff] %v3972_v34  ;;  %v154_v0 = vld [vmem:[#allocation6 + $0x138] sm:$0xff]  ;;  %vm64_vm4 = vmand %vm61_vm0, %vm3953_vm1  ;;  %v3996_v47 = vpack.c.bf16 %v145_v32, %v141_v58  ;;  %v147_v51 = vld [vmem:[#allocation6 + $0x100] sm:$0xff]  ;;  %v4002_v59 = vpack.c.bf16 %v152_v41, %v148_v33  ;;  %v90_v33 = vstv %s3949_s24  ;;  %s2832_s11 = sld [smem:[#allocation5 + $0x13]]  ;;  %s2833_s12 = sld [smem:[#allocation5 + $0x14]] }
  0x4c   :  { %v65_v44 = vsel %vm64_vm4, 1.0, %v4893_v50  ;;  %vm3981_vm5 = vmand %vm68_vm2, %vm70_vm3  ;;  %5007 = vst [vmem:[#allocation31_spill] sm:$0xff] %v3994_v46  ;;  %v160_v56 = vld [vmem:[#allocation6 + $0x168] sm:$0xff]  ;;  %v158_v57 = vld [vmem:[#allocation6 + $0x158] sm:$0xff]  ;;  %vm91_vm13 = vcmp.eq.s32.totalorder %v3929_v62, %v90_v33  ;;  %v104_v33 = vstv %s3998_s26  ;;  %vm103_vm4 = vcmp.eq.s32.totalorder %v3927_v61, 6  ;;  %s2834_s13 = sld [smem:[#allocation5 + $0x15]] }
  0x4d   :  { %5008 = vst [vmem:[#allocation32_spill] sm:$0xff] %v3996_v47  ;;  %5009 = vst [vmem:[#allocation33_spill] sm:$0xff] %v4002_v59  ;;  %v162_v58 = vld [vmem:[#allocation6 + $0x178] sm:$0xff]  ;;  %v72_v32 = vsel %vm3981_vm5, 1.0, %v65_v44  ;;  %v159_v44 = vld [vmem:[#allocation6 + $0x160] sm:$0xff]  ;;  %vm4083_vm5 = vcmp.eq.s32.totalorder %v3929_v62, %v104_v33  ;;  %s2835_s14 = sld [smem:[#allocation5 + $0x16]] }
  0x4e   :  { %385 = vmatpush1.bf16.msra.mxu0 %v3887_v27  ;;  %426 = vmatpush1.bf16.msra.mxu1 %v3889_v28  ;;  %vm4012_vm8 = vmand %vm75_vm6, %vm3987_vm7  ;;  %s2836_s15 = sld [smem:[#allocation5 + $0x17]]  ;;  %s2840_s16 = sld [smem:[#allocation5 + $0x18]] }
  0x4f   :  { %386 = vmatprep.subr.bf16.mxu0 %v3893_v29  ;;  %427 = vmatprep.subr.bf16.mxu1 %v3895_v30  ;;  %vm92_vm1 = vmand %vm89_vm11, %vm91_vm13  ;;  %s2841_s17 = sld [smem:[#allocation5 + $0x19]]  ;;  %s2842_s1 = sld [smem:[#allocation5 + $0x1a]] }
  0x50   :  { %vm106_vm7 = vmand %vm103_vm4, %vm4083_vm5  ;;  %s2843_s18 = sld [smem:[#allocation5 + $0x1b]]  ;;  %s2844_s19 = sld [smem:[#allocation5 + $0x1c]] }
  0x51   :  { %s2845_s20 = sld [smem:[#allocation5 + $0x1d]]  ;;  %s2846_s2 = sld [smem:[#allocation5 + $0x1e]] }
  0x52   :  { %387 = vmatpush1.bf16.msra.mxu0 %v3897_v35  ;;  %428 = vmatpush1.bf16.msra.mxu1 %v3901_v36  ;;  %s2847_s21 = sld [smem:[#allocation5 + $0x1f]]  ;;  %s2851_s22 = sld [smem:[#allocation5 + $0x20]] }
  0x53   :  { %2896 = vmatprep.subr.bf16.mxu0 %v3907_v39  ;;  %2928 = vmatprep.subr.bf16.mxu1 %v3909_v40  ;;  %s2853_s24 = sld [smem:[#allocation5 + $0x22]]  ;;  %s2855_s26 = sld [smem:[#allocation5 + $0x24]] }
  0x55   :  { %405 = vmatmul.mubr.bf16.vlgmr.msra.gmra.mrb[0].mxu0 %v3750_v60  ;;  %446 = vmatmul.mubr.bf16.vlgmr.msra.gmra.mrb[0].mxu1 %v3750_v60  ;;  %v3970_v60 = vpack.c.bf16 %v144_v45, %v140_v43  ;;  %v83_v45 = vstv %s3931_s23  ;;  %v157_v43 = vld [vmem:[#allocation6 + $0x150] sm:$0xff]  ;;  %s2852_s23 = sld [smem:[#allocation5 + $0x21]] }
  0x56   :  { %2898 = vmatpush1.bf16.msra.mxu0 %v3915_v48  ;;  %2930 = vmatpush1.bf16.msra.mxu1 %v3917_v49  ;;  %vm4018_vm10 = vcmp.eq.s32.totalorder %v3929_v62, %v83_v45  ;;  %v97_v45 = vstv %s3966_s25  ;;  %s2854_s25 = sld [smem:[#allocation5 + $0x23]] }
  0x57   :  { %2900 = vmatprep.subr.bf16.mxu0 %v3923_v52  ;;  %2932 = vmatprep.subr.bf16.mxu1 %v3925_v53  ;;  %5001 = vst [vmem:[#allocation29_spill] sm:$0xff] %v3970_v60  ;;  %vm4045_vm12 = vmand %vm82_vm9, %vm4018_vm10  ;;  %vm4052_vm15 = vcmp.eq.s32.totalorder %v3929_v62, %v97_v45 }
  0x58   :  { %518 = vmatprep.mubr.f32.mxu0 %v4893_v50  ;;  %589 = vmatprep.mubr.f32.mxu1 %v4893_v50  ;;  %v151_v50 = vld [vmem:[#allocation6 + $0x120] sm:$0xff]  ;;  %vm4077_vm3 = vmand %vm96_vm14, %vm4052_vm15 }
  0x5a   :  { %2902 = vmatpush1.bf16.msra.mxu0 %v3935_v63  ;;  %2934 = vmatpush1.bf16.msra.mxu1 %v3937_v31  ;;  %v4004_v31 = vpack.c.bf16 %v154_v0, %v150_v42  ;;  %v155_v42 = vld [vmem:[#allocation6 + $0x140] sm:$0xff]  ;;  %v4037_v63 = vpack.c.bf16 %v162_v58, %v158_v57 }
  0x5b   :  { %2904 = vmatprep.subr.bf16.mxu0 %v3942_v37  ;;  %2936 = vmatprep.subr.bf16.mxu1 %v3944_v38  ;;  %v149_v37 = vld [vmem:[#allocation6 + $0x110] sm:$0xff]  ;;  %v4027_v38 = vpack.c.bf16 %v151_v50, %v147_v51  ;;  %v170_v51 = vld [vmem:[#allocation6 + $0x1b8] sm:$0xff]  ;;  %v163_v58 = vld [vmem:[#allocation6 + $0x180] sm:$0xff] }
  0x5c   :  { %5010 = vst [vmem:[#allocation34_spill] sm:$0xff] %v4004_v31  ;;  %5018 = vst [vmem:[#allocation38_spill] sm:$0xff] %v4037_v63  ;;  %v178_v50 = vld [vmem:[#allocation6 + $0x1f8] sm:$0xff] }
  0x5d   :  { %5015 = vst [vmem:[#allocation35_spill] sm:$0xff] %v4027_v38 }
  0x5e   :  { %2906 = vmatpush1.bf16.msra.mxu0 %v3960_v54  ;;  %2938 = vmatpush1.bf16.msra.mxu1 %v3962_v55  ;;  %v153_v54 = vld [vmem:[#allocation6 + $0x130] sm:$0xff]  ;;  %v156_v55 = vld [vmem:[#allocation6 + $0x148] sm:$0xff] }
  0x5f   :  { %2908 = vmatprep.subr.bf16.mxu0 %v3970_v60  ;;  %2940 = vmatprep.subr.bf16.mxu1 %v3972_v34  ;;  %v4029_v41 = vpack.c.bf16 %v153_v54, %v149_v37  ;;  %v4035_v34 = vpack.c.bf16 %v160_v56, %v156_v55  ;;  %v79_v37 = vsel %vm4012_vm8, 1.0, %v72_v32  ;;  %v168_v54 = vld [vmem:[#allocation6 + $0x1a8] sm:$0xff]  ;;  %v166_v55 = vld [vmem:[#allocation6 + $0x198] sm:$0xff]  ;;  %v4058_v56 = vpack.c.bf16 %v159_v44, %v155_v42  ;;  %v167_v32 = vld [vmem:[#allocation6 + $0x1a0] sm:$0xff] }
  0x60   :  { %v86_v0 = vsel %vm4045_vm12, 1.0, %v79_v37  ;;  %v4071_v42 = vpack.c.bf16 %v170_v51, %v166_v55  ;;  %v169_v44 = vld [vmem:[#allocation6 + $0x1b0] sm:$0xff]  ;;  %v4090_v55 = vpack.c.bf16 %v167_v32, %v163_v58  ;;  %v171_v60 = vld [vmem:[#allocation6 + $0x1c0] sm:$0xff]  ;;  %vm110_vm8 = vcmp.eq.s32.totalorder %v3927_v61, 7 }
  0x61   :  { %5016 = vst [vmem:[#allocation36_spill] sm:$0xff] %v4029_v41  ;;  %5017 = vst [vmem:[#allocation37_spill] sm:$0xff] %v4035_v34  ;;  %v93_v37 = vsel %vm92_vm1, 1.0, %v86_v0 }
  0x62   :  { %2910 = vmatpush1.bf16.msra.mxu0 %v3994_v46  ;;  %2942 = vmatpush1.bf16.msra.mxu1 %v3996_v47  ;;  %v161_v46 = vld [vmem:[#allocation6 + $0x170] sm:$0xff]  ;;  %v164_v47 = vld [vmem:[#allocation6 + $0x188] sm:$0xff]  ;;  %5023 = vst [vmem:[#allocation39_spill] sm:$0xff] %v4058_v56 }
  0x63   :  { %2912 = vmatprep.subr.bf16.mxu0 %v4002_v59  ;;  %2944 = vmatprep.subr.bf16.mxu1 %v4004_v31  ;;  %v4060_v57 = vpack.c.bf16 %v161_v46, %v157_v43  ;;  %v4069_v45 = vpack.c.bf16 %v168_v54, %v164_v47  ;;  %v165_v46 = vld [vmem:[#allocation6 + $0x190] sm:$0xff]  ;;  %v172_v43 = vld [vmem:[#allocation6 + $0x1c8] sm:$0xff]  ;;  %v111_v54 = vstv %s4023_s27  ;;  %s2856_s27 = sld [smem:[#allocation5 + $0x25]] }
  0x64   :  { %v4092_v51 = vpack.c.bf16 %v169_v44, %v165_v46  ;;  %v177_v59 = vld [vmem:[#allocation6 + $0x1f0] sm:$0xff]  ;;  %vm112_vm10 = vcmp.eq.s32.totalorder %v3929_v62, %v111_v54 }
  0x65   :  { %vm113_vm12 = vmand %vm110_vm8, %vm112_vm10 }
  0x66   :  { %2914 = vmatpush1.bf16.msra.mxu0 %v4027_v38  ;;  %2946 = vmatpush1.bf16.msra.mxu1 %v4029_v41  ;;  %v176_v41 = vld [vmem:[#allocation6 + $0x1e8] sm:$0xff]  ;;  %v174_v38 = vld [vmem:[#allocation6 + $0x1d8] sm:$0xff] }
  0x67   :  { %2916 = vmatprep.subr.bf16.mxu0 %v4035_v34  ;;  %2948 = vmatprep.subr.bf16.mxu1 %v4037_v63  ;;  %v4096_v0 = vpack.c.bf16 %v176_v41, %v172_v43  ;;  %v4098_v33 = vpack.c.bf16 %v178_v50, %v174_v38  ;;  %v175_v63 = vld [vmem:[#allocation6 + $0x1e0] sm:$0xff]  ;;  %v173_v34 = vld [vmem:[#allocation6 + $0x1d0] sm:$0xff] }
  0x68   :  { %v4110_v38 = vpack.c.bf16 %v175_v63, %v171_v60  ;;  %v4112_v41 = vpack.c.bf16 %v177_v59, %v173_v34  ;;  %v5028_v63 = vmov 0  }
  0x6a   :  { %2918 = vmatpush1.bf16.msra.mxu0 %v4058_v56  ;;  %2950 = vmatpush1.bf16.msra.mxu1 %v4060_v57  ;;  %v100_v56 = vsel %vm4077_vm3, 1.0, %v93_v37 }
  0x6b   :  { %2920 = vmatprep.subr.bf16.mxu0 %v4069_v45  ;;  %2952 = vmatprep.subr.bf16.mxu1 %v4071_v42  ;;  %v107_v31 = vsel %vm106_vm7, 1.0, %v100_v56 }
  0x6c   :  { %v114_v58 = vsel %vm113_vm12, 1.0, %v107_v31 }
  0x6e   :  { %2922 = vmatpush1.bf16.msra.mxu0 %v4090_v55  ;;  %2954 = vmatpush1.bf16.msra.mxu1 %v4092_v51 }
  0x6f   :  { %2924 = vmatprep.subr.bf16.mxu0 %v4096_v0  ;;  %2956 = vmatprep.subr.bf16.mxu1 %v4098_v33 }
  0x72   :  { %2926 = vmatpush1.bf16.msra.mxu0 %v4110_v38  ;;  %2958 = vmatpush1.bf16.msra.mxu1 %v4112_v41 }
  0x73   :  { %676 = vmatprep.subr.bf16.mxu0 %v3811_v1  ;;  %717 = vmatprep.subr.bf16.mxu1 %v3813_v2 }
  0x75   :  { %519 = vmatmul.mubr.f32.vlgmr.msra.gmra.mrb[4].mxu0 %v114_v58  ;;  %590 = vmatmul.mubr.f32.vlgmr.msra.gmra.mrb[4].mxu1 %v114_v58 }
  0x76   :  { %677 = vmatpush1.bf16.msra.mxu0 %v3816_v3  ;;  %718 = vmatpush1.bf16.msra.mxu1 %v3818_v4 }
  0x77   :  { %678 = vmatprep.subr.bf16.mxu0 %v3821_v5  ;;  %719 = vmatprep.subr.bf16.mxu1 %v3825_v6 }
  0x78   :  { %708 = vmatprep.mubr.bf16.mxu0 %v5028_v63  ;;  %749 = vmatprep.mubr.bf16.mxu1 %v5028_v63 }
  0x7a   :  { %679 = vmatpush1.bf16.msra.mxu0 %v3827_v7  ;;  %720 = vmatpush1.bf16.msra.mxu1 %v3830_v8 }
  0x7b   :  { %680 = vmatprep.subr.bf16.mxu0 %v3833_v9  ;;  %721 = vmatprep.subr.bf16.mxu1 %v3835_v10 }
  0x7e   :  { %681 = vmatpush1.bf16.msra.mxu0 %v3837_v11  ;;  %722 = vmatpush1.bf16.msra.mxu1 %v3839_v12 }
  0x7f   :  { %682 = vmatprep.subr.bf16.mxu0 %v3843_v13  ;;  %723 = vmatprep.subr.bf16.mxu1 %v3847_v14 }
  0x82   :  { %683 = vmatpush1.bf16.msra.mxu0 %v3849_v15  ;;  %724 = vmatpush1.bf16.msra.mxu1 %v3853_v16 }
  0x83   :  { %684 = vmatprep.subr.bf16.mxu0 %v3855_v17  ;;  %725 = vmatprep.subr.bf16.mxu1 %v3859_v18 }
  0x86   :  { %685 = vmatpush1.bf16.msra.mxu0 %v3861_v19  ;;  %726 = vmatpush1.bf16.msra.mxu1 %v3863_v20 }
  0x87   :  { %686 = vmatprep.subr.bf16.mxu0 %v3867_v21  ;;  %727 = vmatprep.subr.bf16.mxu1 %v3871_v22 }
  0x8a   :  { %687 = vmatpush1.bf16.msra.mxu0 %v3875_v23  ;;  %728 = vmatpush1.bf16.msra.mxu1 %v3877_v24 }
  0x8b   :  { %688 = vmatprep.subr.bf16.mxu0 %v3881_v25  ;;  %729 = vmatprep.subr.bf16.mxu1 %v3883_v26 }
  0x8e   :  { %689 = vmatpush1.bf16.msra.mxu0 %v3887_v27  ;;  %730 = vmatpush1.bf16.msra.mxu1 %v3889_v28 }
  0x8f   :  { %690 = vmatprep.subr.bf16.mxu0 %v3893_v29  ;;  %731 = vmatprep.subr.bf16.mxu1 %v3895_v30 }
  0x92   :  { %691 = vmatpush1.bf16.msra.mxu0 %v3897_v35  ;;  %732 = vmatpush1.bf16.msra.mxu1 %v3901_v36 }
  0x93   :  { %2960 = vmatprep.subr.bf16.mxu0 %v3907_v39  ;;  %2992 = vmatprep.subr.bf16.mxu1 %v3909_v40 }
 0x128   :  { %v406_v34 = vpop.f32.mrb[0].mxu0  ;;  %v447_v59 = vpop.f32.mrb[0].mxu1 }
 0x129   :  { %v408_v56 = vpop.f32.mrb[1].mxu0  ;;  %v449_v32 = vpop.f32.mrb[1].mxu1 }
 0x12a   :  { %v410_v46 = vpop.f32.mrb[2].mxu0  ;;  %v451_v44 = vpop.f32.mrb[2].mxu1 }
 0x12b   :  { %v411_v43 = vpop.f32.mrb[3].mxu0  ;;  %v452_v50 = vpop.f32.mrb[3].mxu1 }
 0x148   :  { %v520_v37 = vpop.f32.mrb[4].mxu0  ;;  %v591_v47 = vpop.f32.mrb[4].mxu1 }
 0x149   :  { %v521_v54 = vadd.f32 %v520_v37, %v406_v34  ;;  %v592_v60 = vadd.f32 %v591_v47, %v447_v59  ;;  %v522_v31 = vpop.f32.mrb[5].mxu0  ;;  %v593_v58 = vpop.f32.mrb[5].mxu1 }
 0x14a   :  { %v523_v35 = vadd.f32 %v522_v31, %v408_v56  ;;  %v594_v36 = vadd.f32 %v593_v58, %v449_v32  ;;  %v641_v31 = vstv %s2820_s30  ;;  %v5032_v58 = vld [vmem:[#allocation25_spill] sm:$0xff]  ;;  %s2862_s30 = sld [smem:[#allocation5 + $0x28]] }
 0x14b   :  { %v2815_v30 = vmul.f32 -1.442695, %v521_v54  ;;  %v2817_v40 = vmul.f32 -1.442695, %v592_v60  ;;  %v5030_v54 = vld [vmem:[#allocation23_spill] sm:$0xff]  ;;  %v5031_v60 = vld [vmem:[#allocation24_spill] sm:$0xff]  ;;  %vm642_vm5 = vcmp.eq.s32.totalorder %v3929_v62, %v641_v31  ;;  %v659_v31 = vstv %s2823_s5 }
 0x14c   :  { %v2816_v39 = vmul.f32 -1.442695, %v523_v35  ;;  %vm643_vm7 = vmand %vm75_vm6, %vm642_vm5  ;;  %s2865_s5 = sld [smem:[#allocation5 + $0x2b]] }
 0x14d   :  { %3466 = vpow2.f32 %v2815_v30 }
 0x14e   :  { %3468 = vpow2.f32 %v2816_v39  ;;  %v635_v39 = vstv %s2819_s29  ;;  %s2858_s29 = sld [smem:[#allocation5 + $0x27]] }
 0x14f   :  { %3470 = vtanh.f32 %v594_v36  ;;  %v629_v36 = vstv %s2818_s28  ;;  %vm636_vm1 = vcmp.eq.s32.totalorder %v3929_v62, %v635_v39  ;;  %s2857_s28 = sld [smem:[#allocation5 + $0x26]] }
 0x150   :  { %3472 = vpow2.f32 %v2817_v40  ;;  %vm630_vm13 = vcmp.eq.s32.totalorder %v3929_v62, %v629_v36  ;;  %v5029_v40 = vmov 0.0   ;;  %vm4176_vm3 = vmand %vm68_vm2, %vm636_vm1  ;;  %v5043_v36 = vld [vmem:[#allocation34_spill] sm:$0xff]  ;;  %vm660_vm1 = vcmp.eq.s32.totalorder %v3929_v62, %v659_v31 }
 0x151   :  { %vm631_vm15 = vmand %vm61_vm0, %vm630_vm13 }
 0x157   :  { %v3467_v29 = vpop.eup %3466 }
 0x158   :  { %v605_v28 = vadd.f32 1.0, %v3467_v29  ;;  %v3469_v46 = vpop.eup %3468 }
 0x159   :  { %v606_v44 = vadd.f32 1.0, %v3469_v46  ;;  %v3471_v43 = vpop.eup %3470  ;;  %v5033_v46 = vld [vmem:[#allocation26_spill] sm:$0xff] }
 0x15a   :  { %3474 = vrcp.f32 %v605_v28  ;;  %v3473_v34 = vpop.eup %3472 }
 0x15b   :  { %3476 = vrcp.f32 %v606_v44  ;;  %v607_v56 = vadd.f32 1.0, %v3473_v34  ;;  %v632_v44 = vsel %vm631_vm15, 1.0, %v5029_v40  ;;  %v647_v34 = vstv %s2821_s0  ;;  %s2863_s0 = sld [smem:[#allocation5 + $0x29]] }
 0x15c   :  { %vm648_vm10 = vcmp.eq.s32.totalorder %v3929_v62, %v647_v34 }
 0x15d   :  { %3478 = vrcp.f32 %v607_v56  ;;  %v5039_v56 = vld [vmem:[#allocation30_spill] sm:$0xff]  ;;  %vm649_vm12 = vmand %vm82_vm9, %vm648_vm10 }
 0x164   :  { %v3475_v59 = vpop.eup %3474 }
 0x165   :  { %v616_v50 = vmul.f32 %v3475_v59, %v3471_v43  ;;  %v3477_v37 = vpop.eup %3476  ;;  %v5036_v59 = vld [vmem:[#allocation27_spill] sm:$0xff]  ;;  %v5045_v43 = vld [vmem:[#allocation36_spill] sm:$0xff] }
 0x166   :  { %v615_v32 = vmul.f32 0.0, %v3477_v37  ;;  %v5038_v37 = vld [vmem:[#allocation29_spill] sm:$0xff] }
 0x167   :  { %v3479_v29 = vpop.eup %3478 }
 0x168   :  { %v4156_v47 = vadd.f32 %v616_v50, %v615_v32  ;;  %v5037_v50 = vld [vmem:[#allocation28_spill] sm:$0xff]  ;;  %v638_v32 = vsel %vm4176_vm3, 1.0, %v632_v44  ;;  %v5044_v44 = vld [vmem:[#allocation35_spill] sm:$0xff]  ;;  %vm661_vm3 = vmand %vm96_vm14, %vm660_vm1 }
 0x169   :  { %v644_v39 = vsel %vm643_vm7, 1.0, %v638_v32  ;;  %v5047_v32 = vld [vmem:[#allocation38_spill] sm:$0xff] }
 0x16a   :  { %3480 = vtanh.f32 %v4156_v47  ;;  %v650_v34 = vsel %vm649_vm12, 1.0, %v644_v39 }
 0x174   :  { %v3481_v30 = vpop.eup %3480 }
 0x175   :  { %v619_v35 = vmul.f32 %v3481_v30, %v3479_v29  ;;  %v653_v29 = vstv %s2822_s4  ;;  %v5040_v30 = vld [vmem:[#allocation31_spill] sm:$0xff]  ;;  %s2864_s4 = sld [smem:[#allocation5 + $0x2a]] }
 0x176   :  { %vm654_vm13 = vcmp.eq.s32.totalorder %v3929_v62, %v653_v29  ;;  %v671_v29 = vstv %s2825_s7  ;;  %s2867_s7 = sld [smem:[#allocation5 + $0x2d]] }
 0x177   :  { %v675_v28 = vpack.c.bf16 %v619_v35, %v619_v35  ;;  %v5041_v35 = vld [vmem:[#allocation32_spill] sm:$0xff]  ;;  %vm655_vm15 = vmand %vm89_vm11, %vm654_vm13  ;;  %vm672_vm10 = vcmp.eq.s32.totalorder %v3929_v62, %v671_v29 }
 0x178   :  { %vm673_vm12 = vmand %vm110_vm8, %vm672_vm10 }
 0x179   :  { %709 = vmatmul.mubr.bf16.vlgmr.msra.gmra.mrb[8].mxu0 %v675_v28  ;;  %750 = vmatmul.mubr.bf16.vlgmr.msra.gmra.mrb[8].mxu1 %v675_v28  ;;  %v5042_v28 = vld [vmem:[#allocation33_spill] sm:$0xff] }
 0x17a   :  { %2962 = vmatpush1.bf16.msra.mxu0 %v3915_v48  ;;  %2994 = vmatpush1.bf16.msra.mxu1 %v3917_v49 }
 0x17b   :  { %2964 = vmatprep.subr.bf16.mxu0 %v3923_v52  ;;  %2996 = vmatprep.subr.bf16.mxu1 %v3925_v53 }
 0x17c   :  { %822 = vmatprep.mubr.f32.mxu0 %v5029_v40  ;;  %893 = vmatprep.mubr.f32.mxu1 %v5029_v40 }
 0x17e   :  { %2966 = vmatpush1.bf16.msra.mxu0 %v5030_v54  ;;  %2998 = vmatpush1.bf16.msra.mxu1 %v5031_v60 }
 0x17f   :  { %2968 = vmatprep.subr.bf16.mxu0 %v5032_v58  ;;  %3000 = vmatprep.subr.bf16.mxu1 %v5033_v46 }
 0x182   :  { %2970 = vmatpush1.bf16.msra.mxu0 %v5036_v59  ;;  %3002 = vmatpush1.bf16.msra.mxu1 %v5037_v50 }
 0x183   :  { %2972 = vmatprep.subr.bf16.mxu0 %v5038_v37  ;;  %3004 = vmatprep.subr.bf16.mxu1 %v5039_v56 }
 0x186   :  { %2974 = vmatpush1.bf16.msra.mxu0 %v5040_v30  ;;  %3006 = vmatpush1.bf16.msra.mxu1 %v5041_v35  ;;  %v5046_v35 = vld [vmem:[#allocation37_spill] sm:$0xff] }
 0x187   :  { %2976 = vmatprep.subr.bf16.mxu0 %v5042_v28  ;;  %3008 = vmatprep.subr.bf16.mxu1 %v5043_v36  ;;  %v665_v28 = vstv %s2824_s6  ;;  %v656_v36 = vsel %vm655_vm15, 1.0, %v650_v34  ;;  %s2866_s6 = sld [smem:[#allocation5 + $0x2c]] }
 0x188   :  { %vm666_vm5 = vcmp.eq.s32.totalorder %v3929_v62, %v665_v28  ;;  %v662_v39 = vsel %vm661_vm3, 1.0, %v656_v36 }
 0x189   :  { %vm667_vm7 = vmand %vm103_vm4, %vm666_vm5 }
 0x18a   :  { %2978 = vmatpush1.bf16.msra.mxu0 %v5044_v44  ;;  %3010 = vmatpush1.bf16.msra.mxu1 %v5045_v43  ;;  %v5048_v44 = vld [vmem:[#allocation39_spill] sm:$0xff]  ;;  %v668_v28 = vsel %vm667_vm7, 1.0, %v662_v39 }
 0x18b   :  { %2980 = vmatprep.subr.bf16.mxu0 %v5046_v35  ;;  %3012 = vmatprep.subr.bf16.mxu1 %v5047_v32  ;;  %v674_v36 = vsel %vm673_vm12, 1.0, %v668_v28 }
 0x18e   :  { %2982 = vmatpush1.bf16.msra.mxu0 %v5048_v44  ;;  %3014 = vmatpush1.bf16.msra.mxu1 %v4060_v57 }
 0x18f   :  { %2984 = vmatprep.subr.bf16.mxu0 %v4069_v45  ;;  %3016 = vmatprep.subr.bf16.mxu1 %v4071_v42 }
 0x192   :  { %2986 = vmatpush1.bf16.msra.mxu0 %v4090_v55  ;;  %3018 = vmatpush1.bf16.msra.mxu1 %v4092_v51 }
 0x193   :  { %2988 = vmatprep.subr.bf16.mxu0 %v4096_v0  ;;  %3020 = vmatprep.subr.bf16.mxu1 %v4098_v33 }
 0x196   :  { %2990 = vmatpush1.bf16.msra.mxu0 %v4110_v38  ;;  %3022 = vmatpush1.bf16.msra.mxu1 %v4112_v41 }
 0x197   :  { %980 = vmatprep.subr.bf16.mxu0 %v3811_v1  ;;  %1021 = vmatprep.subr.bf16.mxu1 %v3813_v2  ;;  %v5049_v1 = vld [vmem:[#allocation16_spill] sm:$0xff]  ;;  %v5050_v2 = vld [vmem:[#allocation17_spill] sm:$0xff] }
 0x199   :  { %823 = vmatmul.mubr.f32.vlgmr.msra.gmra.mrb[6].mxu0 %v674_v36  ;;  %894 = vmatmul.mubr.f32.vlgmr.msra.gmra.mrb[6].mxu1 %v674_v36 }
 0x19a   :  { %981 = vmatpush1.bf16.msra.mxu0 %v3816_v3  ;;  %1022 = vmatpush1.bf16.msra.mxu1 %v3818_v4  ;;  %v5051_v3 = vld [vmem:[#allocation18_spill] sm:$0xff]  ;;  %v5052_v4 = vld [vmem:[#allocation19_spill] sm:$0xff] }
 0x19b   :  { %982 = vmatprep.subr.bf16.mxu0 %v3821_v5  ;;  %1023 = vmatprep.subr.bf16.mxu1 %v3825_v6  ;;  %v5053_v5 = vld [vmem:[#allocation20_spill] sm:$0xff]  ;;  %v5054_v6 = vld [vmem:[#allocation21_spill] sm:$0xff] }
 0x19c   :  { %1012 = vmatprep.mubr.bf16.mxu0 %v5028_v63  ;;  %1053 = vmatprep.mubr.bf16.mxu1 %v5028_v63 }
 0x19e   :  { %983 = vmatpush1.bf16.msra.mxu0 %v3827_v7  ;;  %1024 = vmatpush1.bf16.msra.mxu1 %v3830_v8  ;;  %v5055_v7 = vld [vmem:[#allocation22_spill] sm:$0xff] }
 0x19f   :  { %984 = vmatprep.subr.bf16.mxu0 %v3833_v9  ;;  %1025 = vmatprep.subr.bf16.mxu1 %v3835_v10 }
 0x1a2   :  { %985 = vmatpush1.bf16.msra.mxu0 %v3837_v11  ;;  %1026 = vmatpush1.bf16.msra.mxu1 %v3839_v12 }
 0x1a3   :  { %986 = vmatprep.subr.bf16.mxu0 %v3843_v13  ;;  %1027 = vmatprep.subr.bf16.mxu1 %v3847_v14 }
 0x1a6   :  { %987 = vmatpush1.bf16.msra.mxu0 %v3849_v15  ;;  %1028 = vmatpush1.bf16.msra.mxu1 %v3853_v16 }
 0x1a7   :  { %988 = vmatprep.subr.bf16.mxu0 %v3855_v17  ;;  %1029 = vmatprep.subr.bf16.mxu1 %v3859_v18 }
 0x1aa   :  { %989 = vmatpush1.bf16.msra.mxu0 %v3861_v19  ;;  %1030 = vmatpush1.bf16.msra.mxu1 %v3863_v20 }
 0x1ab   :  { %990 = vmatprep.subr.bf16.mxu0 %v3867_v21  ;;  %1031 = vmatprep.subr.bf16.mxu1 %v3871_v22 }
 0x1ae   :  { %991 = vmatpush1.bf16.msra.mxu0 %v3875_v23  ;;  %1032 = vmatpush1.bf16.msra.mxu1 %v3877_v24 }
 0x1af   :  { %992 = vmatprep.subr.bf16.mxu0 %v3881_v25  ;;  %1033 = vmatprep.subr.bf16.mxu1 %v3883_v26 }
 0x1b2   :  { %993 = vmatpush1.bf16.msra.mxu0 %v3887_v27  ;;  %1034 = vmatpush1.bf16.msra.mxu1 %v5049_v1 }
 0x1b3   :  { %994 = vmatprep.subr.bf16.mxu0 %v5050_v2  ;;  %1035 = vmatprep.subr.bf16.mxu1 %v5051_v3 }
 0x1b6   :  { %995 = vmatpush1.bf16.msra.mxu0 %v5052_v4  ;;  %1036 = vmatpush1.bf16.msra.mxu1 %v5053_v5 }
 0x1b7   :  { %3024 = vmatprep.subr.bf16.mxu0 %v5054_v6  ;;  %3056 = vmatprep.subr.bf16.mxu1 %v5055_v7 }
 0x24c   :  { %v710_v8 = vpop.f32.mrb[8].mxu0  ;;  %v751_v9 = vpop.f32.mrb[8].mxu1 }
 0x24d   :  { %v712_v10 = vpop.f32.mrb[9].mxu0  ;;  %v753_v11 = vpop.f32.mrb[9].mxu1 }
 0x24e   :  { %v714_v12 = vpop.f32.mrb[10].mxu0  ;;  %v755_v13 = vpop.f32.mrb[10].mxu1 }
 0x24f   :  { %v715_v14 = vpop.f32.mrb[11].mxu0  ;;  %v756_v15 = vpop.f32.mrb[11].mxu1  ;;  %v933_v12 = vstv %s2829_s8  ;;  %v945_v13 = vstv %s2831_s10  ;;  %s2868_s8 = sld [smem:[#allocation5 + $0x2e]]  ;;  %s2873_s10 = sld [smem:[#allocation5 + $0x30]] }
 0x250   :  { %vm934_vm13 = vcmp.eq.s32.totalorder %v3929_v62, %v933_v12  ;;  %vm946_vm5 = vcmp.eq.s32.totalorder %v3929_v62, %v945_v13  ;;  %v4357_v12 = vld [vmem:[#allocation9 + $0x40] ss:$16 sps:$4 sm:$0xff]   ;;  %v4363_v13 = vld [vmem:[#allocation9 + $0x64] ss:$16 sps:$4 sm:$0xff]  }
 0x251   :  { %vm935_vm15 = vmand %vm61_vm0, %vm934_vm13  ;;  %5064 = vst [vmem:[#allocation25_spill] sm:$0xff] %v4357_v12  ;;  %v4369_v15 = vld [vmem:[#allocation9 + $0x60] ss:$16 sps:$4 sm:$0xff]  }
 0x252   :  { %v936_v14 = vsel %vm935_vm15, 1.0, %v5029_v40  ;;  %vm947_vm7 = vmand %vm75_vm6, %vm946_vm5  ;;  %5066 = vst [vmem:[#allocation27_spill] sm:$0xff] %v4363_v13 }
 0x253   :  { %5068 = vst [vmem:[#allocation29_spill] sm:$0xff] %v4369_v15 }
 0x26c   :  { %v824_v16 = vpop.f32.mrb[6].mxu0  ;;  %v895_v17 = vpop.f32.mrb[6].mxu1 }
 0x26d   :  { %v825_v18 = vadd.f32 %v824_v16, %v710_v8  ;;  %v896_v19 = vadd.f32 %v895_v17, %v751_v9  ;;  %v826_v20 = vpop.f32.mrb[7].mxu0  ;;  %v897_v21 = vpop.f32.mrb[7].mxu1  ;;  %v951_v16 = vstv %s2832_s11  ;;  %s2874_s11 = sld [smem:[#allocation5 + $0x31]] }
 0x26e   :  { %v827_v22 = vadd.f32 %v826_v20, %v712_v10  ;;  %v898_v23 = vadd.f32 %v897_v21, %v753_v11  ;;  %vm952_vm10 = vcmp.eq.s32.totalorder %v3929_v62, %v951_v16  ;;  %v5059_v20 = vld [vmem:[#allocation33_spill] sm:$0xff]  ;;  %v5060_v21 = vld [vmem:[#allocation34_spill] sm:$0xff] }
 0x26f   :  { %v2826_v24 = vmul.f32 -1.442695, %v825_v18  ;;  %v2828_v26 = vmul.f32 -1.442695, %v896_v19  ;;  %v957_v18 = vstv %s2833_s12  ;;  %v5058_v19 = vld [vmem:[#allocation32_spill] sm:$0xff]  ;;  %vm953_vm12 = vmand %vm82_vm9, %vm952_vm10  ;;  %s2875_s12 = sld [smem:[#allocation5 + $0x32]] }
 0x270   :  { %v2827_v25 = vmul.f32 -1.442695, %v827_v22  ;;  %vm958_vm13 = vcmp.eq.s32.totalorder %v3929_v62, %v957_v18  ;;  %v4372_v16 = vld [vmem:[#allocation9 + $0x68] ss:$16 sps:$4 sm:$0xff]   ;;  %v4378_v18 = vld [vmem:[#allocation9 + $0x8c] ss:$16 sps:$4 sm:$0xff]  }
 0x271   :  { %3482 = vpow2.f32 %v2826_v24  ;;  %v5061_v24 = vld [vmem:[#allocation35_spill] sm:$0xff]  ;;  %vm959_vm15 = vmand %vm89_vm11, %vm958_vm13  ;;  %5069 = vst [vmem:[#allocation30_spill] sm:$0xff] %v4372_v16 }
 0x272   :  { %3484 = vpow2.f32 %v2827_v25  ;;  %5071 = vst [vmem:[#allocation36_spill] sm:$0xff] %v4378_v18 }
 0x273   :  { %3486 = vtanh.f32 %v898_v23  ;;  %v963_v23 = vstv %s2834_s13  ;;  %s2876_s13 = sld [smem:[#allocation5 + $0x33]] }
 0x274   :  { %3488 = vpow2.f32 %v2828_v26  ;;  %v969_v26 = vstv %s2835_s14  ;;  %s2877_s14 = sld [smem:[#allocation5 + $0x34]] }
 0x275   :  { %vm970_vm5 = vcmp.eq.s32.totalorder %v3929_v62, %v969_v26  ;;  %v4390_v26 = vld [vmem:[#allocation9 + $0xac] ss:$16 sps:$4 sm:$0xff]  }
 0x276   :  { %5075 = vst [vmem:[#allocation16_spill] sm:$0xff] %v4390_v26 }
 0x27b   :  { %v3483_v27 = vpop.eup %3482 }
 0x27c   :  { %v909_v31 = vadd.f32 1.0, %v3483_v27  ;;  %v3485_v34 = vpop.eup %3484 }
 0x27d   :  { %v910_v29 = vadd.f32 1.0, %v3485_v34  ;;  %v3487_v39 = vpop.eup %3486 }
 0x27e   :  { %3490 = vrcp.f32 %v909_v31  ;;  %v3489_v28 = vpop.eup %3488  ;;  %v975_v31 = vstv %s2836_s15  ;;  %s2878_s15 = sld [smem:[#allocation5 + $0x35]] }
 0x27f   :  { %3492 = vrcp.f32 %v910_v29  ;;  %v911_v3 = vadd.f32 1.0, %v3489_v28  ;;  %vm976_vm10 = vcmp.eq.s32.totalorder %v3929_v62, %v975_v31  ;;  %v4325_v28 = vld [vmem:[#allocation9 + $0x4] ss:$16 sps:$4 sm:$0xff]   ;;  %v4396_v31 = vld [vmem:[#allocation9 + $0xa8] ss:$16 sps:$4 sm:$0xff]  }
 0x280   :  { %5077 = vst [vmem:[#allocation18_spill] sm:$0xff] %v4396_v31 }
 0x281   :  { %3494 = vrcp.f32 %v911_v3  ;;  %v4337_v3 = vld [vmem:[#allocation9 + $0x24] ss:$16 sps:$4 sm:$0xff]  }
 0x288   :  { %v3491_v36 = vpop.eup %3490 }
 0x289   :  { %v920_v1 = vmul.f32 %v3491_v36, %v3487_v39  ;;  %v3493_v2 = vpop.eup %3492  ;;  %v4328_v36 = vld [vmem:[#allocation9 + $0xc] ss:$16 sps:$4 sm:$0xff]  }
 0x28a   :  { %v919_v4 = vmul.f32 %v3493_v2, %v4156_v47  ;;  %v939_v47 = vstv %s2830_s9  ;;  %v4334_v2 = vld [vmem:[#allocation9 + $0x8] ss:$16 sps:$4 sm:$0xff]   ;;  %s2869_s9 = sld [smem:[#allocation5 + $0x2f]] }
 0x28b   :  { %v3495_v8 = vpop.eup %3494  ;;  %vm940_vm1 = vcmp.eq.s32.totalorder %v3929_v62, %v939_v47  ;;  %v4360_v47 = vld [vmem:[#allocation9 + $0x48] ss:$16 sps:$4 sm:$0xff]  }
 0x28c   :  { %v4259_v5 = vadd.f32 %v920_v1, %v919_v4  ;;  %vm4279_vm3 = vmand %vm68_vm2, %vm940_vm1  ;;  %vm964_vm1 = vcmp.eq.s32.totalorder %v3929_v62, %v963_v23  ;;  %v4331_v1 = vld [vmem:[#allocation9] ss:$16 sps:$4 sm:$0xff]   ;;  %v4340_v4 = vld [vmem:[#allocation9 + $0x2c] ss:$16 sps:$4 sm:$0xff]   ;;  %5065 = vst [vmem:[#allocation26_spill] sm:$0xff] %v4360_v47 }
 0x28d   :  { %v942_v17 = vsel %vm4279_vm3, 1.0, %v936_v14  ;;  %vm965_vm3 = vmand %vm96_vm14, %vm964_vm1  ;;  %v4366_v14 = vld [vmem:[#allocation9 + $0x6c] ss:$16 sps:$4 sm:$0xff]   ;;  %v4384_v23 = vld [vmem:[#allocation9 + $0x88] ss:$16 sps:$4 sm:$0xff]  }
 0x28e   :  { %3496 = vtanh.f32 %v4259_v5  ;;  %v948_v22 = vsel %vm947_vm7, 1.0, %v942_v17  ;;  %vm971_vm7 = vmand %vm103_vm4, %vm970_vm5  ;;  %5067 = vst [vmem:[#allocation28_spill] sm:$0xff] %v4366_v14  ;;  %v4375_v17 = vld [vmem:[#allocation9 + $0x84] ss:$16 sps:$4 sm:$0xff]  }
 0x28f   :  { %v954_v25 = vsel %vm953_vm12, 1.0, %v948_v22  ;;  %vm977_vm12 = vmand %vm110_vm8, %vm976_vm10  ;;  %5070 = vst [vmem:[#allocation31_spill] sm:$0xff] %v4375_v17  ;;  %v4381_v22 = vld [vmem:[#allocation9 + $0x80] ss:$16 sps:$4 sm:$0xff]  }
 0x290   :  { %v960_v27 = vsel %vm959_vm15, 1.0, %v954_v25  ;;  %5072 = vst [vmem:[#allocation37_spill] sm:$0xff] %v4381_v22  ;;  %5073 = vst [vmem:[#allocation38_spill] sm:$0xff] %v4384_v23  ;;  %v4387_v25 = vld [vmem:[#allocation9 + $0xa4] ss:$16 sps:$4 sm:$0xff]  }
 0x291   :  { %v966_v34 = vsel %vm965_vm3, 1.0, %v960_v27  ;;  %5074 = vst [vmem:[#allocation39_spill] sm:$0xff] %v4387_v25  ;;  %v4393_v27 = vld [vmem:[#allocation9 + $0xa0] ss:$16 sps:$4 sm:$0xff]  }
 0x292   :  { %v972_v29 = vsel %vm971_vm7, 1.0, %v966_v34  ;;  %5076 = vst [vmem:[#allocation17_spill] sm:$0xff] %v4393_v27  ;;  %v4399_v34 = vld [vmem:[#allocation9 + $0xc4] ss:$16 sps:$4 sm:$0xff]  }
 0x293   :  { %v978_v39 = vsel %vm977_vm12, 1.0, %v972_v29  ;;  %5078 = vst [vmem:[#allocation19_spill] sm:$0xff] %v4399_v34  ;;  %v4402_v29 = vld [vmem:[#allocation9 + $0xcc] ss:$16 sps:$4 sm:$0xff]  }
 0x294   :  { %5079 = vst [vmem:[#allocation20_spill] sm:$0xff] %v4402_v29 }
 0x298   :  { %v3497_v9 = vpop.eup %3496 }
 0x299   :  { %v923_v10 = vmul.f32 %v3497_v9, %v3495_v8  ;;  %v4345_v8 = vld [vmem:[#allocation9 + $0x20] ss:$16 sps:$4 sm:$0xff]   ;;  %v4348_v9 = vld [vmem:[#allocation9 + $0x28] ss:$16 sps:$4 sm:$0xff]  }
 0x29b   :  { %v979_v11 = vpack.c.bf16 %v923_v10, %v923_v10  ;;  %v4351_v10 = vld [vmem:[#allocation9 + $0x44] ss:$16 sps:$4 sm:$0xff]  }
 0x29c   :  { %5062 = vst [vmem:[#allocation23_spill] sm:$0xff] %v4351_v10 }
 0x29d   :  { %1013 = vmatmul.mubr.bf16.vlgmr.msra.gmra.mrb[12].mxu0 %v979_v11  ;;  %1054 = vmatmul.mubr.bf16.vlgmr.msra.gmra.mrb[12].mxu1 %v979_v11  ;;  %v4354_v11 = vld [vmem:[#allocation9 + $0x4c] ss:$16 sps:$4 sm:$0xff]  }
 0x29e   :  { %3026 = vmatpush1.bf16.msra.mxu0 %v3915_v48  ;;  %3058 = vmatpush1.bf16.msra.mxu1 %v3917_v49  ;;  %5063 = vst [vmem:[#allocation24_spill] sm:$0xff] %v4354_v11 }
 0x29f   :  { %3028 = vmatprep.subr.bf16.mxu0 %v3923_v52  ;;  %3060 = vmatprep.subr.bf16.mxu1 %v3925_v53 }
 0x2a0   :  { %1126 = vmatprep.mubr.f32.mxu0 %v5029_v40  ;;  %1197 = vmatprep.mubr.f32.mxu1 %v5029_v40 }
 0x2a2   :  { %3030 = vmatpush1.bf16.msra.mxu0 %v5030_v54  ;;  %3062 = vmatpush1.bf16.msra.mxu1 %v5031_v60 }
 0x2a3   :  { %3032 = vmatprep.subr.bf16.mxu0 %v5032_v58  ;;  %3064 = vmatprep.subr.bf16.mxu1 %v5033_v46 }
 0x2a6   :  { %3034 = vmatpush1.bf16.msra.mxu0 %v5036_v59  ;;  %3066 = vmatpush1.bf16.msra.mxu1 %v5037_v50 }
 0x2a7   :  { %3036 = vmatprep.subr.bf16.mxu0 %v5038_v37  ;;  %3068 = vmatprep.subr.bf16.mxu1 %v5039_v56 }
 0x2aa   :  { %3038 = vmatpush1.bf16.msra.mxu0 %v5040_v30  ;;  %3070 = vmatpush1.bf16.msra.mxu1 %v5058_v19 }
 0x2ab   :  { %3040 = vmatprep.subr.bf16.mxu0 %v5059_v20  ;;  %3072 = vmatprep.subr.bf16.mxu1 %v5060_v21 }
 0x2ae   :  { %3042 = vmatpush1.bf16.msra.mxu0 %v5061_v24  ;;  %3074 = vmatpush1.bf16.msra.mxu1 %v5045_v43 }
 0x2af   :  { %3044 = vmatprep.subr.bf16.mxu0 %v5046_v35  ;;  %3076 = vmatprep.subr.bf16.mxu1 %v5047_v32 }
 0x2b2   :  { %3046 = vmatpush1.bf16.msra.mxu0 %v5048_v44  ;;  %3078 = vmatpush1.bf16.msra.mxu1 %v4060_v57 }
 0x2b3   :  { %3048 = vmatprep.subr.bf16.mxu0 %v4069_v45  ;;  %3080 = vmatprep.subr.bf16.mxu1 %v4071_v42 }
 0x2b6   :  { %3050 = vmatpush1.bf16.msra.mxu0 %v4090_v55  ;;  %3082 = vmatpush1.bf16.msra.mxu1 %v4092_v51 }
 0x2b7   :  { %3052 = vmatprep.subr.bf16.mxu0 %v4096_v0  ;;  %3084 = vmatprep.subr.bf16.mxu1 %v4098_v33 }
 0x2ba   :  { %3054 = vmatpush1.bf16.msra.mxu0 %v4110_v38  ;;  %3086 = vmatpush1.bf16.msra.mxu1 %v4112_v41 }
 0x2bb   :  { %1284 = vmatprep.subr.bf16.mxu0 %v4325_v28  ;;  %1325 = vmatprep.subr.bf16.mxu1 %v4328_v36 }
 0x2bd   :  { %1127 = vmatmul.mubr.f32.vlgmr.msra.gmra.mrb[16].mxu0 %v978_v39  ;;  %1198 = vmatmul.mubr.f32.vlgmr.msra.gmra.mrb[16].mxu1 %v978_v39  ;;  %v4405_v39 = vld [vmem:[#allocation9 + $0xc0] ss:$16 sps:$4 sm:$0xff]  }
 0x2be   :  { %1285 = vmatpush1.bf16.msra.mxu0 %v4331_v1  ;;  %1326 = vmatpush1.bf16.msra.mxu1 %v4334_v2  ;;  %5080 = vst [vmem:[#allocation32_spill] sm:$0xff] %v4405_v39 }
 0x2bf   :  { %1286 = vmatprep.subr.bf16.mxu0 %v4337_v3  ;;  %1327 = vmatprep.subr.bf16.mxu1 %v4340_v4 }
 0x2c0   :  { %1316 = vmatprep.mubr.bf16.mxu0 %v5028_v63  ;;  %1357 = vmatprep.mubr.bf16.mxu1 %v5028_v63 }
 0x2c2   :  { %1287 = vmatpush1.bf16.msra.mxu0 %v4345_v8  ;;  %1328 = vmatpush1.bf16.msra.mxu1 %v4348_v9 }
 0x2c3   :  { %1288 = vmatprep.subr.bf16.mxu0 %v4351_v10  ;;  %1329 = vmatprep.subr.bf16.mxu1 %v4354_v11 }
 0x2c6   :  { %1289 = vmatpush1.bf16.msra.mxu0 %v4357_v12  ;;  %1330 = vmatpush1.bf16.msra.mxu1 %v4360_v47 }
 0x2c7   :  { %1290 = vmatprep.subr.bf16.mxu0 %v4363_v13  ;;  %1331 = vmatprep.subr.bf16.mxu1 %v4366_v14 }
 0x2ca   :  { %1291 = vmatpush1.bf16.msra.mxu0 %v4369_v15  ;;  %1332 = vmatpush1.bf16.msra.mxu1 %v4372_v16 }
 0x2cb   :  { %1292 = vmatprep.subr.bf16.mxu0 %v4375_v17  ;;  %1333 = vmatprep.subr.bf16.mxu1 %v4378_v18 }
 0x2ce   :  { %1293 = vmatpush1.bf16.msra.mxu0 %v4381_v22  ;;  %1334 = vmatpush1.bf16.msra.mxu1 %v4384_v23 }
 0x2cf   :  { %1294 = vmatprep.subr.bf16.mxu0 %v4387_v25  ;;  %1335 = vmatprep.subr.bf16.mxu1 %v4390_v26  ;;  %v4408_v26 = vld [vmem:[#allocation9 + $0xc8] ss:$16 sps:$4 sm:$0xff]  }
 0x2d0   :  { %5081 = vst [vmem:[#allocation33_spill] sm:$0xff] %v4408_v26 }
 0x2d2   :  { %1295 = vmatpush1.bf16.msra.mxu0 %v4393_v27  ;;  %1336 = vmatpush1.bf16.msra.mxu1 %v4396_v31  ;;  %v4411_v27 = vld [vmem:[#allocation9 + $0xe4] ss:$16 sps:$4 sm:$0xff]   ;;  %v4414_v31 = vld [vmem:[#allocation9 + $0xec] ss:$16 sps:$4 sm:$0xff]  }
 0x2d3   :  { %1296 = vmatprep.subr.bf16.mxu0 %v4399_v34  ;;  %1337 = vmatprep.subr.bf16.mxu1 %v4402_v29  ;;  %5082 = vst [vmem:[#allocation34_spill] sm:$0xff] %v4411_v27  ;;  %5083 = vst [vmem:[#allocation35_spill] sm:$0xff] %v4414_v31  ;;  %v4417_v34 = vld [vmem:[#allocation9 + $0xe0] ss:$16 sps:$4 sm:$0xff]   ;;  %v4420_v29 = vld [vmem:[#allocation9 + $0xe8] ss:$16 sps:$4 sm:$0xff]  }
 0x2d4   :  { %5084 = vst [vmem:[#allocation40_spill] sm:$0xff] %v4417_v34  ;;  %5085 = vst [vmem:[#allocation41_spill] sm:$0xff] %v4420_v29 }
 0x2d6   :  { %1297 = vmatpush1.bf16.msra.mxu0 %v4405_v39  ;;  %1338 = vmatpush1.bf16.msra.mxu1 %v4408_v26 }
 0x2d7   :  { %1298 = vmatprep.subr.bf16.mxu0 %v4411_v27  ;;  %1339 = vmatprep.subr.bf16.mxu1 %v4414_v31 }
 0x2da   :  { %1299 = vmatpush1.bf16.msra.mxu0 %v4417_v34  ;;  %1340 = vmatpush1.bf16.msra.mxu1 %v4420_v29 }
 0x2db   :  { %3088 = vmatprep.subr.bf16.mxu0 %v5054_v6  ;;  %3120 = vmatprep.subr.bf16.mxu1 %v5055_v7 }
 0x370   :  { %v1014_v26 = vpop.f32.mrb[12].mxu0  ;;  %v1055_v39 = vpop.f32.mrb[12].mxu1 }
 0x371   :  { %v1016_v25 = vpop.f32.mrb[13].mxu0  ;;  %v1057_v27 = vpop.f32.mrb[13].mxu1 }
 0x372   :  { %v1018_v23 = vpop.f32.mrb[14].mxu0  ;;  %v1059_v22 = vpop.f32.mrb[14].mxu1 }
 0x373   :  { %v1019_v18 = vpop.f32.mrb[15].mxu0  ;;  %v1060_v31 = vpop.f32.mrb[15].mxu1 }
 0x390   :  { %v1128_v17 = vpop.f32.mrb[16].mxu0  ;;  %v1199_v16 = vpop.f32.mrb[16].mxu1 }
 0x391   :  { %v1129_v15 = vadd.f32 %v1128_v17, %v1014_v26  ;;  %v1200_v34 = vadd.f32 %v1199_v16, %v1055_v39  ;;  %v1130_v14 = vpop.f32.mrb[17].mxu0  ;;  %v1201_v13 = vpop.f32.mrb[17].mxu1  ;;  %v1261_v39 = vstv %s2844_s19  ;;  %s2886_s19 = sld [smem:[#allocation5 + $0x3a]] }
 0x392   :  { %v1131_v47 = vadd.f32 %v1130_v14, %v1016_v25  ;;  %v1202_v29 = vadd.f32 %v1201_v13, %v1057_v27  ;;  %v5096_v27 = vld [vmem:[#allocation31_spill] sm:$0xff] }
 0x393   :  { %v2837_v12 = vmul.f32 -1.442695, %v1129_v15  ;;  %v2839_v7 = vmul.f32 -1.442695, %v1200_v34  ;;  %v1249_v15 = vstv %s2842_s1  ;;  %v1255_v34 = vstv %s2843_s18  ;;  %s2884_s1 = sld [smem:[#allocation5 + $0x38]]  ;;  %s2885_s18 = sld [smem:[#allocation5 + $0x39]] }
 0x394   :  { %v2838_v6 = vmul.f32 -1.442695, %v1131_v47  ;;  %vm1250_vm5 = vcmp.eq.s32.totalorder %v3929_v62, %v1249_v15  ;;  %vm1256_vm10 = vcmp.eq.s32.totalorder %v3929_v62, %v1255_v34  ;;  %v5094_v15 = vld [vmem:[#allocation29_spill] sm:$0xff]  ;;  %v5097_v34 = vld [vmem:[#allocation36_spill] sm:$0xff] }
 0x395   :  { %3498 = vpow2.f32 %v2837_v12  ;;  %v1237_v12 = vstv %s2840_s16  ;;  %vm1251_vm7 = vmand %vm75_vm6, %vm1250_vm5  ;;  %s2879_s16 = sld [smem:[#allocation5 + $0x36]] }
 0x396   :  { %3500 = vpow2.f32 %v2838_v6  ;;  %vm1238_vm13 = vcmp.eq.s32.totalorder %v3929_v62, %v1237_v12  ;;  %vm1257_vm12 = vmand %vm82_vm9, %vm1256_vm10  ;;  %v5092_v12 = vld [vmem:[#allocation27_spill] sm:$0xff] }
 0x397   :  { %3502 = vtanh.f32 %v1202_v29  ;;  %vm1239_vm15 = vmand %vm61_vm0, %vm1238_vm13  ;;  %vm1262_vm13 = vcmp.eq.s32.totalorder %v3929_v62, %v1261_v39  ;;  %v5099_v39 = vld [vmem:[#allocation38_spill] sm:$0xff] }
 0x398   :  { %3504 = vpow2.f32 %v2839_v7  ;;  %v1240_v25 = vsel %vm1239_vm15, 1.0, %v5029_v40  ;;  %vm1263_vm15 = vmand %vm89_vm11, %vm1262_vm13 }
 0x39f   :  { %v3499_v11 = vpop.eup %3498 }
 0x3a0   :  { %v1213_v10 = vadd.f32 1.0, %v3499_v11  ;;  %v3501_v23 = vpop.eup %3500 }
 0x3a1   :  { %v1214_v18 = vadd.f32 1.0, %v3501_v23  ;;  %v3503_v22 = vpop.eup %3502 }
 0x3a2   :  { %3506 = vrcp.f32 %v1213_v10  ;;  %v3505_v17 = vpop.eup %3504 }
 0x3a3   :  { %3508 = vrcp.f32 %v1214_v18  ;;  %v1215_v14 = vadd.f32 1.0, %v3505_v17  ;;  %v1267_v18 = vstv %s2845_s20  ;;  %v1273_v17 = vstv %s2846_s2  ;;  %s2887_s20 = sld [smem:[#allocation5 + $0x3b]]  ;;  %s2888_s2 = sld [smem:[#allocation5 + $0x3c]] }
 0x3a4   :  { %vm1274_vm5 = vcmp.eq.s32.totalorder %v3929_v62, %v1273_v17  ;;  %v5103_v17 = vld [vmem:[#allocation18_spill] sm:$0xff] }
 0x3a5   :  { %3510 = vrcp.f32 %v1215_v14 }
 0x3ac   :  { %v3507_v16 = vpop.eup %3506 }
 0x3ad   :  { %v1224_v26 = vmul.f32 %v3507_v16, %v3503_v22  ;;  %v3509_v31 = vpop.eup %3508 }
 0x3ae   :  { %v1223_v13 = vmul.f32 %v3509_v31, %v4259_v5  ;;  %v1243_v5 = vstv %s2841_s17  ;;  %s2880_s17 = sld [smem:[#allocation5 + $0x37]] }
 0x3af   :  { %v3511_v6 = vpop.eup %3510  ;;  %vm1244_vm1 = vcmp.eq.s32.totalorder %v3929_v62, %v1243_v5  ;;  %v5093_v5 = vld [vmem:[#allocation28_spill] sm:$0xff] }
 0x3b0   :  { %v4426_v47 = vadd.f32 %v1224_v26, %v1223_v13  ;;  %vm4446_vm3 = vmand %vm68_vm2, %vm1244_vm1  ;;  %vm1268_vm1 = vcmp.eq.s32.totalorder %v3929_v62, %v1267_v18  ;;  %v1279_v26 = vstv %s2847_s21  ;;  %v5101_v18 = vld [vmem:[#allocation16_spill] sm:$0xff]  ;;  %s2889_s21 = sld [smem:[#allocation5 + $0x3d]] }
 0x3b1   :  { %v1246_v29 = vsel %vm4446_vm3, 1.0, %v1240_v25  ;;  %vm1269_vm3 = vmand %vm96_vm14, %vm1268_vm1  ;;  %vm1280_vm10 = vcmp.eq.s32.totalorder %v3929_v62, %v1279_v26  ;;  %v5095_v25 = vld [vmem:[#allocation30_spill] sm:$0xff]  ;;  %v5105_v26 = vld [vmem:[#allocation20_spill] sm:$0xff] }
 0x3b2   :  { %3512 = vtanh.f32 %v4426_v47  ;;  %v1252_v23 = vsel %vm1251_vm7, 1.0, %v1246_v29  ;;  %vm1275_vm7 = vmand %vm103_vm4, %vm1274_vm5  ;;  %v5098_v29 = vld [vmem:[#allocation37_spill] sm:$0xff] }
 0x3b3   :  { %v1258_v22 = vsel %vm1257_vm12, 1.0, %v1252_v23  ;;  %vm1281_vm12 = vmand %vm110_vm8, %vm1280_vm10  ;;  %v5100_v23 = vld [vmem:[#allocation39_spill] sm:$0xff] }
 0x3b4   :  { %v1264_v16 = vsel %vm1263_vm15, 1.0, %v1258_v22  ;;  %v5102_v22 = vld [vmem:[#allocation17_spill] sm:$0xff] }
 0x3b5   :  { %v1270_v31 = vsel %vm1269_vm3, 1.0, %v1264_v16  ;;  %v5104_v16 = vld [vmem:[#allocation19_spill] sm:$0xff] }
 0x3b6   :  { %v1276_v14 = vsel %vm1275_vm7, 1.0, %v1270_v31  ;;  %v5106_v31 = vld [vmem:[#allocation32_spill] sm:$0xff] }
 0x3b7   :  { %v1282_v13 = vsel %vm1281_vm12, 1.0, %v1276_v14  ;;  %v5107_v14 = vld [vmem:[#allocation33_spill] sm:$0xff] }
 0x3bc   :  { %v3513_v7 = vpop.eup %3512 }
 0x3bd   :  { %v1227_v10 = vmul.f32 %v3513_v7, %v3511_v6  ;;  %v5088_v6 = vld [vmem:[#allocation23_spill] sm:$0xff]  ;;  %v5089_v7 = vld [vmem:[#allocation24_spill] sm:$0xff] }
 0x3bf   :  { %v1283_v11 = vpack.c.bf16 %v1227_v10, %v1227_v10  ;;  %v5090_v10 = vld [vmem:[#allocation25_spill] sm:$0xff] }
 0x3c1   :  { %1317 = vmatmul.mubr.bf16.vlgmr.msra.gmra.mrb[20].mxu0 %v1283_v11  ;;  %1358 = vmatmul.mubr.bf16.vlgmr.msra.gmra.mrb[20].mxu1 %v1283_v11  ;;  %v5091_v11 = vld [vmem:[#allocation26_spill] sm:$0xff] }
 0x3c2   :  { %3090 = vmatpush1.bf16.msra.mxu0 %v3915_v48  ;;  %3122 = vmatpush1.bf16.msra.mxu1 %v3917_v49 }
 0x3c3   :  { %3092 = vmatprep.subr.bf16.mxu0 %v3923_v52  ;;  %3124 = vmatprep.subr.bf16.mxu1 %v3925_v53 }
 0x3c4   :  { %1430 = vmatprep.mubr.f32.mxu0 %v5029_v40  ;;  %1501 = vmatprep.mubr.f32.mxu1 %v5029_v40 }
 0x3c6   :  { %3094 = vmatpush1.bf16.msra.mxu0 %v5030_v54  ;;  %3126 = vmatpush1.bf16.msra.mxu1 %v5031_v60 }
 0x3c7   :  { %3096 = vmatprep.subr.bf16.mxu0 %v5032_v58  ;;  %3128 = vmatprep.subr.bf16.mxu1 %v5033_v46 }
 0x3ca   :  { %3098 = vmatpush1.bf16.msra.mxu0 %v5036_v59  ;;  %3130 = vmatpush1.bf16.msra.mxu1 %v5037_v50 }
 0x3cb   :  { %3100 = vmatprep.subr.bf16.mxu0 %v5038_v37  ;;  %3132 = vmatprep.subr.bf16.mxu1 %v5039_v56 }
 0x3ce   :  { %3102 = vmatpush1.bf16.msra.mxu0 %v5040_v30  ;;  %3134 = vmatpush1.bf16.msra.mxu1 %v5058_v19 }
 0x3cf   :  { %3104 = vmatprep.subr.bf16.mxu0 %v5059_v20  ;;  %3136 = vmatprep.subr.bf16.mxu1 %v5060_v21 }
 0x3d2   :  { %3106 = vmatpush1.bf16.msra.mxu0 %v5061_v24  ;;  %3138 = vmatpush1.bf16.msra.mxu1 %v5045_v43 }
 0x3d3   :  { %3108 = vmatprep.subr.bf16.mxu0 %v5046_v35  ;;  %3140 = vmatprep.subr.bf16.mxu1 %v5047_v32 }
 0x3d6   :  { %3110 = vmatpush1.bf16.msra.mxu0 %v5048_v44  ;;  %3142 = vmatpush1.bf16.msra.mxu1 %v4060_v57 }
 0x3d7   :  { %3112 = vmatprep.subr.bf16.mxu0 %v4069_v45  ;;  %3144 = vmatprep.subr.bf16.mxu1 %v4071_v42 }
 0x3da   :  { %3114 = vmatpush1.bf16.msra.mxu0 %v4090_v55  ;;  %3146 = vmatpush1.bf16.msra.mxu1 %v4092_v51 }
 0x3db   :  { %3116 = vmatprep.subr.bf16.mxu0 %v4096_v0  ;;  %3148 = vmatprep.subr.bf16.mxu1 %v4098_v33 }
 0x3de   :  { %3118 = vmatpush1.bf16.msra.mxu0 %v4110_v38  ;;  %3150 = vmatpush1.bf16.msra.mxu1 %v4112_v41 }
 0x3df   :  { %1588 = vmatprep.subr.bf16.mxu0 %v4325_v28  ;;  %1629 = vmatprep.subr.bf16.mxu1 %v4328_v36 }
 0x3e1   :  { %1431 = vmatmul.mubr.f32.vlgmr.msra.gmra.mrb[18].mxu0 %v1282_v13  ;;  %1502 = vmatmul.mubr.f32.vlgmr.msra.gmra.mrb[18].mxu1 %v1282_v13  ;;  %v5108_v13 = vld [vmem:[#allocation34_spill] sm:$0xff] }
 0x3e2   :  { %1589 = vmatpush1.bf16.msra.mxu0 %v4331_v1  ;;  %1630 = vmatpush1.bf16.msra.mxu1 %v4334_v2 }
 0x3e3   :  { %1590 = vmatprep.subr.bf16.mxu0 %v4337_v3  ;;  %1631 = vmatprep.subr.bf16.mxu1 %v4340_v4 }
 0x3e4   :  { %1620 = vmatprep.mubr.bf16.mxu0 %v5028_v63  ;;  %1661 = vmatprep.mubr.bf16.mxu1 %v5028_v63 }
 0x3e6   :  { %1591 = vmatpush1.bf16.msra.mxu0 %v4345_v8  ;;  %1632 = vmatpush1.bf16.msra.mxu1 %v4348_v9 }
 0x3e7   :  { %1592 = vmatprep.subr.bf16.mxu0 %v5088_v6  ;;  %1633 = vmatprep.subr.bf16.mxu1 %v5089_v7 }
 0x3ea   :  { %1593 = vmatpush1.bf16.msra.mxu0 %v5090_v10  ;;  %1634 = vmatpush1.bf16.msra.mxu1 %v5091_v11 }
 0x3eb   :  { %1594 = vmatprep.subr.bf16.mxu0 %v5092_v12  ;;  %1635 = vmatprep.subr.bf16.mxu1 %v5093_v5 }
 0x3ee   :  { %1595 = vmatpush1.bf16.msra.mxu0 %v5094_v15  ;;  %1636 = vmatpush1.bf16.msra.mxu1 %v5095_v25 }
 0x3ef   :  { %1596 = vmatprep.subr.bf16.mxu0 %v5096_v27  ;;  %1637 = vmatprep.subr.bf16.mxu1 %v5097_v34 }
 0x3f2   :  { %1597 = vmatpush1.bf16.msra.mxu0 %v5098_v29  ;;  %1638 = vmatpush1.bf16.msra.mxu1 %v5099_v39  ;;  %v5109_v29 = vld [vmem:[#allocation35_spill] sm:$0xff]  ;;  %v5110_v39 = vld [vmem:[#allocation40_spill] sm:$0xff] }
 0x3f3   :  { %1598 = vmatprep.subr.bf16.mxu0 %v5100_v23  ;;  %1639 = vmatprep.subr.bf16.mxu1 %v5101_v18  ;;  %v5111_v23 = vld [vmem:[#allocation41_spill] sm:$0xff] }
 0x3f4   :  { %v5112_v18 = vld [vmem:[#allocation21_spill] sm:$0xff] }
 0x3f6   :  { %1599 = vmatpush1.bf16.msra.mxu0 %v5102_v22  ;;  %1640 = vmatpush1.bf16.msra.mxu1 %v5103_v17  ;;  %v5113_v22 = vld [vmem:[#allocation22_spill] sm:$0xff] }
 0x3f7   :  { %1600 = vmatprep.subr.bf16.mxu0 %v5104_v16  ;;  %1641 = vmatprep.subr.bf16.mxu1 %v5105_v26 }
 0x3fa   :  { %1601 = vmatpush1.bf16.msra.mxu0 %v5106_v31  ;;  %1642 = vmatpush1.bf16.msra.mxu1 %v5107_v14 }
 0x3fb   :  { %1602 = vmatprep.subr.bf16.mxu0 %v5108_v13  ;;  %1643 = vmatprep.subr.bf16.mxu1 %v5109_v29 }
 0x3fe   :  { %1603 = vmatpush1.bf16.msra.mxu0 %v5110_v39  ;;  %1644 = vmatpush1.bf16.msra.mxu1 %v5111_v23 }
 0x3ff   :  { %3152 = vmatprep.subr.bf16.mxu0 %v5112_v18  ;;  %3184 = vmatprep.subr.bf16.mxu1 %v5113_v22 }
 0x494   :  { %v1318_v17 = vpop.f32.mrb[20].mxu0  ;;  %v1359_v16 = vpop.f32.mrb[20].mxu1 }
 0x495   :  { %v1320_v34 = vpop.f32.mrb[21].mxu0  ;;  %v1361_v26 = vpop.f32.mrb[21].mxu1 }
 0x496   :  { %v1322_v27 = vpop.f32.mrb[22].mxu0  ;;  %v1363_v31 = vpop.f32.mrb[22].mxu1 }
 0x497   :  { %v1323_v25 = vpop.f32.mrb[23].mxu0  ;;  %v1364_v14 = vpop.f32.mrb[23].mxu1 }
 0x4b4   :  { %v1432_v15 = vpop.f32.mrb[18].mxu0  ;;  %v1503_v13 = vpop.f32.mrb[18].mxu1 }
 0x4b5   :  { %v1433_v5 = vadd.f32 %v1432_v15, %v1318_v17  ;;  %v1504_v29 = vadd.f32 %v1503_v13, %v1359_v16  ;;  %v1434_v12 = vpop.f32.mrb[19].mxu0  ;;  %v1505_v39 = vpop.f32.mrb[19].mxu1  ;;  %v1565_v13 = vstv %s2855_s26 }
 0x4b6   :  { %v1435_v11 = vadd.f32 %v1434_v12, %v1320_v34  ;;  %v1506_v23 = vadd.f32 %v1505_v39, %v1361_v26  ;;  %v1553_v39 = vstv %s2853_s24  ;;  %s3752_s24 = smov [#allocation11]  }
 0x4b7   :  { %v2848_v10 = vmul.f32 -1.442695, %v1433_v5  ;;  %v2850_v22 = vmul.f32 -1.442695, %v1504_v29  ;;  %v1541_v29 = vstv %s2851_s22  ;;  %vm1554_vm5 = vcmp.eq.s32.totalorder %v3929_v62, %v1553_v39  ;;  %v5122_v39 = vld [vmem:[#allocation29_spill] sm:$0xff]  ;;  %s2890_s22 = sld [smem:[#allocation5 + $0x3e]] }
 0x4b8   :  { %v2849_v18 = vmul.f32 -1.442695, %v1435_v11  ;;  %vm1542_vm13 = vcmp.eq.s32.totalorder %v3929_v62, %v1541_v29  ;;  %vm1555_vm7 = vmand %vm75_vm6, %vm1554_vm5  ;;  %v5120_v29 = vld [vmem:[#allocation27_spill] sm:$0xff] }
 0x4b9   :  { %3514 = vpow2.f32 %v2848_v10  ;;  %vm1543_vm15 = vmand %vm61_vm0, %vm1542_vm13  ;;  %vm1566_vm13 = vcmp.eq.s32.totalorder %v3929_v62, %v1565_v13  ;;  %v5127_v13 = vld [vmem:[#allocation38_spill] sm:$0xff] }
 0x4ba   :  { %3516 = vpow2.f32 %v2849_v18  ;;  %v5124_v18 = vld [vmem:[#allocation31_spill] sm:$0xff] }
 0x4bb   :  { %3518 = vtanh.f32 %v1506_v23  ;;  %v1544_v23 = vsel %vm1543_vm15, 1.0, %v5029_v40  ;;  %vm1567_vm15 = vmand %vm89_vm11, %vm1566_vm13 }
 0x4bc   :  { %3520 = vpow2.f32 %v2850_v22  ;;  %v1559_v22 = vstv %s2854_s25  ;;  %s2766_s25 = sshll.u32 %s3752_s24, 4  ;;  %s2767_s25 = int_to_ptr.vmem [resolvable:$true] %s2766_s25 }
 0x4bd   :  { %vm1560_vm10 = vcmp.eq.s32.totalorder %v3929_v62, %v1559_v22  ;;  %v5125_v22 = vld [vmem:[#allocation36_spill] sm:$0xff]  ;;  %s3712_s26 = scalar_lea.vmem %s2767_s25, 128  ;;  %p3717_p6 = scmp.lt.s32.totalorder %s2767_s25, %s2767_s25 }
 0x4be   :  { %vm1561_vm12 = vmand %vm82_vm9, %vm1560_vm10  ;;  %p3713_p5 = scmp.ne.s32.totalorder %s2767_s25, %s3712_s26  ;;  %p3718_p7 = scmp.lt.s32.totalorder %s3712_s26, %s3712_s26 }
 0x4c0   :  { %p3719_p8 = por %p3718_p7, %p3717_p6 }
 0x4c2   :  { %p3720_p9 = pnand %p3719_p8, %p3713_p5 }
 0x4c3   :  { %v3515_v7 = vpop.eup %3514 }
 0x4c4   :  { %v1517_v6 = vadd.f32 1.0, %v3515_v7  ;;  %v3517_v27 = vpop.eup %3516 }
 0x4c5   :  { %v1518_v25 = vadd.f32 1.0, %v3517_v27  ;;  %v3519_v31 = vpop.eup %3518 }
 0x4c6   :  { %3522 = vrcp.f32 %v1517_v6  ;;  %v3521_v15 = vpop.eup %3520 }
 0x4c7   :  { %3524 = vrcp.f32 %v1518_v25  ;;  %v1519_v12 = vadd.f32 1.0, %v3521_v15  ;;  %v1571_v25 = vstv %s2856_s27  ;;  %v1577_v15 = vstv %s2857_s28 }
 0x4c8   :  { %vm1578_vm5 = vcmp.eq.s32.totalorder %v3929_v62, %v1577_v15  ;;  %v5131_v15 = vld [vmem:[#allocation18_spill] sm:$0xff] }
 0x4c9   :  { %3526 = vrcp.f32 %v1519_v12 }
 0x4d0   :  { %v3523_v17 = vpop.eup %3522 }
 0x4d1   :  { %v1528_v16 = vmul.f32 %v3523_v17, %v3519_v31  ;;  %v3525_v14 = vpop.eup %3524 }
 0x4d2   :  { %v1527_v5 = vmul.f32 %v3525_v14, %v4426_v47  ;;  %v1547_v47 = vstv %s2852_s23  ;;  %s2891_s23 = sld [smem:[#allocation5 + $0x3f]] }
 0x4d3   :  { %v3527_v7 = vpop.eup %3526  ;;  %vm1548_vm1 = vcmp.eq.s32.totalorder %v3929_v62, %v1547_v47  ;;  %v5121_v47 = vld [vmem:[#allocation28_spill] sm:$0xff] }
 0x4d4   :  { %v4529_v11 = vadd.f32 %v1528_v16, %v1527_v5  ;;  %vm4549_vm3 = vmand %vm68_vm2, %vm1548_vm1  ;;  %vm1572_vm1 = vcmp.eq.s32.totalorder %v3929_v62, %v1571_v25  ;;  %v1583_v16 = vstv %s2858_s29  ;;  %v5129_v25 = vld [vmem:[#allocation16_spill] sm:$0xff] }
 0x4d5   :  { %v1550_v26 = vsel %vm4549_vm3, 1.0, %v1544_v23  ;;  %vm1573_vm3 = vmand %vm96_vm14, %vm1572_vm1  ;;  %vm1584_vm10 = vcmp.eq.s32.totalorder %v3929_v62, %v1583_v16  ;;  %v5123_v23 = vld [vmem:[#allocation30_spill] sm:$0xff]  ;;  %v5133_v16 = vld [vmem:[#allocation20_spill] sm:$0xff] }
 0x4d6   :  { %3528 = vtanh.f32 %v4529_v11  ;;  %v1556_v27 = vsel %vm1555_vm7, 1.0, %v1550_v26  ;;  %vm1579_vm7 = vmand %vm103_vm4, %vm1578_vm5  ;;  %v5126_v26 = vld [vmem:[#allocation37_spill] sm:$0xff] }
 0x4d7   :  { %v1562_v31 = vsel %vm1561_vm12, 1.0, %v1556_v27  ;;  %vm1585_vm12 = vmand %vm110_vm8, %vm1584_vm10  ;;  %v5128_v27 = vld [vmem:[#allocation39_spill] sm:$0xff] }
 0x4d8   :  { %v1568_v17 = vsel %vm1567_vm15, 1.0, %v1562_v31  ;;  %v5130_v31 = vld [vmem:[#allocation17_spill] sm:$0xff] }
 0x4d9   :  { %v1574_v14 = vsel %vm1573_vm3, 1.0, %v1568_v17  ;;  %v5132_v17 = vld [vmem:[#allocation19_spill] sm:$0xff] }
 0x4da   :  { %v1580_v12 = vsel %vm1579_vm7, 1.0, %v1574_v14  ;;  %v5134_v14 = vld [vmem:[#allocation32_spill] sm:$0xff] }
 0x4db   :  { %v1586_v5 = vsel %vm1585_vm12, 1.0, %v1580_v12  ;;  %v5135_v12 = vld [vmem:[#allocation33_spill] sm:$0xff] }
 0x4e0   :  { %v3529_v10 = vpop.eup %3528 }
 0x4e1   :  { %v1531_v6 = vmul.f32 %v3529_v10, %v3527_v7  ;;  %v5116_v7 = vld [vmem:[#allocation23_spill] sm:$0xff]  ;;  %v5117_v10 = vld [vmem:[#allocation24_spill] sm:$0xff] }
 0x4e3   :  { %v1587_v34 = vpack.c.bf16 %v1531_v6, %v1531_v6  ;;  %v5118_v6 = vld [vmem:[#allocation25_spill] sm:$0xff] }
 0x4e5   :  { %1621 = vmatmul.mubr.bf16.vlgmr.msra.gmra.mrb[24].mxu0 %v1587_v34  ;;  %1662 = vmatmul.mubr.bf16.vlgmr.msra.gmra.mrb[24].mxu1 %v1587_v34  ;;  %v5119_v34 = vld [vmem:[#allocation26_spill] sm:$0xff] }
 0x4e6   :  { %3154 = vmatpush1.bf16.msra.mxu0 %v3915_v48  ;;  %3186 = vmatpush1.bf16.msra.mxu1 %v3917_v49 }
 0x4e7   :  { %3156 = vmatprep.subr.bf16.mxu0 %v3923_v52  ;;  %3188 = vmatprep.subr.bf16.mxu1 %v3925_v53 }
 0x4e8   :  { %1734 = vmatprep.mubr.f32.mxu0 %v5029_v40  ;;  %1805 = vmatprep.mubr.f32.mxu1 %v5029_v40 }
 0x4ea   :  { %3158 = vmatpush1.bf16.msra.mxu0 %v5030_v54  ;;  %3190 = vmatpush1.bf16.msra.mxu1 %v5031_v60 }
 0x4eb   :  { %3160 = vmatprep.subr.bf16.mxu0 %v5032_v58  ;;  %3192 = vmatprep.subr.bf16.mxu1 %v5033_v46 }
 0x4ee   :  { %3162 = vmatpush1.bf16.msra.mxu0 %v5036_v59  ;;  %3194 = vmatpush1.bf16.msra.mxu1 %v5037_v50 }
 0x4ef   :  { %3164 = vmatprep.subr.bf16.mxu0 %v5038_v37  ;;  %3196 = vmatprep.subr.bf16.mxu1 %v5039_v56 }
 0x4f2   :  { %3166 = vmatpush1.bf16.msra.mxu0 %v5040_v30  ;;  %3198 = vmatpush1.bf16.msra.mxu1 %v5058_v19 }
 0x4f3   :  { %3168 = vmatprep.subr.bf16.mxu0 %v5059_v20  ;;  %3200 = vmatprep.subr.bf16.mxu1 %v5060_v21 }
 0x4f6   :  { %3170 = vmatpush1.bf16.msra.mxu0 %v5061_v24  ;;  %3202 = vmatpush1.bf16.msra.mxu1 %v5045_v43 }
 0x4f7   :  { %3172 = vmatprep.subr.bf16.mxu0 %v5046_v35  ;;  %3204 = vmatprep.subr.bf16.mxu1 %v5047_v32 }
 0x4fa   :  { %3174 = vmatpush1.bf16.msra.mxu0 %v5048_v44  ;;  %3206 = vmatpush1.bf16.msra.mxu1 %v4060_v57 }
 0x4fb   :  { %3176 = vmatprep.subr.bf16.mxu0 %v4069_v45  ;;  %3208 = vmatprep.subr.bf16.mxu1 %v4071_v42 }
 0x4fe   :  { %3178 = vmatpush1.bf16.msra.mxu0 %v4090_v55  ;;  %3210 = vmatpush1.bf16.msra.mxu1 %v4092_v51 }
 0x4ff   :  { %3180 = vmatprep.subr.bf16.mxu0 %v4096_v0  ;;  %3212 = vmatprep.subr.bf16.mxu1 %v4098_v33 }
 0x502   :  { %3182 = vmatpush1.bf16.msra.mxu0 %v4110_v38  ;;  %3214 = vmatpush1.bf16.msra.mxu1 %v4112_v41 }
 0x503   :  { %1892 = vmatprep.subr.bf16.mxu0 %v4325_v28  ;;  %1933 = vmatprep.subr.bf16.mxu1 %v4328_v36 }
 0x505   :  { %1735 = vmatmul.mubr.f32.vlgmr.msra.gmra.mrb[28].mxu0 %v1586_v5  ;;  %1806 = vmatmul.mubr.f32.vlgmr.msra.gmra.mrb[28].mxu1 %v1586_v5  ;;  %v5136_v5 = vld [vmem:[#allocation34_spill] sm:$0xff] }
 0x506   :  { %1893 = vmatpush1.bf16.msra.mxu0 %v4331_v1  ;;  %1934 = vmatpush1.bf16.msra.mxu1 %v4334_v2 }
 0x507   :  { %1894 = vmatprep.subr.bf16.mxu0 %v4337_v3  ;;  %1935 = vmatprep.subr.bf16.mxu1 %v4340_v4 }
 0x508   :  { %1924 = vmatprep.mubr.bf16.mxu0 %v5028_v63  ;;  %1965 = vmatprep.mubr.bf16.mxu1 %v5028_v63 }
 0x50a   :  { %1895 = vmatpush1.bf16.msra.mxu0 %v4345_v8  ;;  %1936 = vmatpush1.bf16.msra.mxu1 %v4348_v9 }
 0x50b   :  { %1896 = vmatprep.subr.bf16.mxu0 %v5116_v7  ;;  %1937 = vmatprep.subr.bf16.mxu1 %v5117_v10 }
 0x50e   :  { %1897 = vmatpush1.bf16.msra.mxu0 %v5118_v6  ;;  %1938 = vmatpush1.bf16.msra.mxu1 %v5119_v34 }
 0x50f   :  { %1898 = vmatprep.subr.bf16.mxu0 %v5120_v29  ;;  %1939 = vmatprep.subr.bf16.mxu1 %v5121_v47 }
 0x512   :  { %1899 = vmatpush1.bf16.msra.mxu0 %v5122_v39  ;;  %1940 = vmatpush1.bf16.msra.mxu1 %v5123_v23 }
 0x513   :  { %1900 = vmatprep.subr.bf16.mxu0 %v5124_v18  ;;  %1941 = vmatprep.subr.bf16.mxu1 %v5125_v22 }
 0x516   :  { %1901 = vmatpush1.bf16.msra.mxu0 %v5126_v26  ;;  %1942 = vmatpush1.bf16.msra.mxu1 %v5127_v13  ;;  %v5137_v26 = vld [vmem:[#allocation35_spill] sm:$0xff]  ;;  %v5138_v13 = vld [vmem:[#allocation40_spill] sm:$0xff] }
 0x517   :  { %1902 = vmatprep.subr.bf16.mxu0 %v5128_v27  ;;  %1943 = vmatprep.subr.bf16.mxu1 %v5129_v25  ;;  %v5139_v27 = vld [vmem:[#allocation41_spill] sm:$0xff] }
 0x518   :  { %v5140_v25 = vld [vmem:[#allocation21_spill] sm:$0xff] }
 0x51a   :  { %1903 = vmatpush1.bf16.msra.mxu0 %v5130_v31  ;;  %1944 = vmatpush1.bf16.msra.mxu1 %v5131_v15  ;;  %v5141_v31 = vld [vmem:[#allocation22_spill] sm:$0xff] }
 0x51b   :  { %1904 = vmatprep.subr.bf16.mxu0 %v5132_v17  ;;  %1945 = vmatprep.subr.bf16.mxu1 %v5133_v16 }
 0x51e   :  { %1905 = vmatpush1.bf16.msra.mxu0 %v5134_v14  ;;  %1946 = vmatpush1.bf16.msra.mxu1 %v5135_v12 }
 0x51f   :  { %1906 = vmatprep.subr.bf16.mxu0 %v5136_v5  ;;  %1947 = vmatprep.subr.bf16.mxu1 %v5137_v26 }
 0x522   :  { %1907 = vmatpush1.bf16.msra.mxu0 %v5138_v13  ;;  %1948 = vmatpush1.bf16.msra.mxu1 %v5139_v27 }
 0x523   :  { %3216 = vmatprep.subr.bf16.mxu0 %v5140_v25  ;;  %3248 = vmatprep.subr.bf16.mxu1 %v5141_v31 }
 0x5b8   :  { %v1622_v15 = vpop.f32.mrb[24].mxu0  ;;  %v1663_v17 = vpop.f32.mrb[24].mxu1 }
 0x5b9   :  { %v1624_v22 = vpop.f32.mrb[25].mxu0  ;;  %v1665_v16 = vpop.f32.mrb[25].mxu1 }
 0x5ba   :  { %v1626_v18 = vpop.f32.mrb[26].mxu0  ;;  %v1667_v14 = vpop.f32.mrb[26].mxu1 }
 0x5bb   :  { %v1627_v23 = vpop.f32.mrb[27].mxu0  ;;  %v1668_v12 = vpop.f32.mrb[27].mxu1 }
 0x5d8   :  { %v1736_v39 = vpop.f32.mrb[28].mxu0  ;;  %v1807_v5 = vpop.f32.mrb[28].mxu1 }
 0x5d9   :  { %v1737_v47 = vadd.f32 %v1736_v39, %v1622_v15  ;;  %v1808_v26 = vadd.f32 %v1807_v5, %v1663_v17  ;;  %v1738_v29 = vpop.f32.mrb[29].mxu0  ;;  %v1809_v13 = vpop.f32.mrb[29].mxu1  ;;  %v1869_v5 = vstv %s2866_s6 }
 0x5da   :  { %v1739_v34 = vadd.f32 %v1738_v29, %v1624_v22  ;;  %v1810_v27 = vadd.f32 %v1809_v13, %v1665_v16  ;;  %v1857_v13 = vstv %s2864_s4 }
 0x5db   :  { %v2859_v6 = vmul.f32 -1.442695, %v1737_v47  ;;  %v2861_v31 = vmul.f32 -1.442695, %v1808_v26  ;;  %v1845_v26 = vstv %s2862_s30  ;;  %vm1858_vm5 = vcmp.eq.s32.totalorder %v3929_v62, %v1857_v13  ;;  %v5158_v13 = vld [vmem:[#allocation17_spill] sm:$0xff] }
 0x5dc   :  { %v2860_v25 = vmul.f32 -1.442695, %v1739_v34  ;;  %vm1846_vm13 = vcmp.eq.s32.totalorder %v3929_v62, %v1845_v26  ;;  %vm1859_vm7 = vmand %vm75_vm6, %vm1858_vm5  ;;  %v5156_v26 = vld [vmem:[#allocation39_spill] sm:$0xff] }
 0x5dd   :  { %3530 = vpow2.f32 %v2859_v6  ;;  %vm1847_vm15 = vmand %vm61_vm0, %vm1846_vm13  ;;  %vm1870_vm13 = vcmp.eq.s32.totalorder %v3929_v62, %v1869_v5  ;;  %v5163_v5 = vld [vmem:[#allocation33_spill] sm:$0xff] }
 0x5de   :  { %3532 = vpow2.f32 %v2860_v25  ;;  %v5160_v25 = vld [vmem:[#allocation19_spill] sm:$0xff] }
 0x5df   :  { %3534 = vtanh.f32 %v1810_v27  ;;  %v1848_v27 = vsel %vm1847_vm15, 1.0, %v5029_v40  ;;  %vm1871_vm15 = vmand %vm89_vm11, %vm1870_vm13 }
 0x5e0   :  { %3536 = vpow2.f32 %v2861_v31  ;;  %v1863_v31 = vstv %s2865_s5 }
 0x5e1   :  { %vm1864_vm10 = vcmp.eq.s32.totalorder %v3929_v62, %v1863_v31  ;;  %v5161_v31 = vld [vmem:[#allocation20_spill] sm:$0xff] }
 0x5e2   :  { %vm1865_vm12 = vmand %vm82_vm9, %vm1864_vm10 }
 0x5e7   :  { %v3531_v10 = vpop.eup %3530 }
 0x5e8   :  { %v1821_v7 = vadd.f32 1.0, %v3531_v10  ;;  %v3533_v18 = vpop.eup %3532 }
 0x5e9   :  { %v1822_v23 = vadd.f32 1.0, %v3533_v18  ;;  %v3535_v14 = vpop.eup %3534 }
 0x5ea   :  { %3538 = vrcp.f32 %v1821_v7  ;;  %v3537_v39 = vpop.eup %3536 }
 0x5eb   :  { %3540 = vrcp.f32 %v1822_v23  ;;  %v1823_v29 = vadd.f32 1.0, %v3537_v39  ;;  %v1875_v23 = vstv %s2867_s7  ;;  %v1881_v39 = vstv %s2868_s8 }
 0x5ec   :  { %vm1882_vm5 = vcmp.eq.s32.totalorder %v3929_v62, %v1881_v39  ;;  %v5167_v39 = vld [vmem:[#allocation41_spill] sm:$0xff] }
 0x5ed   :  { %3542 = vrcp.f32 %v1823_v29 }
 0x5f4   :  { %v3539_v15 = vpop.eup %3538 }
 0x5f5   :  { %v1832_v17 = vmul.f32 %v3539_v15, %v3535_v14  ;;  %v3541_v12 = vpop.eup %3540 }
 0x5f6   :  { %v1831_v47 = vmul.f32 %v3541_v12, %v4529_v11  ;;  %v1851_v11 = vstv %s2863_s0 }
 0x5f7   :  { %v3543_v10 = vpop.eup %3542  ;;  %vm1852_vm1 = vcmp.eq.s32.totalorder %v3929_v62, %v1851_v11  ;;  %v5157_v11 = vld [vmem:[#allocation16_spill] sm:$0xff] }
 0x5f8   :  { %v4632_v34 = vadd.f32 %v1832_v17, %v1831_v47  ;;  %vm4652_vm3 = vmand %vm68_vm2, %vm1852_vm1  ;;  %vm1876_vm1 = vcmp.eq.s32.totalorder %v3929_v62, %v1875_v23  ;;  %v1887_v17 = vstv %s2869_s9  ;;  %v5165_v23 = vld [vmem:[#allocation35_spill] sm:$0xff] }
 0x5f9   :  { %v1854_v16 = vsel %vm4652_vm3, 1.0, %v1848_v27  ;;  %vm1877_vm3 = vmand %vm96_vm14, %vm1876_vm1  ;;  %vm1888_vm10 = vcmp.eq.s32.totalorder %v3929_v62, %v1887_v17  ;;  %v5159_v27 = vld [vmem:[#allocation18_spill] sm:$0xff] }
 0x5fa   :  { %3544 = vtanh.f32 %v4632_v34  ;;  %v1860_v18 = vsel %vm1859_vm7, 1.0, %v1854_v16  ;;  %vm1883_vm7 = vmand %vm103_vm4, %vm1882_vm5  ;;  %v5162_v16 = vld [vmem:[#allocation32_spill] sm:$0xff]  ;;  %v5169_v17 = vld [vmem:[#allocation22_spill] sm:$0xff] }
 0x5fb   :  { %v1866_v14 = vsel %vm1865_vm12, 1.0, %v1860_v18  ;;  %vm1889_vm12 = vmand %vm110_vm8, %vm1888_vm10  ;;  %v5164_v18 = vld [vmem:[#allocation34_spill] sm:$0xff] }
 0x5fc   :  { %v1872_v15 = vsel %vm1871_vm15, 1.0, %v1866_v14  ;;  %v5166_v14 = vld [vmem:[#allocation40_spill] sm:$0xff] }
 0x5fd   :  { %v1878_v12 = vsel %vm1877_vm3, 1.0, %v1872_v15  ;;  %v5168_v15 = vld [vmem:[#allocation21_spill] sm:$0xff] }
 0x5fe   :  { %v1884_v29 = vsel %vm1883_vm7, 1.0, %v1878_v12 }
 0x5ff   :  { %v1890_v47 = vsel %vm1889_vm12, 1.0, %v1884_v29 }
 0x604   :  { %v3545_v6 = vpop.eup %3544 }
 0x605   :  { %v1835_v7 = vmul.f32 %v3545_v6, %v3543_v10  ;;  %v5146_v10 = vld [vmem:[#allocation25_spill] sm:$0xff]  ;;  %v5151_v6 = vld [vmem:[#allocation30_spill] sm:$0xff] }
 0x607   :  { %v1891_v22 = vpack.c.bf16 %v1835_v7, %v1835_v7  ;;  %v5152_v7 = vld [vmem:[#allocation31_spill] sm:$0xff] }
 0x609   :  { %1925 = vmatmul.mubr.bf16.vlgmr.msra.gmra.mrb[32].mxu0 %v1891_v22  ;;  %1966 = vmatmul.mubr.bf16.vlgmr.msra.gmra.mrb[32].mxu1 %v1891_v22  ;;  %v5155_v22 = vld [vmem:[#allocation38_spill] sm:$0xff] }
 0x60a   :  { %3218 = vmatpush1.bf16.msra.mxu0 %v3915_v48  ;;  %3250 = vmatpush1.bf16.msra.mxu1 %v3917_v49 }
 0x60b   :  { %3220 = vmatprep.subr.bf16.mxu0 %v3923_v52  ;;  %3252 = vmatprep.subr.bf16.mxu1 %v3925_v53 }
 0x60c   :  { %2038 = vmatprep.mubr.f32.mxu0 %v5029_v40  ;;  %2109 = vmatprep.mubr.f32.mxu1 %v5029_v40 }
 0x60e   :  { %3222 = vmatpush1.bf16.msra.mxu0 %v5030_v54  ;;  %3254 = vmatpush1.bf16.msra.mxu1 %v5031_v60 }
 0x60f   :  { %3224 = vmatprep.subr.bf16.mxu0 %v5032_v58  ;;  %3256 = vmatprep.subr.bf16.mxu1 %v5033_v46 }
 0x612   :  { %3226 = vmatpush1.bf16.msra.mxu0 %v5036_v59  ;;  %3258 = vmatpush1.bf16.msra.mxu1 %v5037_v50 }
 0x613   :  { %3228 = vmatprep.subr.bf16.mxu0 %v5038_v37  ;;  %3260 = vmatprep.subr.bf16.mxu1 %v5039_v56 }
 0x616   :  { %3230 = vmatpush1.bf16.msra.mxu0 %v5040_v30  ;;  %3262 = vmatpush1.bf16.msra.mxu1 %v5058_v19 }
 0x617   :  { %3232 = vmatprep.subr.bf16.mxu0 %v5059_v20  ;;  %3264 = vmatprep.subr.bf16.mxu1 %v5060_v21 }
 0x61a   :  { %3234 = vmatpush1.bf16.msra.mxu0 %v5061_v24  ;;  %3266 = vmatpush1.bf16.msra.mxu1 %v5045_v43 }
 0x61b   :  { %3236 = vmatprep.subr.bf16.mxu0 %v5046_v35  ;;  %3268 = vmatprep.subr.bf16.mxu1 %v5047_v32 }
 0x61e   :  { %3238 = vmatpush1.bf16.msra.mxu0 %v5048_v44  ;;  %3270 = vmatpush1.bf16.msra.mxu1 %v4060_v57 }
 0x61f   :  { %3240 = vmatprep.subr.bf16.mxu0 %v4069_v45  ;;  %3272 = vmatprep.subr.bf16.mxu1 %v4071_v42 }
 0x622   :  { %3242 = vmatpush1.bf16.msra.mxu0 %v4090_v55  ;;  %3274 = vmatpush1.bf16.msra.mxu1 %v4092_v51 }
 0x623   :  { %3244 = vmatprep.subr.bf16.mxu0 %v4096_v0  ;;  %3276 = vmatprep.subr.bf16.mxu1 %v4098_v33 }
 0x626   :  { %3246 = vmatpush1.bf16.msra.mxu0 %v4110_v38  ;;  %3278 = vmatpush1.bf16.msra.mxu1 %v4112_v41 }
 0x627   :  { %2196 = vmatprep.subr.bf16.mxu0 %v4325_v28  ;;  %2237 = vmatprep.subr.bf16.mxu1 %v4328_v36  ;;  %v5144_v28 = vld [vmem:[#allocation23_spill] sm:$0xff]  ;;  %v5145_v36 = vld [vmem:[#allocation24_spill] sm:$0xff] }
 0x629   :  { %2039 = vmatmul.mubr.f32.vlgmr.msra.gmra.mrb[30].mxu0 %v1890_v47  ;;  %2110 = vmatmul.mubr.f32.vlgmr.msra.gmra.mrb[30].mxu1 %v1890_v47 }
 0x62a   :  { %2197 = vmatpush1.bf16.msra.mxu0 %v4331_v1  ;;  %2238 = vmatpush1.bf16.msra.mxu1 %v4334_v2  ;;  %v5147_v1 = vld [vmem:[#allocation26_spill] sm:$0xff]  ;;  %v5148_v2 = vld [vmem:[#allocation27_spill] sm:$0xff] }
 0x62b   :  { %2198 = vmatprep.subr.bf16.mxu0 %v4337_v3  ;;  %2239 = vmatprep.subr.bf16.mxu1 %v4340_v4  ;;  %v5149_v3 = vld [vmem:[#allocation28_spill] sm:$0xff]  ;;  %v5150_v4 = vld [vmem:[#allocation29_spill] sm:$0xff] }
 0x62c   :  { %2228 = vmatprep.mubr.bf16.mxu0 %v5028_v63  ;;  %2269 = vmatprep.mubr.bf16.mxu1 %v5028_v63 }
 0x62e   :  { %2199 = vmatpush1.bf16.msra.mxu0 %v4345_v8  ;;  %2240 = vmatpush1.bf16.msra.mxu1 %v4348_v9  ;;  %v5153_v8 = vld [vmem:[#allocation36_spill] sm:$0xff]  ;;  %v5154_v9 = vld [vmem:[#allocation37_spill] sm:$0xff] }
 0x62f   :  { %2200 = vmatprep.subr.bf16.mxu0 %v5144_v28  ;;  %2241 = vmatprep.subr.bf16.mxu1 %v5145_v36 }
 0x632   :  { %2201 = vmatpush1.bf16.msra.mxu0 %v5146_v10  ;;  %2242 = vmatpush1.bf16.msra.mxu1 %v5147_v1 }
 0x633   :  { %2202 = vmatprep.subr.bf16.mxu0 %v5148_v2  ;;  %2243 = vmatprep.subr.bf16.mxu1 %v5149_v3 }
 0x636   :  { %2203 = vmatpush1.bf16.msra.mxu0 %v5150_v4  ;;  %2244 = vmatpush1.bf16.msra.mxu1 %v5151_v6 }
 0x637   :  { %2204 = vmatprep.subr.bf16.mxu0 %v5152_v7  ;;  %2245 = vmatprep.subr.bf16.mxu1 %v5153_v8 }
 0x63a   :  { %2205 = vmatpush1.bf16.msra.mxu0 %v5154_v9  ;;  %2246 = vmatpush1.bf16.msra.mxu1 %v5155_v22 }
 0x63b   :  { %2206 = vmatprep.subr.bf16.mxu0 %v5156_v26  ;;  %2247 = vmatprep.subr.bf16.mxu1 %v5157_v11 }
 0x63e   :  { %2207 = vmatpush1.bf16.msra.mxu0 %v5158_v13  ;;  %2248 = vmatpush1.bf16.msra.mxu1 %v5159_v27 }
 0x63f   :  { %2208 = vmatprep.subr.bf16.mxu0 %v5160_v25  ;;  %2249 = vmatprep.subr.bf16.mxu1 %v5161_v31 }
 0x642   :  { %2209 = vmatpush1.bf16.msra.mxu0 %v5162_v16  ;;  %2250 = vmatpush1.bf16.msra.mxu1 %v5163_v5 }
 0x643   :  { %2210 = vmatprep.subr.bf16.mxu0 %v5164_v18  ;;  %2251 = vmatprep.subr.bf16.mxu1 %v5165_v23 }
 0x646   :  { %2211 = vmatpush1.bf16.msra.mxu0 %v5166_v14  ;;  %2252 = vmatpush1.bf16.msra.mxu1 %v5167_v39 }
 0x647   :  { %3280 = vmatprep.subr.bf16.mxu0 %v5168_v15  ;;  %3312 = vmatprep.subr.bf16.mxu1 %v5169_v17 }
 0x6dc   :  { %v1926_v12 = vpop.f32.mrb[32].mxu0  ;;  %v1967_v29 = vpop.f32.mrb[32].mxu1 }
 0x6dd   :  { %v1928_v47 = vpop.f32.mrb[33].mxu0  ;;  %v1969_v28 = vpop.f32.mrb[33].mxu1 }
 0x6de   :  { %v1930_v36 = vpop.f32.mrb[34].mxu0  ;;  %v1971_v10 = vpop.f32.mrb[34].mxu1 }
 0x6df   :  { %v1931_v1 = vpop.f32.mrb[35].mxu0  ;;  %v1972_v2 = vpop.f32.mrb[35].mxu1 }
 0x6fc   :  { %v2040_v3 = vpop.f32.mrb[30].mxu0  ;;  %v2111_v4 = vpop.f32.mrb[30].mxu1 }
 0x6fd   :  { %v2041_v6 = vadd.f32 %v2040_v3, %v1926_v12  ;;  %v2112_v7 = vadd.f32 %v2111_v4, %v1967_v29  ;;  %v2042_v8 = vpop.f32.mrb[31].mxu0  ;;  %v2113_v9 = vpop.f32.mrb[31].mxu1  ;;  %v2149_v3 = vstv %s2873_s10  ;;  %v2161_v4 = vstv %s2875_s12 }
 0x6fe   :  { %v2043_v22 = vadd.f32 %v2042_v8, %v1928_v47  ;;  %v2114_v26 = vadd.f32 %v2113_v9, %v1969_v28  ;;  %vm2150_vm13 = vcmp.eq.s32.totalorder %v3929_v62, %v2149_v3  ;;  %vm2162_vm5 = vcmp.eq.s32.totalorder %v3929_v62, %v2161_v4  ;;  %v3636_v3 = vld [vmem:[#allocation9 + $0x40] ss:$16 sps:$4 sm:$0xff]   ;;  %v3638_v4 = vld [vmem:[#allocation9 + $0x64] ss:$16 sps:$4 sm:$0xff]  }
 0x6ff   :  { %v2870_v11 = vmul.f32 -1.442695, %v2041_v6  ;;  %v2872_v27 = vmul.f32 -1.442695, %v2112_v7  ;;  %vm2151_vm15 = vmand %vm61_vm0, %vm2150_vm13  ;;  %v2167_v8 = vstv %s2876_s13  ;;  %v3640_v7 = vld [vmem:[#allocation9 + $0x60] ss:$16 sps:$4 sm:$0xff]  }
 0x700   :  { %v2871_v13 = vmul.f32 -1.442695, %v2043_v22  ;;  %v2152_v6 = vsel %vm2151_vm15, 1.0, %v5029_v40  ;;  %vm2163_vm7 = vmand %vm75_vm6, %vm2162_vm5  ;;  %vm2168_vm10 = vcmp.eq.s32.totalorder %v3929_v62, %v2167_v8  ;;  %v2173_v22 = vstv %s2877_s14  ;;  %v3641_v8 = vld [vmem:[#allocation9 + $0x68] ss:$16 sps:$4 sm:$0xff]  }
 0x701   :  { %3546 = vpow2.f32 %v2870_v11  ;;  %vm2169_vm12 = vmand %vm82_vm9, %vm2168_vm10  ;;  %vm2174_vm13 = vcmp.eq.s32.totalorder %v3929_v62, %v2173_v22  ;;  %v2179_v11 = vstv %s2878_s15  ;;  %v3644_v22 = vld [vmem:[#allocation9 + $0x80] ss:$16 sps:$4 sm:$0xff]  }
 0x702   :  { %3548 = vpow2.f32 %v2871_v13  ;;  %vm2175_vm15 = vmand %vm89_vm11, %vm2174_vm13 }
 0x703   :  { %3550 = vtanh.f32 %v2114_v26 }
 0x704   :  { %3552 = vpow2.f32 %v2872_v27  ;;  %v2185_v27 = vstv %s2879_s16 }
 0x705   :  { %vm2186_vm5 = vcmp.eq.s32.totalorder %v3929_v62, %v2185_v27  ;;  %v3648_v27 = vld [vmem:[#allocation9 + $0xa0] ss:$16 sps:$4 sm:$0xff]  }
 0x70b   :  { %v3547_v25 = vpop.eup %3546 }
 0x70c   :  { %v2125_v31 = vadd.f32 1.0, %v3547_v25  ;;  %v3549_v16 = vpop.eup %3548 }
 0x70d   :  { %v2126_v5 = vadd.f32 1.0, %v3549_v16  ;;  %v3551_v18 = vpop.eup %3550 }
 0x70e   :  { %3554 = vrcp.f32 %v2125_v31  ;;  %v3553_v23 = vpop.eup %3552  ;;  %v2191_v31 = vstv %s2880_s17 }
 0x70f   :  { %3556 = vrcp.f32 %v2126_v5  ;;  %v2127_v29 = vadd.f32 1.0, %v3553_v23  ;;  %vm2192_vm10 = vcmp.eq.s32.totalorder %v3929_v62, %v2191_v31  ;;  %v3626_v23 = vld [vmem:[#allocation9 + $0x4] ss:$16 sps:$4 sm:$0xff]  }
 0x710   :  { %v3650_v31 = vld [vmem:[#allocation9 + $0xc4] ss:$16 sps:$4 sm:$0xff]  }
 0x711   :  { %3558 = vrcp.f32 %v2127_v29  ;;  %v3630_v29 = vld [vmem:[#allocation9 + $0x24] ss:$16 sps:$4 sm:$0xff]  }
 0x718   :  { %v3555_v14 = vpop.eup %3554 }
 0x719   :  { %v2136_v39 = vmul.f32 %v3555_v14, %v3551_v18  ;;  %v3557_v12 = vpop.eup %3556  ;;  %v3627_v14 = vld [vmem:[#allocation9 + $0xc] ss:$16 sps:$4 sm:$0xff]  }
 0x71a   :  { %v2135_v47 = vmul.f32 %v3557_v12, %v4632_v34  ;;  %v2155_v34 = vstv %s2874_s11  ;;  %v3629_v12 = vld [vmem:[#allocation9 + $0x8] ss:$16 sps:$4 sm:$0xff]  }
 0x71b   :  { %v3559_v36 = vpop.eup %3558  ;;  %vm2156_vm1 = vcmp.eq.s32.totalorder %v3929_v62, %v2155_v34  ;;  %v3637_v34 = vld [vmem:[#allocation9 + $0x48] ss:$16 sps:$4 sm:$0xff]  }
 0x71c   :  { %v4735_v28 = vadd.f32 %v2136_v39, %v2135_v47  ;;  %vm4755_vm3 = vmand %vm68_vm2, %vm2156_vm1  ;;  %vm2180_vm1 = vcmp.eq.s32.totalorder %v3929_v62, %v2179_v11  ;;  %v3628_v39 = vld [vmem:[#allocation9] ss:$16 sps:$4 sm:$0xff]   ;;  %v3631_v47 = vld [vmem:[#allocation9 + $0x2c] ss:$16 sps:$4 sm:$0xff]  }
 0x71d   :  { %v2158_v9 = vsel %vm4755_vm3, 1.0, %v2152_v6  ;;  %vm2181_vm3 = vmand %vm96_vm14, %vm2180_vm1  ;;  %v3639_v6 = vld [vmem:[#allocation9 + $0x6c] ss:$16 sps:$4 sm:$0xff]   ;;  %v3646_v11 = vld [vmem:[#allocation9 + $0xa4] ss:$16 sps:$4 sm:$0xff]  }
 0x71e   :  { %3560 = vtanh.f32 %v4735_v28  ;;  %v2164_v26 = vsel %vm2163_vm7, 1.0, %v2158_v9  ;;  %vm2187_vm7 = vmand %vm103_vm4, %vm2186_vm5  ;;  %v3643_v9 = vld [vmem:[#allocation9 + $0x8c] ss:$16 sps:$4 sm:$0xff]  }
 0x71f   :  { %v2170_v13 = vsel %vm2169_vm12, 1.0, %v2164_v26  ;;  %vm2193_vm12 = vmand %vm110_vm8, %vm2192_vm10  ;;  %v3645_v26 = vld [vmem:[#allocation9 + $0x88] ss:$16 sps:$4 sm:$0xff]  }
 0x720   :  { %v2176_v25 = vsel %vm2175_vm15, 1.0, %v2170_v13  ;;  %v3647_v13 = vld [vmem:[#allocation9 + $0xac] ss:$16 sps:$4 sm:$0xff]  }
 0x721   :  { %v2182_v16 = vsel %vm2181_vm3, 1.0, %v2176_v25  ;;  %v3649_v25 = vld [vmem:[#allocation9 + $0xa8] ss:$16 sps:$4 sm:$0xff]  }
 0x722   :  { %v2188_v5 = vsel %vm2187_vm7, 1.0, %v2182_v16  ;;  %v3651_v16 = vld [vmem:[#allocation9 + $0xcc] ss:$16 sps:$4 sm:$0xff]  }
 0x723   :  { %v2194_v18 = vsel %vm2193_vm12, 1.0, %v2188_v5  ;;  %v3652_v5 = vld [vmem:[#allocation9 + $0xc0] ss:$16 sps:$4 sm:$0xff]  }
 0x728   :  { %v3561_v10 = vpop.eup %3560 }
 0x729   :  { %v2139_v1 = vmul.f32 %v3561_v10, %v3559_v36  ;;  %v3632_v36 = vld [vmem:[#allocation9 + $0x20] ss:$16 sps:$4 sm:$0xff]   ;;  %v3633_v10 = vld [vmem:[#allocation9 + $0x28] ss:$16 sps:$4 sm:$0xff]  }
 0x72b   :  { %v2195_v2 = vpack.c.bf16 %v2139_v1, %v2139_v1  ;;  %v3634_v1 = vld [vmem:[#allocation9 + $0x44] ss:$16 sps:$4 sm:$0xff]  }
 0x72d   :  { %2229 = vmatmul.mubr.bf16.vlgmr.msra.gmra.mrb[36].mxu0 %v2195_v2  ;;  %2270 = vmatmul.mubr.bf16.vlgmr.msra.gmra.mrb[36].mxu1 %v2195_v2  ;;  %v3635_v2 = vld [vmem:[#allocation9 + $0x4c] ss:$16 sps:$4 sm:$0xff]  }
 0x72e   :  { %3282 = vmatpush1.bf16.msra.mxu0 %v3915_v48  ;;  %3314 = vmatpush1.bf16.msra.mxu1 %v3917_v49 }
 0x72f   :  { %3284 = vmatprep.subr.bf16.mxu0 %v3923_v52  ;;  %3316 = vmatprep.subr.bf16.mxu1 %v3925_v53 }
 0x730   :  { %2342 = vmatprep.mubr.f32.mxu0 %v5029_v40  ;;  %2413 = vmatprep.mubr.f32.mxu1 %v5029_v40 }
 0x732   :  { %3286 = vmatpush1.bf16.msra.mxu0 %v5030_v54  ;;  %3318 = vmatpush1.bf16.msra.mxu1 %v5031_v60 }
 0x733   :  { %3288 = vmatprep.subr.bf16.mxu0 %v5032_v58  ;;  %3320 = vmatprep.subr.bf16.mxu1 %v5033_v46 }
 0x736   :  { %3290 = vmatpush1.bf16.msra.mxu0 %v5036_v59  ;;  %3322 = vmatpush1.bf16.msra.mxu1 %v5037_v50 }
 0x737   :  { %3292 = vmatprep.subr.bf16.mxu0 %v5038_v37  ;;  %3324 = vmatprep.subr.bf16.mxu1 %v5039_v56 }
 0x73a   :  { %3294 = vmatpush1.bf16.msra.mxu0 %v5040_v30  ;;  %3326 = vmatpush1.bf16.msra.mxu1 %v5058_v19 }
 0x73b   :  { %3296 = vmatprep.subr.bf16.mxu0 %v5059_v20  ;;  %3328 = vmatprep.subr.bf16.mxu1 %v5060_v21 }
 0x73e   :  { %3298 = vmatpush1.bf16.msra.mxu0 %v5061_v24  ;;  %3330 = vmatpush1.bf16.msra.mxu1 %v5045_v43 }
 0x73f   :  { %3300 = vmatprep.subr.bf16.mxu0 %v5046_v35  ;;  %3332 = vmatprep.subr.bf16.mxu1 %v5047_v32 }
 0x742   :  { %3302 = vmatpush1.bf16.msra.mxu0 %v5048_v44  ;;  %3334 = vmatpush1.bf16.msra.mxu1 %v4060_v57 }
 0x743   :  { %3304 = vmatprep.subr.bf16.mxu0 %v4069_v45  ;;  %3336 = vmatprep.subr.bf16.mxu1 %v4071_v42 }
 0x746   :  { %3306 = vmatpush1.bf16.msra.mxu0 %v4090_v55  ;;  %3338 = vmatpush1.bf16.msra.mxu1 %v4092_v51 }
 0x747   :  { %3308 = vmatprep.subr.bf16.mxu0 %v4096_v0  ;;  %3340 = vmatprep.subr.bf16.mxu1 %v4098_v33 }
 0x74a   :  { %3310 = vmatpush1.bf16.msra.mxu0 %v4110_v38  ;;  %3342 = vmatpush1.bf16.msra.mxu1 %v4112_v41 }
 0x74b   :  { %2500 = vmatprep.subr.bf16.mxu0 %v3626_v23  ;;  %2541 = vmatprep.subr.bf16.mxu1 %v3627_v14  ;;  %v3654_v23 = vld [vmem:[#allocation9 + $0xe4] ss:$16 sps:$4 sm:$0xff]   ;;  %v3655_v14 = vld [vmem:[#allocation9 + $0xec] ss:$16 sps:$4 sm:$0xff]  }
 0x74d   :  { %2343 = vmatmul.mubr.f32.vlgmr.msra.gmra.mrb[40].mxu0 %v2194_v18  ;;  %2414 = vmatmul.mubr.f32.vlgmr.msra.gmra.mrb[40].mxu1 %v2194_v18  ;;  %v3653_v18 = vld [vmem:[#allocation9 + $0xc8] ss:$16 sps:$4 sm:$0xff]  }
 0x74e   :  { %2501 = vmatpush1.bf16.msra.mxu0 %v3628_v39  ;;  %2542 = vmatpush1.bf16.msra.mxu1 %v3629_v12  ;;  %v3656_v39 = vld [vmem:[#allocation9 + $0xe0] ss:$16 sps:$4 sm:$0xff]   ;;  %v3657_v12 = vld [vmem:[#allocation9 + $0xe8] ss:$16 sps:$4 sm:$0xff]  }
 0x74f   :  { %2502 = vmatprep.subr.bf16.mxu0 %v3630_v29  ;;  %2543 = vmatprep.subr.bf16.mxu1 %v3631_v47 }
 0x750   :  { %2532 = vmatprep.mubr.bf16.mxu0 %v5028_v63  ;;  %2573 = vmatprep.mubr.bf16.mxu1 %v5028_v63  ;;  %v3642_v63 = vld [vmem:[#allocation9 + $0x84] ss:$16 sps:$4 sm:$0xff]  }
 0x752   :  { %2503 = vmatpush1.bf16.msra.mxu0 %v3632_v36  ;;  %2544 = vmatpush1.bf16.msra.mxu1 %v3633_v10 }
 0x753   :  { %2504 = vmatprep.subr.bf16.mxu0 %v3634_v1  ;;  %2545 = vmatprep.subr.bf16.mxu1 %v3635_v2 }
 0x756   :  { %2505 = vmatpush1.bf16.msra.mxu0 %v3636_v3  ;;  %2546 = vmatpush1.bf16.msra.mxu1 %v3637_v34 }
 0x757   :  { %2506 = vmatprep.subr.bf16.mxu0 %v3638_v4  ;;  %2547 = vmatprep.subr.bf16.mxu1 %v3639_v6 }
 0x75a   :  { %2507 = vmatpush1.bf16.msra.mxu0 %v3640_v7  ;;  %2548 = vmatpush1.bf16.msra.mxu1 %v3641_v8 }
 0x75b   :  { %2508 = vmatprep.subr.bf16.mxu0 %v3642_v63  ;;  %2549 = vmatprep.subr.bf16.mxu1 %v3643_v9 }
 0x75e   :  { %2509 = vmatpush1.bf16.msra.mxu0 %v3644_v22  ;;  %2550 = vmatpush1.bf16.msra.mxu1 %v3645_v26 }
 0x75f   :  { %2510 = vmatprep.subr.bf16.mxu0 %v3646_v11  ;;  %2551 = vmatprep.subr.bf16.mxu1 %v3647_v13 }
 0x762   :  { %2511 = vmatpush1.bf16.msra.mxu0 %v3648_v27  ;;  %2552 = vmatpush1.bf16.msra.mxu1 %v3649_v25 }
 0x763   :  { %2512 = vmatprep.subr.bf16.mxu0 %v3650_v31  ;;  %2553 = vmatprep.subr.bf16.mxu1 %v3651_v16 }
 0x766   :  { %2513 = vmatpush1.bf16.msra.mxu0 %v3652_v5  ;;  %2554 = vmatpush1.bf16.msra.mxu1 %v3653_v18 }
 0x767   :  { %2514 = vmatprep.subr.bf16.mxu0 %v3654_v23  ;;  %2555 = vmatprep.subr.bf16.mxu1 %v3655_v14 }
 0x76a   :  { %2515 = vmatpush1.bf16.msra.mxu0 %v3656_v39  ;;  %2556 = vmatpush1.bf16.msra.mxu1 %v3657_v12 }
 0x76b   :  { %3344 = vmatprep.subr.bf16.mxu0 %v5168_v15  ;;  %3376 = vmatprep.subr.bf16.mxu1 %v5169_v17 }
 0x800   :  { %v2230_v29 = vpop.f32.mrb[36].mxu0  ;;  %v2271_v47 = vpop.f32.mrb[36].mxu1 }
 0x801   :  { %v2232_v36 = vpop.f32.mrb[37].mxu0  ;;  %v2273_v10 = vpop.f32.mrb[37].mxu1 }
 0x802   :  { %v2234_v1 = vpop.f32.mrb[38].mxu0  ;;  %v2275_v2 = vpop.f32.mrb[38].mxu1 }
 0x803   :  { %v2235_v3 = vpop.f32.mrb[39].mxu0  ;;  %v2276_v34 = vpop.f32.mrb[39].mxu1  ;;  %v2453_v2 = vstv %s2884_s1 }
 0x804   :  { %vm2454_vm13 = vcmp.eq.s32.totalorder %v3929_v62, %v2453_v2 }
 0x805   :  { %vm2455_vm15 = vmand %vm61_vm0, %vm2454_vm13 }
 0x820   :  { %v2344_v4 = vpop.f32.mrb[40].mxu0  ;;  %v2415_v6 = vpop.f32.mrb[40].mxu1 }
 0x821   :  { %v2345_v7 = vadd.f32 %v2344_v4, %v2230_v29  ;;  %v2416_v8 = vadd.f32 %v2415_v6, %v2271_v47  ;;  %v2346_v63 = vpop.f32.mrb[41].mxu0  ;;  %v2417_v9 = vpop.f32.mrb[41].mxu1 }
 0x822   :  { %v2347_v22 = vadd.f32 %v2346_v63, %v2232_v36  ;;  %v2418_v26 = vadd.f32 %v2417_v9, %v2273_v10 }
 0x823   :  { %v2881_v11 = vmul.f32 -1.442695, %v2345_v7  ;;  %v2883_v17 = vmul.f32 -1.442695, %v2416_v8 }
 0x824   :  { %v2882_v15 = vmul.f32 -1.442695, %v2347_v22 }
 0x825   :  { %3562 = vpow2.f32 %v2881_v11 }
 0x826   :  { %3564 = vpow2.f32 %v2882_v15 }
 0x827   :  { %3566 = vtanh.f32 %v2418_v26 }
 0x828   :  { %3568 = vpow2.f32 %v2883_v17 }
 0x82f   :  { %v3563_v13 = vpop.eup %3562 }
 0x830   :  { %v2429_v27 = vadd.f32 1.0, %v3563_v13  ;;  %v3565_v25 = vpop.eup %3564 }
 0x831   :  { %v2430_v31 = vadd.f32 1.0, %v3565_v25  ;;  %v3567_v16 = vpop.eup %3566 }
 0x832   :  { %3570 = vrcp.f32 %v2429_v27  ;;  %v3569_v5 = vpop.eup %3568 }
 0x833   :  { %3572 = vrcp.f32 %v2430_v31  ;;  %v2431_v39 = vadd.f32 1.0, %v3569_v5 }
 0x835   :  { %3574 = vrcp.f32 %v2431_v39 }
 0x83c   :  { %v3571_v18 = vpop.eup %3570 }
 0x83d   :  { %v2440_v23 = vmul.f32 %v3571_v18, %v3567_v16  ;;  %v3573_v14 = vpop.eup %3572 }
 0x83e   :  { %v2439_v12 = vmul.f32 %v3573_v14, %v4735_v28  ;;  %v2459_v28 = vstv %s2885_s18 }
 0x83f   :  { %v3575_v47 = vpop.eup %3574  ;;  %vm2460_vm1 = vcmp.eq.s32.totalorder %v3929_v62, %v2459_v28 }
 0x840   :  { %v4806_v29 = vadd.f32 %v2440_v23, %v2439_v12  ;;  %vm4826_vm3 = vmand %vm68_vm2, %vm2460_vm1 }
 0x842   :  { %3576 = vtanh.f32 %v4806_v29 }
 0x84c   :  { %v3577_v36 = vpop.eup %3576 }
 0x84d   :  { %v2443_v10 = vmul.f32 %v3577_v36, %v3575_v47 }
 0x84f   :  { %v2499_v1 = vpack.c.bf16 %v2443_v10, %v2443_v10 }
 0x851   :  { %2533 = vmatmul.mubr.bf16.vlgmr.msra.gmra.mrb[44].mxu0 %v2499_v1  ;;  %2574 = vmatmul.mubr.bf16.vlgmr.msra.gmra.mrb[44].mxu1 %v2499_v1 }
 0x852   :  { %3346 = vmatpush1.bf16.msra.mxu0 %v3915_v48  ;;  %3378 = vmatpush1.bf16.msra.mxu1 %v3917_v49  ;;  %v2465_v48 = vstv %s2886_s19  ;;  %v2456_v49 = vsel %vm2455_vm15, 1.0, %v5029_v40 }
 0x853   :  { %3348 = vmatprep.subr.bf16.mxu0 %v3923_v52  ;;  %3380 = vmatprep.subr.bf16.mxu1 %v3925_v53  ;;  %vm2466_vm5 = vcmp.eq.s32.totalorder %v3929_v62, %v2465_v48  ;;  %v2471_v53 = vstv %s2887_s20 }
 0x854   :  { %2646 = vmatprep.mubr.f32.mxu0 %v5029_v40  ;;  %2717 = vmatprep.mubr.f32.mxu1 %v5029_v40  ;;  %v2462_v40 = vsel %vm4826_vm3, 1.0, %v2456_v49  ;;  %vm2467_vm0 = vmand %vm75_vm6, %vm2466_vm5  ;;  %vm2472_vm2 = vcmp.eq.s32.totalorder %v3929_v62, %v2471_v53 }
 0x855   :  { %vm2473_vm7 = vmand %vm82_vm9, %vm2472_vm2 }
 0x856   :  { %3350 = vmatpush1.bf16.msra.mxu0 %v5030_v54  ;;  %3382 = vmatpush1.bf16.msra.mxu1 %v5031_v60  ;;  %v2477_v54 = vstv %s2888_s2  ;;  %v2468_v60 = vsel %vm2467_vm0, 1.0, %v2462_v40 }
 0x857   :  { %3352 = vmatprep.subr.bf16.mxu0 %v5032_v58  ;;  %3384 = vmatprep.subr.bf16.mxu1 %v5033_v46  ;;  %vm2478_vm10 = vcmp.eq.s32.totalorder %v3929_v62, %v2477_v54  ;;  %v2483_v58 = vstv %s2889_s21  ;;  %v2474_v46 = vsel %vm2473_vm7, 1.0, %v2468_v60 }
 0x858   :  { %vm2479_vm6 = vmand %vm89_vm11, %vm2478_vm10  ;;  %vm2484_vm12 = vcmp.eq.s32.totalorder %v3929_v62, %v2483_v58 }
 0x859   :  { %vm2485_vm9 = vmand %vm96_vm14, %vm2484_vm12 }
 0x85a   :  { %3354 = vmatpush1.bf16.msra.mxu0 %v5036_v59  ;;  %3386 = vmatpush1.bf16.msra.mxu1 %v5037_v50  ;;  %v2489_v59 = vstv %s2890_s22  ;;  %v2480_v50 = vsel %vm2479_vm6, 1.0, %v2474_v46 }
 0x85b   :  { %3356 = vmatprep.subr.bf16.mxu0 %v5038_v37  ;;  %3388 = vmatprep.subr.bf16.mxu1 %v5039_v56  ;;  %vm2490_vm13 = vcmp.eq.s32.totalorder %v3929_v62, %v2489_v59  ;;  %v2495_v37 = vstv %s2891_s23  ;;  %v2486_v56 = vsel %vm2485_vm9, 1.0, %v2480_v50 }
 0x85c   :  { %vm2491_vm11 = vmand %vm103_vm4, %vm2490_vm13  ;;  %vm2496_vm15 = vcmp.eq.s32.totalorder %v3929_v62, %v2495_v37 }
 0x85d   :  { %vm2497_vm14 = vmand %vm110_vm8, %vm2496_vm15 }
 0x85e   :  { %3358 = vmatpush1.bf16.msra.mxu0 %v5040_v30  ;;  %3390 = vmatpush1.bf16.msra.mxu1 %v5058_v19  ;;  %v2492_v30 = vsel %vm2491_vm11, 1.0, %v2486_v56 }
 0x85f   :  { %3360 = vmatprep.subr.bf16.mxu0 %v5059_v20  ;;  %3392 = vmatprep.subr.bf16.mxu1 %v5060_v21 }
 0x862   :  { %3362 = vmatpush1.bf16.msra.mxu0 %v5061_v24  ;;  %3394 = vmatpush1.bf16.msra.mxu1 %v5045_v43 }
 0x863   :  { %3364 = vmatprep.subr.bf16.mxu0 %v5046_v35  ;;  %3396 = vmatprep.subr.bf16.mxu1 %v5047_v32 }
 0x866   :  { %3366 = vmatpush1.bf16.msra.mxu0 %v5048_v44  ;;  %3398 = vmatpush1.bf16.msra.mxu1 %v4060_v57  ;;  %v2498_v57 = vsel %vm2497_vm14, 1.0, %v2492_v30 }
 0x867   :  { %3368 = vmatprep.subr.bf16.mxu0 %v4069_v45  ;;  %3400 = vmatprep.subr.bf16.mxu1 %v4071_v42 }
 0x86a   :  { %3370 = vmatpush1.bf16.msra.mxu0 %v4090_v55  ;;  %3402 = vmatpush1.bf16.msra.mxu1 %v4092_v51 }
 0x86b   :  { %3372 = vmatprep.subr.bf16.mxu0 %v4096_v0  ;;  %3404 = vmatprep.subr.bf16.mxu1 %v4098_v33 }
 0x86e   :  { %3374 = vmatpush1.bf16.msra.mxu0 %v4110_v38  ;;  %3406 = vmatpush1.bf16.msra.mxu1 %v4112_v41 }
 0x871   :  { %2647 = vmatmul.mubr.f32.vlgmr.msra.gmra.mrb[42].mxu0 %v2498_v57  ;;  %2718 = vmatmul.mubr.f32.vlgmr.msra.gmra.mrb[42].mxu1 %v2498_v57 }
 0x924   :  { %v2534_v62 = vpop.f32.mrb[44].mxu0  ;;  %v2575_v45 = vpop.f32.mrb[44].mxu1 }
 0x925   :  { %v2536_v42 = vpop.f32.mrb[45].mxu0  ;;  %v2577_v55 = vpop.f32.mrb[45].mxu1 }
 0x926   :  { %v2538_v51 = vpop.f32.mrb[46].mxu0  ;;  %v2579_v35 = vpop.f32.mrb[46].mxu1 }
 0x927   :  { %v2539_v0 = vpop.f32.mrb[47].mxu0  ;;  %v2580_v44 = vpop.f32.mrb[47].mxu1 }
 0x944   :  { %v2648_v33 = vpop.f32.mrb[42].mxu0  ;;  %v2719_v43 = vpop.f32.mrb[42].mxu1 }
 0x945   :  { %v2649_v32 = vadd.f32 %v2648_v33, %v2534_v62  ;;  %v2720_v61 = vadd.f32 %v2719_v43, %v2575_v45  ;;  %v2650_v19 = vpop.f32.mrb[43].mxu0  ;;  %v2721_v20 = vpop.f32.mrb[43].mxu1 }
 0x946   :  { %v2651_v38 = vadd.f32 %v2650_v19, %v2536_v42  ;;  %v2722_v21 = vadd.f32 %v2721_v20, %v2577_v55 }
 0x947   :  { %v2892_v41 = vmul.f32 -1.442695, %v2649_v32  ;;  %v2894_v3 = vmul.f32 -1.442695, %v2720_v61 }
 0x948   :  { %v2893_v24 = vmul.f32 -1.442695, %v2651_v38 }
 0x949   :  { %3578 = vpow2.f32 %v2892_v41 }
 0x94a   :  { %3580 = vpow2.f32 %v2893_v24 }
 0x94b   :  { %3582 = vtanh.f32 %v2722_v21 }
 0x94c   :  { %3584 = vpow2.f32 %v2894_v3 }
 0x953   :  { %v3579_v34 = vpop.eup %3578 }
 0x954   :  { %v2733_v4 = vadd.f32 1.0, %v3579_v34  ;;  %v3581_v6 = vpop.eup %3580 }
 0x955   :  { %v2734_v7 = vadd.f32 1.0, %v3581_v6  ;;  %v3583_v8 = vpop.eup %3582 }
 0x956   :  { %3586 = vrcp.f32 %v2733_v4  ;;  %v3585_v63 = vpop.eup %3584 }
 0x957   :  { %3588 = vrcp.f32 %v2734_v7  ;;  %v2735_v11 = vadd.f32 1.0, %v3585_v63 }
 0x959   :  { %3590 = vrcp.f32 %v2735_v11 }
 0x960   :  { %v3587_v9 = vpop.eup %3586 }
 0x961   :  { %v2744_v22 = vmul.f32 %v3587_v9, %v3583_v8  ;;  %v3589_v26 = vpop.eup %3588 }
 0x962   :  { %v2743_v15 = vmul.f32 %v3589_v26, %v4806_v29 }
 0x963   :  { %v3591_v13 = vpop.eup %3590 }
 0x964   :  { %v2745_v17 = vadd.f32 %v2744_v22, %v2743_v15 }
 0x966   :  { %3592 = vtanh.f32 %v2745_v17 }
 0x970   :  { %v3593_v27 = vpop.eup %3592 }
 0x971   :  { %v2747_v25 = vmul.f32 %v3593_v27, %v3591_v13 }
 0x973   :  { %2759 = vst [vmem:[#allocation11] sm:$0xff] %v2747_v25 }
 0x974   :  { %3723 = shalt.err (!%p3720_p9)
}
 0x975   :  { %s3724_s29 = scalar_lea.hbm %s4888_s3, 128 }
 0x976   :  { %p3725_p10 = scmp.ne.s32.totalorder %s4888_s3, %s3724_s29  ;;  %p3728_p11 = scmp.lt.u32.totalorder %s3724_s29, %s4888_s3 }
 0x978   :  { %p3730_p12 = pnand %p3728_p11, %p3725_p10 }
 0x97a   :  { %3733 = shalt.err (!%p3730_p12)
}
 0x97b   :  { %2769 = dma.vmem_to_hbm [thread:$0]  %s2767_s25, 128, %s4888_s3, [#allocation8]  }
 0x97c   :  { %3740 = dma.done.wait [#allocation8], 128  }
 0x97d   :  { %3741 = vsyncadd [#allocation8], 4294967168 }
 0x97e   :  { %2773 = vsyncpa [#allocation7], 1 }
 0x97f   :  { %2774 = vsyncpa [#allocation10], 1 }
 0x980   :  { %2775 = vsyncpa [#allocation8], 1 }

</bundles_post_ra>
